<compile_context>
chip_gen: v6e
topology: v6e:2x2x1
jax: 0.10.0
libtpu: 0.0.40
codegen_flags: <defaults>
</compile_context>

<pallas_src>
import jax
import jax.numpy as jnp
from jax.experimental import pallas as pl
from jax.experimental.pallas import tpu as pltpu


_BIAS_ORDER = ["sb1", "sb2", "sb3", "sf1b", "sf2b", "sf3b",
               "fb1", "fb2", "fb3", "cb1", "cb2", "h1b", "h2b", "h3b"]


def _make_kernel(pairs, n_valid, n_pad, bias_off):
    """Build the fused kernel for a given pairs-per-step / point-count configuration."""
    S = 2 * pairs          # samples per grid step (A side + B side)
    R = S * n_pad          # row-stacked points per grid step

    def kernel(x_ref, b_ref,
               sw1, sw2, sw3, sf1w, sf2w, sf3w,
               fw1, fw2, fw3,
               cw1g, cw1p, cw2, h1w, h2w, h3w,
               out_ref):
        f32 = jnp.float32

        def bias(name):
            off, width = bias_off[name]
            return b_ref[:, off:off + width]          # (1, width), 128-lane-aligned offset

        def mm(a, w_ref):
            # MXU matmul; weights may be bf16 (v6e/v7x), accumulation always f32.
            return jnp.dot(a.astype(w_ref.dtype), w_ref[...], preferred_element_type=f32)

        def relu(a):
            return jnp.maximum(a, 0.0)

        if n_pad > n_valid:
            pt = jax.lax.broadcasted_iota(jnp.int32, (1, n_pad, 1), 1)
            pool_mask = pt < n_valid
        else:
            pool_mask = None

        def pool_max(v2, ch):
            v3 = v2.reshape(S, n_pad, ch)
            if pool_mask is not None:                 # exclude zero-padded points from the max
                v3 = jnp.where(pool_mask, v3, -3.0e38)
            return jnp.max(v3, axis=1)                # (S, ch)

        x = x_ref[...].reshape(S, n_pad, 3)           # row-stacked pair batch
        xr = x.reshape(R, 3)

        # ---------------- STN3d: predict a 3x3 input transform per sample -------------------
        # K=3 layer as 3 lane-dense VPU FMAs (no padded-K MXU push).
        h = relu(xr[:, 0:1] * sw1[0:1, :] + xr[:, 1:2] * sw1[1:2, :]
                 + xr[:, 2:3] * sw1[2:3, :] + bias("sb1"))          # (R, 64)
        h = relu(mm(h, sw2) + bias("sb2"))                          # (R, 128)
        h = relu(mm(h, sw3) + bias("sb3"))                          # (R, 256)
        g = pool_max(h, 256)                                        # (S, 256) max over points
        g = relu(mm(g, sf1w) + bias("sf1b"))                        # (S, 128)
        g = relu(mm(g, sf2w) + bias("sf2b"))                        # (S, 64)
        t = mm(g, sf3w) + bias("sf3b")                              # (S, 9) row-major 3x3
        # (3x3 identity is folded into the packed sf3b bias in the wrapper)

        # ------ fold the per-sample transform into fw1: (x @ T) @ fw1 == x @ (T @ fw1) ------
        tfw = [t[:, 3 * i + 0:3 * i + 1] * fw1[0:1, :]
               + t[:, 3 * i + 1:3 * i + 2] * fw1[1:2, :]
               + t[:, 3 * i + 2:3 * i + 3] * fw1[2:3, :]
               for i in range(3)]                                   # 3 x (S, 64)

        # ---------------- PointNetfeat shared MLPs (1x1 convs == per-point matmuls) ---------
        h1 = relu(x[:, :, 0:1] * tfw[0][:, None, :]
                  + x[:, :, 1:2] * tfw[1][:, None, :]
                  + x[:, :, 2:3] * tfw[2][:, None, :] + bias("fb1"))  # (S, N, 64)
        h1r = h1.reshape(R, 64)
        h2 = relu(mm(h1r, fw2) + bias("fb2"))                       # (R, 128)
        h3 = mm(h2, fw3) + bias("fb3")                              # (R, 256) (bn3, no relu)
        gf = pool_max(h3, 256)                                      # (S, 256) global feature

        # ---------------- Siamese head on concat([global(256), point(64)]) ------------------
        # feat @ cw1 == gf @ cw1[:256] + h1 @ cw1[256:], so no explicit concat is needed.
        gpart = mm(gf, cw1g) + bias("cb1")                          # (S, 128)
        ppart = mm(h1r, cw1p).reshape(S, n_pad, 128)                # (S, N, 128)
        c1 = relu(ppart + gpart[:, None, :])                        # (S, N, 128)
        c2 = relu(mm(c1.reshape(R, 128), cw2) + bias("cb2"))        # (R, 64)
        v = pool_max(c2, 64)                                        # (S, 64) max over points
        v = relu(mm(v, h1w) + bias("h1b"))                          # (S, 64)  fc1 + fc_bn1
        v = mm(v, h2w) + bias("h2b")                                # (S, 16)  fc2

        d = jnp.abs(v[:pairs] - v[pairs:])                          # |x[:B//2] - x[B//2:]|
        logits = mm(d, h3w) + bias("h3b")                           # (P, 2)   fc3

        # lane-dense packed output row per pair: [logits(2) | trans_A(9) | trans_B(9) | pad]
        pad = jnp.zeros((pairs, 128 - 2 - 9 - 9), f32)
        out_ref[0] = jnp.concatenate([logits, t[:pairs], t[pairs:], pad], axis=-1)

    return kernel


def _pack_biases(params):
    """Pack all bias rows into one 128-lane-aligned f32 array; fold the 3x3 identity into sf3b
    (this also removes the captured-constant that broke the previous kernel)."""
    iden = jnp.array([1., 0., 0., 0., 1., 0., 0., 0., 1.], jnp.float32)
    offsets = {}
    parts = []
    off = 0
    for name in _BIAS_ORDER:
        b = params[name].reshape(-1).astype(jnp.float32)
        if name == "sf3b":
            b = b + iden
        width = b.shape[0]
        slot = -(-width // 128) * 128
        parts.append(jnp.pad(b, (0, slot - width)))
        offsets[name] = (off, width)
        off += slot
    return jnp.concatenate(parts).reshape(1, off), offsets


def _choose_pairs_per_step(half, n_pad, vmem_budget_bytes=16 * 1024 * 1024):
    """Largest divisor of `half` whose per-step activation footprint fits the budget and (when
    possible) keeps >= 2 grid steps so both v7x TensorCores get work."""
    per_pair = 2 * n_pad * 1088 * 4 * 2        # f32 activations, ~2x slack for temporaries
    max_p = max(1, vmem_budget_bytes // per_pair)
    divisors = [p for p in range(1, half + 1) if half % p == 0]
    fits = [p for p in divisors if p <= max_p] or [1]
    multi = [p for p in fits if half // p >= 2]
    return max(multi) if multi else max(fits)


def siamese_pointnet_forward(x, params, use_bf16_matmul=False):
    """x: (B, 3, n_pts) float32 (PyTorch NCW). Returns (logits (B//2, 2), trans (B, 3, 3), None)."""
    B, C, N = x.shape
    assert C == 3 and B % 2 == 0
    half = B // 2
    n_pad = -(-N // 8) * 8                     # pad the points axis to a sublane multiple
    xp = jnp.transpose(x, (0, 2, 1)).reshape(2, half, N, 3)
    if n_pad != N:
        xp = jnp.pad(xp, ((0, 0), (0, 0), (0, n_pad - N), (0, 0)))

    pairs = _choose_pairs_per_step(half, n_pad)
    steps = half // pairs

    bias_pack, bias_off = _pack_biases(params)

    # bf16 weights roughly double MXU throughput on v6e/v7x (accumulation stays f32);
    # default f32 keeps exact parity with the f32 reference. VPU-side weights stay f32.
    wdt = jnp.bfloat16 if use_bf16_matmul else jnp.float32
    cw1 = params["cw1"]
    weights = [
        params["sw1"],                                             # VPU broadcast-FMA (f32)
        params["sw2"].astype(wdt), params["sw3"].astype(wdt),
        params["sf1w"].astype(wdt), params["sf2w"].astype(wdt), params["sf3w"].astype(wdt),
        params["fw1"],                                             # VPU broadcast-FMA (f32)
        params["fw2"].astype(wdt), params["fw3"].astype(wdt),
        cw1[:256].astype(wdt), cw1[256:].astype(wdt),              # global / point halves
        params["cw2"].astype(wdt),
        params["h1w"].astype(wdt), params["h2w"].astype(wdt), params["h3w"].astype(wdt),
    ]

    def full_spec(arr):
        nd = arr.ndim
        return pl.BlockSpec(arr.shape, lambda *_: (0,) * nd)

    in_specs = [pl.BlockSpec((2, pairs, n_pad, 3), lambda i: (0, i, 0, 0)),
                full_spec(bias_pack)]
    in_specs += [full_spec(w) for w in weights]

    out_shape = jax.ShapeDtypeStruct((steps, pairs, 128), jnp.float32)
    out_spec = pl.BlockSpec((1, pairs, 128), lambda i: (i, 0, 0))

    kernel = _make_kernel(pairs, N, n_pad, bias_off)

    packed = pl.pallas_call(
        kernel,
        out_shape=out_shape,
        grid_spec=pltpu.PrefetchScalarGridSpec(
            num_scalar_prefetch=0,
            grid=(steps,),
            in_specs=in_specs,
            out_specs=out_spec,
        ),
        compiler_params=pltpu.CompilerParams(
            dimension_semantics=("parallel",),
            vmem_limit_bytes=32 * 1024 * 1024,
        ),
    )(xp, bias_pack, *weights)

    packed = packed.reshape(half, 128)
    logits = packed[:, 0:2]
    trans = jnp.concatenate([packed[:, 2:11], packed[:, 11:20]], axis=0).reshape(B, 3, 3)
    return logits, trans, None     # trans_feat is None (feature_transform=False)


def init_params(key):
    """Deterministic synthetic params; BatchNorm (eval mode) folded into conv/linear weights."""
    eps = 1e-5
    keys = iter(jax.random.split(key, 80))

    def lin(cin, cout):
        w = jax.random.normal(next(keys), (cin, cout), jnp.float32) / jnp.sqrt(float(cin))
        b = 0.05 * jax.random.normal(next(keys), (1, cout), jnp.float32)
        return w, b

    def fold_bn(w, b, c):
        gamma = 1.0 + 0.1 * jax.random.normal(next(keys), (c,), jnp.float32)
        beta = 0.1 * jax.random.normal(next(keys), (c,), jnp.float32)
        mean = jnp.zeros((c,), jnp.float32)
        var = jnp.ones((c,), jnp.float32)
        scale = gamma / jnp.sqrt(var + eps)
        return w * scale[None, :], (b - mean[None, :]) * scale[None, :] + beta[None, :]

    p = {}
    # STN3d
    p["sw1"], p["sb1"] = fold_bn(*lin(3, 64), 64)
    p["sw2"], p["sb2"] = fold_bn(*lin(64, 128), 128)
    p["sw3"], p["sb3"] = fold_bn(*lin(128, 256), 256)
    p["sf1w"], p["sf1b"] = fold_bn(*lin(256, 128), 128)
    p["sf2w"], p["sf2b"] = fold_bn(*lin(128, 64), 64)
    p["sf3w"], p["sf3b"] = lin(64, 9)
    # PointNetfeat shared MLPs
    p["fw1"], p["fb1"] = fold_bn(*lin(3, 64), 64)
    p["fw2"], p["fb2"] = fold_bn(*lin(64, 128), 128)
    p["fw3"], p["fb3"] = fold_bn(*lin(128, 256), 256)
    # Siamese head
    p["cw1"], p["cb1"] = fold_bn(*lin(320, 128), 128)
    p["cw2"], p["cb2"] = fold_bn(*lin(128, 64), 64)
    p["h1w"], p["h1b"] = fold_bn(*lin(64, 64), 64)   # fc1 + fc_bn1
    p["h2w"], p["h2b"] = lin(64, 16)                 # fc2
    p["h3w"], p["h3b"] = lin(16, 2)                  # fc3
    return p


def reference_forward(x, p):
    """Pure-JAX reference with the same folded parameters, for validation."""
    B, _, N = x.shape
    half = B // 2
    xt = jnp.transpose(x, (0, 2, 1))                   # (B, N, 3)
    relu = lambda a: jnp.maximum(a, 0.0)
    # STN3d
    h = relu(xt @ p["sw1"] + p["sb1"])
    h = relu(h @ p["sw2"] + p["sb2"])
    h = relu(h @ p["sw3"] + p["sb3"])
    g = jnp.max(h, axis=1)
    g = relu(g @ p["sf1w"] + p["sf1b"])
    g = relu(g @ p["sf2w"] + p["sf2b"])
    t = g @ p["sf3w"] + p["sf3b"] + jnp.array([1., 0, 0, 0, 1, 0, 0, 0, 1], jnp.float32)
    trans = t.reshape(B, 3, 3)
    # PointNetfeat
    xtr = jnp.einsum("bnc,bcd->bnd", xt, trans)
    h1 = relu(xtr @ p["fw1"] + p["fb1"])
    h2 = relu(h1 @ p["fw2"] + p["fb2"])
    h3 = h2 @ p["fw3"] + p["fb3"]
    gf = jnp.max(h3, axis=1, keepdims=True)
    feat = jnp.concatenate([jnp.broadcast_to(gf, (B, N, 256)), h1], axis=-1)
    # Head
    c1 = relu(feat @ p["cw1"] + p["cb1"])
    c2 = relu(c1 @ p["cw2"] + p["cb2"])
    v = jnp.max(c2, axis=1)
    v = relu(v @ p["h1w"] + p["h1b"])
    v = v @ p["h2w"] + p["h2b"]
    d = jnp.abs(v[:half] - v[half:])
    out = d @ p["h3w"] + p["h3b"]
    return out, trans


if __name__ == "__main__":
    key = jax.random.PRNGKey(0)
    kx, kp = jax.random.split(key)
    B, N = 8, 64
    x = jax.random.normal(kx, (B, 3, N), jnp.float32)   # NCW, like torch Conv1d input
    params = init_params(kp)

    logits, trans, trans_feat = siamese_pointnet_forward(x, params)
    jax.block_until_ready((logits, trans))

    ref_logits, ref_trans = reference_forward(x, params)
    assert logits.shape == (B // 2, 2)
    assert trans.shape == (B, 3, 3)
    assert trans_feat is None
    assert jnp.allclose(trans, ref_trans, rtol=2e-2, atol=2e-2), "trans mismatch"
    assert jnp.allclose(logits, ref_logits, rtol=2e-2, atol=2e-2), "logits mismatch"
    print("KERNEL_OK")
</pallas_src>

<mosaic_0001>
module attributes {stable_mosaic.version = 11 : i64} {
  func.func @kernel(%arg0: i32, %arg1: memref<2x2x64x3xf32, #tpu.memory_space<vmem>>, %arg2: memref<1x2048xf32, #tpu.memory_space<vmem>>, %arg3: memref<3x64xf32, #tpu.memory_space<vmem>>, %arg4: memref<64x128xf32, #tpu.memory_space<vmem>>, %arg5: memref<128x256xf32, #tpu.memory_space<vmem>>, %arg6: memref<256x128xf32, #tpu.memory_space<vmem>>, %arg7: memref<128x64xf32, #tpu.memory_space<vmem>>, %arg8: memref<64x9xf32, #tpu.memory_space<vmem>>, %arg9: memref<3x64xf32, #tpu.memory_space<vmem>>, %arg10: memref<64x128xf32, #tpu.memory_space<vmem>>, %arg11: memref<128x256xf32, #tpu.memory_space<vmem>>, %arg12: memref<256x128xf32, #tpu.memory_space<vmem>>, %arg13: memref<64x128xf32, #tpu.memory_space<vmem>>, %arg14: memref<128x64xf32, #tpu.memory_space<vmem>>, %arg15: memref<64x64xf32, #tpu.memory_space<vmem>>, %arg16: memref<64x16xf32, #tpu.memory_space<vmem>>, %arg17: memref<16x2xf32, #tpu.memory_space<vmem>>, %arg18: memref<1x2x128xf32, #tpu.memory_space<vmem>>) attributes {dimension_semantics = [#tpu.dimension_semantics<parallel>], iteration_bounds = array<i64: 2>, scalar_prefetch = 0 : i64, scratch_operands = 0 : i64, tpu.core_type = #tpu.core_type<tc>, window_params = [{transform_indices = @transform_0, window_bounds = array<i64: 2, 2, 64, 3>}, {pipeline_mode = #tpu.pipeline_mode<synchronous>, transform_indices = @transform_1, window_bounds = array<i64: 1, 2048>}, {pipeline_mode = #tpu.pipeline_mode<synchronous>, transform_indices = @transform_2, window_bounds = array<i64: 3, 64>}, {pipeline_mode = #tpu.pipeline_mode<synchronous>, transform_indices = @transform_3, window_bounds = array<i64: 64, 128>}, {pipeline_mode = #tpu.pipeline_mode<synchronous>, transform_indices = @transform_4, window_bounds = array<i64: 128, 256>}, {pipeline_mode = #tpu.pipeline_mode<synchronous>, transform_indices = @transform_5, window_bounds = array<i64: 256, 128>}, {pipeline_mode = #tpu.pipeline_mode<synchronous>, transform_indices = @transform_6, window_bounds = array<i64: 128, 64>}, {pipeline_mode = #tpu.pipeline_mode<synchronous>, transform_indices = @transform_7, window_bounds = array<i64: 64, 9>}, {pipeline_mode = #tpu.pipeline_mode<synchronous>, transform_indices = @transform_8, window_bounds = array<i64: 3, 64>}, {pipeline_mode = #tpu.pipeline_mode<synchronous>, transform_indices = @transform_9, window_bounds = array<i64: 64, 128>}, {pipeline_mode = #tpu.pipeline_mode<synchronous>, transform_indices = @transform_10, window_bounds = array<i64: 128, 256>}, {pipeline_mode = #tpu.pipeline_mode<synchronous>, transform_indices = @transform_11, window_bounds = array<i64: 256, 128>}, {pipeline_mode = #tpu.pipeline_mode<synchronous>, transform_indices = @transform_12, window_bounds = array<i64: 64, 128>}, {pipeline_mode = #tpu.pipeline_mode<synchronous>, transform_indices = @transform_13, window_bounds = array<i64: 128, 64>}, {pipeline_mode = #tpu.pipeline_mode<synchronous>, transform_indices = @transform_14, window_bounds = array<i64: 64, 64>}, {pipeline_mode = #tpu.pipeline_mode<synchronous>, transform_indices = @transform_15, window_bounds = array<i64: 64, 16>}, {pipeline_mode = #tpu.pipeline_mode<synchronous>, transform_indices = @transform_16, window_bounds = array<i64: 16, 2>}, {transform_indices = @transform_17, window_bounds = array<i64: 1, 2, 128>}]} {
    %c0 = arith.constant 0 : index
    %c0_0 = arith.constant 0 : index
    %c0_1 = arith.constant 0 : index
    %c0_2 = arith.constant 0 : index
    %0 = vector.load %arg1[%c0, %c0_0, %c0_1, %c0_2] : memref<2x2x64x3xf32, #tpu.memory_space<vmem>>, vector<2x2x64x3xf32>
    %1 = vector.shape_cast %0 : vector<2x2x64x3xf32> to vector<4x64x3xf32>
    %2 = vector.shape_cast %1 : vector<4x64x3xf32> to vector<256x3xf32>
    %3 = vector.extract_strided_slice %2 {offsets = [0, 0], sizes = [256, 1], strides = [1, 1]} : vector<256x3xf32> to vector<256x1xf32>
    %c0_3 = arith.constant 0 : index
    %c0_4 = arith.constant 0 : index
    %4 = vector.load %arg3[%c0_3, %c0_4] : memref<3x64xf32, #tpu.memory_space<vmem>>, vector<1x64xf32>
    %5 = vector.broadcast %3 : vector<256x1xf32> to vector<256x64xf32>
    %6 = vector.broadcast %4 : vector<1x64xf32> to vector<256x64xf32>
    %7 = arith.mulf %5, %6 : vector<256x64xf32>
    %8 = vector.extract_strided_slice %2 {offsets = [0, 1], sizes = [256, 1], strides = [1, 1]} : vector<256x3xf32> to vector<256x1xf32>
    %c1 = arith.constant 1 : index
    %c0_5 = arith.constant 0 : index
    %9 = vector.load %arg3[%c1, %c0_5] : memref<3x64xf32, #tpu.memory_space<vmem>>, vector<1x64xf32>
    %10 = vector.broadcast %8 : vector<256x1xf32> to vector<256x64xf32>
    %11 = vector.broadcast %9 : vector<1x64xf32> to vector<256x64xf32>
    %12 = arith.mulf %10, %11 : vector<256x64xf32>
    %13 = arith.addf %7, %12 : vector<256x64xf32>
    %14 = vector.extract_strided_slice %2 {offsets = [0, 2], sizes = [256, 1], strides = [1, 1]} : vector<256x3xf32> to vector<256x1xf32>
    %c2 = arith.constant 2 : index
    %c0_6 = arith.constant 0 : index
    %15 = vector.load %arg3[%c2, %c0_6] : memref<3x64xf32, #tpu.memory_space<vmem>>, vector<1x64xf32>
    %16 = vector.broadcast %14 : vector<256x1xf32> to vector<256x64xf32>
    %17 = vector.broadcast %15 : vector<1x64xf32> to vector<256x64xf32>
    %18 = arith.mulf %16, %17 : vector<256x64xf32>
    %19 = arith.addf %13, %18 : vector<256x64xf32>
    %c0_7 = arith.constant 0 : index
    %c0_8 = arith.constant 0 : index
    %20 = vector.load %arg2[%c0_7, %c0_8] : memref<1x2048xf32, #tpu.memory_space<vmem>>, vector<1x64xf32>
    %21 = vector.broadcast %20 : vector<1x64xf32> to vector<256x64xf32>
    %22 = arith.addf %19, %21 : vector<256x64xf32>
    %cst = arith.constant 0.000000e+00 : f32
    %23 = vector.broadcast %cst : f32 to vector<256x64xf32>
    %24 = arith.maximumf %22, %23 : vector<256x64xf32>
    %c0_9 = arith.constant 0 : index
    %c0_10 = arith.constant 0 : index
    %25 = vector.load %arg4[%c0_9, %c0_10] : memref<64x128xf32, #tpu.memory_space<vmem>>, vector<64x128xf32>
    %cst_11 = arith.constant dense<0.000000e+00> : vector<256x128xf32>
    %26 = tpu.matmul %24, %25, %cst_11 {dimension_numbers = #tpu.dot_dimension_numbers<[1], [0], [0], [1], [0, 0, 1, 1], [], []>} : vector<256x64xf32>, vector<64x128xf32>, vector<256x128xf32> -> vector<256x128xf32>
    %c0_12 = arith.constant 0 : index
    %c128 = arith.constant 128 : index
    %27 = vector.load %arg2[%c0_12, %c128] : memref<1x2048xf32, #tpu.memory_space<vmem>>, vector<1x128xf32>
    %28 = vector.broadcast %27 : vector<1x128xf32> to vector<256x128xf32>
    %29 = arith.addf %26, %28 : vector<256x128xf32>
    %cst_13 = arith.constant 0.000000e+00 : f32
    %30 = vector.broadcast %cst_13 : f32 to vector<256x128xf32>
    %31 = arith.maximumf %29, %30 : vector<256x128xf32>
    %c0_14 = arith.constant 0 : index
    %c0_15 = arith.constant 0 : index
    %32 = vector.load %arg5[%c0_14, %c0_15] : memref<128x256xf32, #tpu.memory_space<vmem>>, vector<128x256xf32>
    %cst_16 = arith.constant dense<0.000000e+00> : vector<256x256xf32>
    %33 = tpu.matmul %31, %32, %cst_16 {dimension_numbers = #tpu.dot_dimension_numbers<[1], [0], [0], [1], [0, 0, 1, 1], [], []>} : vector<256x128xf32>, vector<128x256xf32>, vector<256x256xf32> -> vector<256x256xf32>
    %c0_17 = arith.constant 0 : index
    %c256 = arith.constant 256 : index
    %34 = vector.load %arg2[%c0_17, %c256] : memref<1x2048xf32, #tpu.memory_space<vmem>>, vector<1x256xf32>
    %35 = vector.broadcast %34 : vector<1x256xf32> to vector<256x256xf32>
    %36 = arith.addf %33, %35 : vector<256x256xf32>
    %cst_18 = arith.constant 0.000000e+00 : f32
    %37 = vector.broadcast %cst_18 : f32 to vector<256x256xf32>
    %38 = arith.maximumf %36, %37 : vector<256x256xf32>
    %39 = vector.shape_cast %38 : vector<256x256xf32> to vector<4x64x256xf32>
    %cst_19 = arith.constant dense<0xFF800000> : vector<4x256xf32>
    %40 = vector.multi_reduction <maximumf>, %39, %cst_19 [1] : vector<4x64x256xf32> to vector<4x256xf32>
    %c0_20 = arith.constant 0 : index
    %c0_21 = arith.constant 0 : index
    %41 = vector.load %arg6[%c0_20, %c0_21] : memref<256x128xf32, #tpu.memory_space<vmem>>, vector<256x128xf32>
    %cst_22 = arith.constant dense<0.000000e+00> : vector<4x128xf32>
    %42 = tpu.matmul %40, %41, %cst_22 {dimension_numbers = #tpu.dot_dimension_numbers<[1], [0], [0], [1], [0, 0, 1, 1], [], []>} : vector<4x256xf32>, vector<256x128xf32>, vector<4x128xf32> -> vector<4x128xf32>
    %c0_23 = arith.constant 0 : index
    %c512 = arith.constant 512 : index
    %43 = vector.load %arg2[%c0_23, %c512] : memref<1x2048xf32, #tpu.memory_space<vmem>>, vector<1x128xf32>
    %44 = vector.broadcast %43 : vector<1x128xf32> to vector<4x128xf32>
    %45 = arith.addf %42, %44 : vector<4x128xf32>
    %cst_24 = arith.constant 0.000000e+00 : f32
    %46 = vector.broadcast %cst_24 : f32 to vector<4x128xf32>
    %47 = arith.maximumf %45, %46 : vector<4x128xf32>
    %c0_25 = arith.constant 0 : index
    %c0_26 = arith.constant 0 : index
    %48 = vector.load %arg7[%c0_25, %c0_26] : memref<128x64xf32, #tpu.memory_space<vmem>>, vector<128x64xf32>
    %cst_27 = arith.constant dense<0.000000e+00> : vector<4x64xf32>
    %49 = tpu.matmul %47, %48, %cst_27 {dimension_numbers = #tpu.dot_dimension_numbers<[1], [0], [0], [1], [0, 0, 1, 1], [], []>} : vector<4x128xf32>, vector<128x64xf32>, vector<4x64xf32> -> vector<4x64xf32>
    %c0_28 = arith.constant 0 : index
    %c640 = arith.constant 640 : index
    %50 = vector.load %arg2[%c0_28, %c640] : memref<1x2048xf32, #tpu.memory_space<vmem>>, vector<1x64xf32>
    %51 = vector.broadcast %50 : vector<1x64xf32> to vector<4x64xf32>
    %52 = arith.addf %49, %51 : vector<4x64xf32>
    %cst_29 = arith.constant 0.000000e+00 : f32
    %53 = vector.broadcast %cst_29 : f32 to vector<4x64xf32>
    %54 = arith.maximumf %52, %53 : vector<4x64xf32>
    %c0_30 = arith.constant 0 : index
    %c0_31 = arith.constant 0 : index
    %55 = vector.load %arg8[%c0_30, %c0_31] : memref<64x9xf32, #tpu.memory_space<vmem>>, vector<64x9xf32>
    %cst_32 = arith.constant dense<0.000000e+00> : vector<4x9xf32>
    %56 = tpu.matmul %54, %55, %cst_32 {dimension_numbers = #tpu.dot_dimension_numbers<[1], [0], [0], [1], [0, 0, 1, 1], [], []>} : vector<4x64xf32>, vector<64x9xf32>, vector<4x9xf32> -> vector<4x9xf32>
    %c0_33 = arith.constant 0 : index
    %c768 = arith.constant 768 : index
    %57 = vector.load %arg2[%c0_33, %c768] : memref<1x2048xf32, #tpu.memory_space<vmem>>, vector<1x9xf32>
    %58 = vector.broadcast %57 : vector<1x9xf32> to vector<4x9xf32>
    %59 = arith.addf %56, %58 : vector<4x9xf32>
    %60 = vector.extract_strided_slice %59 {offsets = [0, 0], sizes = [4, 1], strides = [1, 1]} : vector<4x9xf32> to vector<4x1xf32>
    %c0_34 = arith.constant 0 : index
    %c0_35 = arith.constant 0 : index
    %61 = vector.load %arg9[%c0_34, %c0_35] : memref<3x64xf32, #tpu.memory_space<vmem>>, vector<1x64xf32>
    %62 = vector.broadcast %60 : vector<4x1xf32> to vector<4x64xf32>
    %63 = vector.broadcast %61 : vector<1x64xf32> to vector<4x64xf32>
    %64 = arith.mulf %62, %63 : vector<4x64xf32>
    %65 = vector.extract_strided_slice %59 {offsets = [0, 1], sizes = [4, 1], strides = [1, 1]} : vector<4x9xf32> to vector<4x1xf32>
    %c1_36 = arith.constant 1 : index
    %c0_37 = arith.constant 0 : index
    %66 = vector.load %arg9[%c1_36, %c0_37] : memref<3x64xf32, #tpu.memory_space<vmem>>, vector<1x64xf32>
    %67 = vector.broadcast %65 : vector<4x1xf32> to vector<4x64xf32>
    %68 = vector.broadcast %66 : vector<1x64xf32> to vector<4x64xf32>
    %69 = arith.mulf %67, %68 : vector<4x64xf32>
    %70 = arith.addf %64, %69 : vector<4x64xf32>
    %71 = vector.extract_strided_slice %59 {offsets = [0, 2], sizes = [4, 1], strides = [1, 1]} : vector<4x9xf32> to vector<4x1xf32>
    %c2_38 = arith.constant 2 : index
    %c0_39 = arith.constant 0 : index
    %72 = vector.load %arg9[%c2_38, %c0_39] : memref<3x64xf32, #tpu.memory_space<vmem>>, vector<1x64xf32>
    %73 = vector.broadcast %71 : vector<4x1xf32> to vector<4x64xf32>
    %74 = vector.broadcast %72 : vector<1x64xf32> to vector<4x64xf32>
    %75 = arith.mulf %73, %74 : vector<4x64xf32>
    %76 = arith.addf %70, %75 : vector<4x64xf32>
    %77 = vector.extract_strided_slice %59 {offsets = [0, 3], sizes = [4, 1], strides = [1, 1]} : vector<4x9xf32> to vector<4x1xf32>
    %c0_40 = arith.constant 0 : index
    %c0_41 = arith.constant 0 : index
    %78 = vector.load %arg9[%c0_40, %c0_41] : memref<3x64xf32, #tpu.memory_space<vmem>>, vector<1x64xf32>
    %79 = vector.broadcast %77 : vector<4x1xf32> to vector<4x64xf32>
    %80 = vector.broadcast %78 : vector<1x64xf32> to vector<4x64xf32>
    %81 = arith.mulf %79, %80 : vector<4x64xf32>
    %82 = vector.extract_strided_slice %59 {offsets = [0, 4], sizes = [4, 1], strides = [1, 1]} : vector<4x9xf32> to vector<4x1xf32>
    %c1_42 = arith.constant 1 : index
    %c0_43 = arith.constant 0 : index
    %83 = vector.load %arg9[%c1_42, %c0_43] : memref<3x64xf32, #tpu.memory_space<vmem>>, vector<1x64xf32>
    %84 = vector.broadcast %82 : vector<4x1xf32> to vector<4x64xf32>
    %85 = vector.broadcast %83 : vector<1x64xf32> to vector<4x64xf32>
    %86 = arith.mulf %84, %85 : vector<4x64xf32>
    %87 = arith.addf %81, %86 : vector<4x64xf32>
    %88 = vector.extract_strided_slice %59 {offsets = [0, 5], sizes = [4, 1], strides = [1, 1]} : vector<4x9xf32> to vector<4x1xf32>
    %c2_44 = arith.constant 2 : index
    %c0_45 = arith.constant 0 : index
    %89 = vector.load %arg9[%c2_44, %c0_45] : memref<3x64xf32, #tpu.memory_space<vmem>>, vector<1x64xf32>
    %90 = vector.broadcast %88 : vector<4x1xf32> to vector<4x64xf32>
    %91 = vector.broadcast %89 : vector<1x64xf32> to vector<4x64xf32>
    %92 = arith.mulf %90, %91 : vector<4x64xf32>
    %93 = arith.addf %87, %92 : vector<4x64xf32>
    %94 = vector.extract_strided_slice %59 {offsets = [0, 6], sizes = [4, 1], strides = [1, 1]} : vector<4x9xf32> to vector<4x1xf32>
    %c0_46 = arith.constant 0 : index
    %c0_47 = arith.constant 0 : index
    %95 = vector.load %arg9[%c0_46, %c0_47] : memref<3x64xf32, #tpu.memory_space<vmem>>, vector<1x64xf32>
    %96 = vector.broadcast %94 : vector<4x1xf32> to vector<4x64xf32>
    %97 = vector.broadcast %95 : vector<1x64xf32> to vector<4x64xf32>
    %98 = arith.mulf %96, %97 : vector<4x64xf32>
    %99 = vector.extract_strided_slice %59 {offsets = [0, 7], sizes = [4, 1], strides = [1, 1]} : vector<4x9xf32> to vector<4x1xf32>
    %c1_48 = arith.constant 1 : index
    %c0_49 = arith.constant 0 : index
    %100 = vector.load %arg9[%c1_48, %c0_49] : memref<3x64xf32, #tpu.memory_space<vmem>>, vector<1x64xf32>
    %101 = vector.broadcast %99 : vector<4x1xf32> to vector<4x64xf32>
    %102 = vector.broadcast %100 : vector<1x64xf32> to vector<4x64xf32>
    %103 = arith.mulf %101, %102 : vector<4x64xf32>
    %104 = arith.addf %98, %103 : vector<4x64xf32>
    %105 = vector.extract_strided_slice %59 {offsets = [0, 8], sizes = [4, 1], strides = [1, 1]} : vector<4x9xf32> to vector<4x1xf32>
    %c2_50 = arith.constant 2 : index
    %c0_51 = arith.constant 0 : index
    %106 = vector.load %arg9[%c2_50, %c0_51] : memref<3x64xf32, #tpu.memory_space<vmem>>, vector<1x64xf32>
    %107 = vector.broadcast %105 : vector<4x1xf32> to vector<4x64xf32>
    %108 = vector.broadcast %106 : vector<1x64xf32> to vector<4x64xf32>
    %109 = arith.mulf %107, %108 : vector<4x64xf32>
    %110 = arith.addf %104, %109 : vector<4x64xf32>
    %111 = vector.extract_strided_slice %1 {offsets = [0, 0, 0], sizes = [4, 64, 1], strides = [1, 1, 1]} : vector<4x64x3xf32> to vector<4x64x1xf32>
    %112 = vector.shape_cast %76 : vector<4x64xf32> to vector<4x1x64xf32>
    %113 = vector.broadcast %111 : vector<4x64x1xf32> to vector<4x64x64xf32>
    %114 = vector.broadcast %112 : vector<4x1x64xf32> to vector<4x64x64xf32>
    %115 = arith.mulf %113, %114 : vector<4x64x64xf32>
    %116 = vector.extract_strided_slice %1 {offsets = [0, 0, 1], sizes = [4, 64, 1], strides = [1, 1, 1]} : vector<4x64x3xf32> to vector<4x64x1xf32>
    %117 = vector.shape_cast %93 : vector<4x64xf32> to vector<4x1x64xf32>
    %118 = vector.broadcast %116 : vector<4x64x1xf32> to vector<4x64x64xf32>
    %119 = vector.broadcast %117 : vector<4x1x64xf32> to vector<4x64x64xf32>
    %120 = arith.mulf %118, %119 : vector<4x64x64xf32>
    %121 = arith.addf %115, %120 : vector<4x64x64xf32>
    %122 = vector.extract_strided_slice %1 {offsets = [0, 0, 2], sizes = [4, 64, 1], strides = [1, 1, 1]} : vector<4x64x3xf32> to vector<4x64x1xf32>
    %123 = vector.shape_cast %110 : vector<4x64xf32> to vector<4x1x64xf32>
    %124 = vector.broadcast %122 : vector<4x64x1xf32> to vector<4x64x64xf32>
    %125 = vector.broadcast %123 : vector<4x1x64xf32> to vector<4x64x64xf32>
    %126 = arith.mulf %124, %125 : vector<4x64x64xf32>
    %127 = arith.addf %121, %126 : vector<4x64x64xf32>
    %c0_52 = arith.constant 0 : index
    %c896 = arith.constant 896 : index
    %128 = vector.load %arg2[%c0_52, %c896] : memref<1x2048xf32, #tpu.memory_space<vmem>>, vector<1x64xf32>
    %129 = vector.shape_cast %128 : vector<1x64xf32> to vector<1x1x64xf32>
    %130 = vector.broadcast %129 : vector<1x1x64xf32> to vector<4x64x64xf32>
    %131 = arith.addf %127, %130 : vector<4x64x64xf32>
    %cst_53 = arith.constant 0.000000e+00 : f32
    %132 = vector.broadcast %cst_53 : f32 to vector<4x64x64xf32>
    %133 = arith.maximumf %131, %132 : vector<4x64x64xf32>
    %134 = vector.shape_cast %133 : vector<4x64x64xf32> to vector<256x64xf32>
    %c0_54 = arith.constant 0 : index
    %c0_55 = arith.constant 0 : index
    %135 = vector.load %arg10[%c0_54, %c0_55] : memref<64x128xf32, #tpu.memory_space<vmem>>, vector<64x128xf32>
    %cst_56 = arith.constant dense<0.000000e+00> : vector<256x128xf32>
    %136 = tpu.matmul %134, %135, %cst_56 {dimension_numbers = #tpu.dot_dimension_numbers<[1], [0], [0], [1], [0, 0, 1, 1], [], []>} : vector<256x64xf32>, vector<64x128xf32>, vector<256x128xf32> -> vector<256x128xf32>
    %c0_57 = arith.constant 0 : index
    %c1024 = arith.constant 1024 : index
    %137 = vector.load %arg2[%c0_57, %c1024] : memref<1x2048xf32, #tpu.memory_space<vmem>>, vector<1x128xf32>
    %138 = vector.broadcast %137 : vector<1x128xf32> to vector<256x128xf32>
    %139 = arith.addf %136, %138 : vector<256x128xf32>
    %cst_58 = arith.constant 0.000000e+00 : f32
    %140 = vector.broadcast %cst_58 : f32 to vector<256x128xf32>
    %141 = arith.maximumf %139, %140 : vector<256x128xf32>
    %c0_59 = arith.constant 0 : index
    %c0_60 = arith.constant 0 : index
    %142 = vector.load %arg11[%c0_59, %c0_60] : memref<128x256xf32, #tpu.memory_space<vmem>>, vector<128x256xf32>
    %cst_61 = arith.constant dense<0.000000e+00> : vector<256x256xf32>
    %143 = tpu.matmul %141, %142, %cst_61 {dimension_numbers = #tpu.dot_dimension_numbers<[1], [0], [0], [1], [0, 0, 1, 1], [], []>} : vector<256x128xf32>, vector<128x256xf32>, vector<256x256xf32> -> vector<256x256xf32>
    %c0_62 = arith.constant 0 : index
    %c1152 = arith.constant 1152 : index
    %144 = vector.load %arg2[%c0_62, %c1152] : memref<1x2048xf32, #tpu.memory_space<vmem>>, vector<1x256xf32>
    %145 = vector.broadcast %144 : vector<1x256xf32> to vector<256x256xf32>
    %146 = arith.addf %143, %145 : vector<256x256xf32>
    %147 = vector.shape_cast %146 : vector<256x256xf32> to vector<4x64x256xf32>
    %cst_63 = arith.constant dense<0xFF800000> : vector<4x256xf32>
    %148 = vector.multi_reduction <maximumf>, %147, %cst_63 [1] : vector<4x64x256xf32> to vector<4x256xf32>
    %c0_64 = arith.constant 0 : index
    %c0_65 = arith.constant 0 : index
    %149 = vector.load %arg12[%c0_64, %c0_65] : memref<256x128xf32, #tpu.memory_space<vmem>>, vector<256x128xf32>
    %cst_66 = arith.constant dense<0.000000e+00> : vector<4x128xf32>
    %150 = tpu.matmul %148, %149, %cst_66 {dimension_numbers = #tpu.dot_dimension_numbers<[1], [0], [0], [1], [0, 0, 1, 1], [], []>} : vector<4x256xf32>, vector<256x128xf32>, vector<4x128xf32> -> vector<4x128xf32>
    %c0_67 = arith.constant 0 : index
    %c1408 = arith.constant 1408 : index
    %151 = vector.load %arg2[%c0_67, %c1408] : memref<1x2048xf32, #tpu.memory_space<vmem>>, vector<1x128xf32>
    %152 = vector.broadcast %151 : vector<1x128xf32> to vector<4x128xf32>
    %153 = arith.addf %150, %152 : vector<4x128xf32>
    %c0_68 = arith.constant 0 : index
    %c0_69 = arith.constant 0 : index
    %154 = vector.load %arg13[%c0_68, %c0_69] : memref<64x128xf32, #tpu.memory_space<vmem>>, vector<64x128xf32>
    %cst_70 = arith.constant dense<0.000000e+00> : vector<256x128xf32>
    %155 = tpu.matmul %134, %154, %cst_70 {dimension_numbers = #tpu.dot_dimension_numbers<[1], [0], [0], [1], [0, 0, 1, 1], [], []>} : vector<256x64xf32>, vector<64x128xf32>, vector<256x128xf32> -> vector<256x128xf32>
    %156 = vector.shape_cast %155 : vector<256x128xf32> to vector<4x64x128xf32>
    %157 = vector.shape_cast %153 : vector<4x128xf32> to vector<4x1x128xf32>
    %158 = vector.broadcast %157 : vector<4x1x128xf32> to vector<4x64x128xf32>
    %159 = arith.addf %156, %158 : vector<4x64x128xf32>
    %cst_71 = arith.constant 0.000000e+00 : f32
    %160 = vector.broadcast %cst_71 : f32 to vector<4x64x128xf32>
    %161 = arith.maximumf %159, %160 : vector<4x64x128xf32>
    %162 = vector.shape_cast %161 : vector<4x64x128xf32> to vector<256x128xf32>
    %c0_72 = arith.constant 0 : index
    %c0_73 = arith.constant 0 : index
    %163 = vector.load %arg14[%c0_72, %c0_73] : memref<128x64xf32, #tpu.memory_space<vmem>>, vector<128x64xf32>
    %cst_74 = arith.constant dense<0.000000e+00> : vector<256x64xf32>
    %164 = tpu.matmul %162, %163, %cst_74 {dimension_numbers = #tpu.dot_dimension_numbers<[1], [0], [0], [1], [0, 0, 1, 1], [], []>} : vector<256x128xf32>, vector<128x64xf32>, vector<256x64xf32> -> vector<256x64xf32>
    %c0_75 = arith.constant 0 : index
    %c1536 = arith.constant 1536 : index
    %165 = vector.load %arg2[%c0_75, %c1536] : memref<1x2048xf32, #tpu.memory_space<vmem>>, vector<1x64xf32>
    %166 = vector.broadcast %165 : vector<1x64xf32> to vector<256x64xf32>
    %167 = arith.addf %164, %166 : vector<256x64xf32>
    %cst_76 = arith.constant 0.000000e+00 : f32
    %168 = vector.broadcast %cst_76 : f32 to vector<256x64xf32>
    %169 = arith.maximumf %167, %168 : vector<256x64xf32>
    %170 = vector.shape_cast %169 : vector<256x64xf32> to vector<4x64x64xf32>
    %cst_77 = arith.constant dense<0xFF800000> : vector<4x64xf32>
    %171 = vector.multi_reduction <maximumf>, %170, %cst_77 [1] : vector<4x64x64xf32> to vector<4x64xf32>
    %c0_78 = arith.constant 0 : index
    %c0_79 = arith.constant 0 : index
    %172 = vector.load %arg15[%c0_78, %c0_79] : memref<64x64xf32, #tpu.memory_space<vmem>>, vector<64x64xf32>
    %cst_80 = arith.constant dense<0.000000e+00> : vector<4x64xf32>
    %173 = tpu.matmul %171, %172, %cst_80 {dimension_numbers = #tpu.dot_dimension_numbers<[1], [0], [0], [1], [0, 0, 1, 1], [], []>} : vector<4x64xf32>, vector<64x64xf32>, vector<4x64xf32> -> vector<4x64xf32>
    %c0_81 = arith.constant 0 : index
    %c1664 = arith.constant 1664 : index
    %174 = vector.load %arg2[%c0_81, %c1664] : memref<1x2048xf32, #tpu.memory_space<vmem>>, vector<1x64xf32>
    %175 = vector.broadcast %174 : vector<1x64xf32> to vector<4x64xf32>
    %176 = arith.addf %173, %175 : vector<4x64xf32>
    %cst_82 = arith.constant 0.000000e+00 : f32
    %177 = vector.broadcast %cst_82 : f32 to vector<4x64xf32>
    %178 = arith.maximumf %176, %177 : vector<4x64xf32>
    %c0_83 = arith.constant 0 : index
    %c0_84 = arith.constant 0 : index
    %179 = vector.load %arg16[%c0_83, %c0_84] : memref<64x16xf32, #tpu.memory_space<vmem>>, vector<64x16xf32>
    %cst_85 = arith.constant dense<0.000000e+00> : vector<4x16xf32>
    %180 = tpu.matmul %178, %179, %cst_85 {dimension_numbers = #tpu.dot_dimension_numbers<[1], [0], [0], [1], [0, 0, 1, 1], [], []>} : vector<4x64xf32>, vector<64x16xf32>, vector<4x16xf32> -> vector<4x16xf32>
    %c0_86 = arith.constant 0 : index
    %c1792 = arith.constant 1792 : index
    %181 = vector.load %arg2[%c0_86, %c1792] : memref<1x2048xf32, #tpu.memory_space<vmem>>, vector<1x16xf32>
    %182 = vector.broadcast %181 : vector<1x16xf32> to vector<4x16xf32>
    %183 = arith.addf %180, %182 : vector<4x16xf32>
    %184 = vector.extract_strided_slice %183 {offsets = [0, 0], sizes = [2, 16], strides = [1, 1]} : vector<4x16xf32> to vector<2x16xf32>
    %185 = vector.extract_strided_slice %183 {offsets = [2, 0], sizes = [2, 16], strides = [1, 1]} : vector<4x16xf32> to vector<2x16xf32>
    %186 = arith.subf %184, %185 : vector<2x16xf32>
    %187 = math.absf %186 : vector<2x16xf32>
    %c0_87 = arith.constant 0 : index
    %c0_88 = arith.constant 0 : index
    %188 = vector.load %arg17[%c0_87, %c0_88] : memref<16x2xf32, #tpu.memory_space<vmem>>, vector<16x2xf32>
    %cst_89 = arith.constant dense<0.000000e+00> : vector<2x2xf32>
    %189 = tpu.matmul %187, %188, %cst_89 {dimension_numbers = #tpu.dot_dimension_numbers<[1], [0], [0], [1], [0, 0, 1, 1], [], []>} : vector<2x16xf32>, vector<16x2xf32>, vector<2x2xf32> -> vector<2x2xf32>
    %c0_90 = arith.constant 0 : index
    %c1920 = arith.constant 1920 : index
    %190 = vector.load %arg2[%c0_90, %c1920] : memref<1x2048xf32, #tpu.memory_space<vmem>>, vector<1x2xf32>
    %191 = vector.broadcast %190 : vector<1x2xf32> to vector<2x2xf32>
    %192 = arith.addf %189, %191 : vector<2x2xf32>
    %cst_91 = arith.constant 0.000000e+00 : f32
    %193 = vector.broadcast %cst_91 : f32 to vector<2x108xf32>
    %194 = vector.extract_strided_slice %59 {offsets = [0, 0], sizes = [2, 9], strides = [1, 1]} : vector<4x9xf32> to vector<2x9xf32>
    %195 = vector.extract_strided_slice %59 {offsets = [2, 0], sizes = [2, 9], strides = [1, 1]} : vector<4x9xf32> to vector<2x9xf32>
    %196 = tpu.concatenate %192, %194, %195, %193 in 1 : vector<2x2xf32>, vector<2x9xf32>, vector<2x9xf32>, vector<2x108xf32> -> vector<2x128xf32>
    %c0_92 = arith.constant 0 : index
    %c0_93 = arith.constant 0 : index
    %c0_94 = arith.constant 0 : index
    %197 = vector.load %arg18[%c0_92, %c0_93, %c0_94] : memref<1x2x128xf32, #tpu.memory_space<vmem>>, vector<1x2x128xf32>
    %198 = vector.shape_cast %197 : vector<1x2x128xf32> to vector<2x128xf32>
    %199 = vector.shape_cast %196 : vector<2x128xf32> to vector<1x2x128xf32>
    tpu.vector_store %arg18[%c0_92, %c0_93, %c0_94], %199 {strides = array<i32>} : memref<1x2x128xf32, #tpu.memory_space<vmem>>, vector<1x2x128xf32>,
    return
  }
  func.func @transform_0(%arg0: i32) -> (i32, i32, i32, i32) {
    %c0_i32 = arith.constant 0 : i32
    %c0_i32_0 = arith.constant 0 : i32
    %c0_i32_1 = arith.constant 0 : i32
    %c0_i32_2 = arith.constant 0 : i32
    return %c0_i32, %arg0, %c0_i32_0, %c0_i32_1 : i32, i32, i32, i32
  }
  func.func @transform_1(%arg0: i32) -> (i32, i32) {
    %c0_i32 = arith.constant 0 : i32
    %c0_i32_0 = arith.constant 0 : i32
    %c0_i32_1 = arith.constant 0 : i32
    return %c0_i32, %c0_i32_0 : i32, i32
  }
  func.func @transform_2(%arg0: i32) -> (i32, i32) {
    %c0_i32 = arith.constant 0 : i32
    %c0_i32_0 = arith.constant 0 : i32
    %c0_i32_1 = arith.constant 0 : i32
    return %c0_i32, %c0_i32_0 : i32, i32
  }
  func.func @transform_3(%arg0: i32) -> (i32, i32) {
    %c0_i32 = arith.constant 0 : i32
    %c0_i32_0 = arith.constant 0 : i32
    %c0_i32_1 = arith.constant 0 : i32
    return %c0_i32, %c0_i32_0 : i32, i32
  }
  func.func @transform_4(%arg0: i32) -> (i32, i32) {
    %c0_i32 = arith.constant 0 : i32
    %c0_i32_0 = arith.constant 0 : i32
    %c0_i32_1 = arith.constant 0 : i32
    return %c0_i32, %c0_i32_0 : i32, i32
  }
  func.func @transform_5(%arg0: i32) -> (i32, i32) {
    %c0_i32 = arith.constant 0 : i32
    %c0_i32_0 = arith.constant 0 : i32
    %c0_i32_1 = arith.constant 0 : i32
    return %c0_i32, %c0_i32_0 : i32, i32
  }
  func.func @transform_6(%arg0: i32) -> (i32, i32) {
    %c0_i32 = arith.constant 0 : i32
    %c0_i32_0 = arith.constant 0 : i32
    %c0_i32_1 = arith.constant 0 : i32
    return %c0_i32, %c0_i32_0 : i32, i32
  }
  func.func @transform_7(%arg0: i32) -> (i32, i32) {
    %c0_i32 = arith.constant 0 : i32
    %c0_i32_0 = arith.constant 0 : i32
    %c0_i32_1 = arith.constant 0 : i32
    return %c0_i32, %c0_i32_0 : i32, i32
  }
  func.func @transform_8(%arg0: i32) -> (i32, i32) {
    %c0_i32 = arith.constant 0 : i32
    %c0_i32_0 = arith.constant 0 : i32
    %c0_i32_1 = arith.constant 0 : i32
    return %c0_i32, %c0_i32_0 : i32, i32
  }
  func.func @transform_9(%arg0: i32) -> (i32, i32) {
    %c0_i32 = arith.constant 0 : i32
    %c0_i32_0 = arith.constant 0 : i32
    %c0_i32_1 = arith.constant 0 : i32
    return %c0_i32, %c0_i32_0 : i32, i32
  }
  func.func @transform_10(%arg0: i32) -> (i32, i32) {
    %c0_i32 = arith.constant 0 : i32
    %c0_i32_0 = arith.constant 0 : i32
    %c0_i32_1 = arith.constant 0 : i32
    return %c0_i32, %c0_i32_0 : i32, i32
  }
  func.func @transform_11(%arg0: i32) -> (i32, i32) {
    %c0_i32 = arith.constant 0 : i32
    %c0_i32_0 = arith.constant 0 : i32
    %c0_i32_1 = arith.constant 0 : i32
    return %c0_i32, %c0_i32_0 : i32, i32
  }
  func.func @transform_12(%arg0: i32) -> (i32, i32) {
    %c0_i32 = arith.constant 0 : i32
    %c0_i32_0 = arith.constant 0 : i32
    %c0_i32_1 = arith.constant 0 : i32
    return %c0_i32, %c0_i32_0 : i32, i32
  }
  func.func @transform_13(%arg0: i32) -> (i32, i32) {
    %c0_i32 = arith.constant 0 : i32
    %c0_i32_0 = arith.constant 0 : i32
    %c0_i32_1 = arith.constant 0 : i32
    return %c0_i32, %c0_i32_0 : i32, i32
  }
  func.func @transform_14(%arg0: i32) -> (i32, i32) {
    %c0_i32 = arith.constant 0 : i32
    %c0_i32_0 = arith.constant 0 : i32
    %c0_i32_1 = arith.constant 0 : i32
    return %c0_i32, %c0_i32_0 : i32, i32
  }
  func.func @transform_15(%arg0: i32) -> (i32, i32) {
    %c0_i32 = arith.constant 0 : i32
    %c0_i32_0 = arith.constant 0 : i32
    %c0_i32_1 = arith.constant 0 : i32
    return %c0_i32, %c0_i32_0 : i32, i32
  }
  func.func @transform_16(%arg0: i32) -> (i32, i32) {
    %c0_i32 = arith.constant 0 : i32
    %c0_i32_0 = arith.constant 0 : i32
    %c0_i32_1 = arith.constant 0 : i32
    return %c0_i32, %c0_i32_0 : i32, i32
  }
  func.func @transform_17(%arg0: i32) -> (i32, i32, i32) {
    %c0_i32 = arith.constant 0 : i32
    %c0_i32_0 = arith.constant 0 : i32
    %c0_i32_1 = arith.constant 0 : i32
    return %arg0, %c0_i32, %c0_i32_0 : i32, i32, i32
  }
}

</mosaic_0001>

<bundles_post_ra>
// kernel: tpu_custom_call.1
= control target key start
LH: loop header
LB: loop body
LE: loop exit
PB: predicated region body
PF: predicated region fallthrough
CT: control target
= control target key end

     0   :  { %s8982_s0 = inlined_call_operand.vmem [shape: f32[2,4,64,3], index: 0, kind: input, shape index: {}]   ;;  %s8983_s1 = inlined_call_operand.hbm [shape: f32[1,2048], index: 1, kind: input, shape index: {}]   ;;  %s8984_s2 = inlined_call_operand.hbm [shape: f32[3,64], index: 2, kind: input, shape index: {}]   ;;  %s8985_s3 = inlined_call_operand.hbm [shape: f32[64,128], index: 3, kind: input, shape index: {}]   ;;  %s8986_s4 = inlined_call_operand.vmem [shape: f32[128,256], index: 4, kind: input, shape index: {}]   ;;  %s8987_s5 = inlined_call_operand.vmem [shape: f32[256,128], index: 5, kind: input, shape index: {}]   ;;  %s8988_s6 = inlined_call_operand.vmem [shape: f32[128,64], index: 6, kind: input, shape index: {}]   ;;  %s8989_s7 = inlined_call_operand.vmem [shape: f32[64,9], index: 7, kind: input, shape index: {}]   ;;  %s8990_s8 = inlined_call_operand.hbm [shape: f32[3,64], index: 8, kind: input, shape index: {}]   ;;  %s8991_s9 = inlined_call_operand.hbm [shape: f32[64,128], index: 9, kind: input, shape index: {}]   ;;  %s8992_s10 = inlined_call_operand.vmem [shape: f32[128,256], index: 10, kind: input, shape index: {}]   ;;  %s8993_s11 = inlined_call_operand.vmem [shape: f32[256,128], index: 11, kind: input, shape index: {}]   ;;  %s8994_s12 = inlined_call_operand.hbm [shape: f32[64,128], index: 12, kind: input, shape index: {}]   ;;  %s8995_s13 = inlined_call_operand.vmem [shape: f32[128,64], index: 13, kind: input, shape index: {}]   ;;  %s8996_s14 = inlined_call_operand.hbm [shape: f32[64,64], index: 14, kind: input, shape index: {}]   ;;  %s8997_s15 = inlined_call_operand.vmem [shape: f32[64,16], index: 15, kind: input, shape index: {}]   ;;  %s8998_s16 = inlined_call_operand.vmem [shape: f32[16,2], index: 16, kind: input, shape index: {}]   ;;  %s8999_s17 = inlined_call_operand.hbm [shape: f32[2,2,128], index: 17, kind: output, shape index: {}]  }
   0x1   :  { %9151 = sst [smem:[#allocation116_spill]] %s8982_s0 }
   0x2   :  { %9152 = sst [smem:[#allocation117_spill]] %s8983_s1 }
   0x3   :  { %9153 = sst [smem:[#allocation118_spill]] %s8984_s2 }
   0x4   :  { %9154 = sst [smem:[#allocation119_spill]] %s8990_s8 }
   0x5   :  { %9155 = sst [smem:[#allocation120_spill]] %s8998_s16 }
   0x6   :  { %9156 = sst [smem:[#allocation121_spill]] %s8999_s17 }
   0x7   :  { %22 = vsyncpa [#allocation4], 0 }
   0x8   :  { %23 = vsyncpa [#allocation7], 0 }
   0x9   :  { %24 = vsyncpa [#allocation10], 0 }
   0xa   :  { %25 = vsyncpa [#allocation13], 0 }
   0xb   :  { %26 = vsyncpa [#allocation5], 0 }
   0xc   :  { %28 = vsyncpa [#allocation5 + $0x1], 0  ;;  %s6503_s24 = smov 0   ;;  %s6505_s25 = smov 0  }
   0xd   :  { %s6507_s26 = smov 0   ;;  %s6509_s27 = smov 0  }
   0xe LB: > { %9157 = sst [smem:[#allocation21_spill]] %s6375_s24  ;;  %s6524_s28 = sadd.s32 4294967295, %s6387_s27   ;;  %s6387_s27 = sphi %s6509_s27, %s9419_s27   ;;  %s6383_s26 = sphi %s6507_s26, %s9423_s26   ;;  %s6379_s25 = sphi %s6505_s25, %s9422_s25   ;;  %s6375_s24 = sphi %s6503_s24, %s9421_s24  }
   0xf   : > { %s5118_s29 = sadd.s32 4294967294, %s6387_s27   ;;  %s6528_s0 = sadd.s32 1, %s6387_s27  }
  0x10   : > { %9158 = sst [smem:[#allocation22_spill]] %s6528_s0  ;;  %s41_s30 = sadd.s32 1, %s6383_s26 }
  0x11   : > { %s38_s18 = ssub.s32 %s6387_s27, %s6528_s0  ;;  %p48_p0 = scmp.ne.s32.totalorder %s6383_s26, %s6379_s25 }
  0x12   : > { %p39_p1 = scmp.eq.s32.totalorder %s38_s18, 0  ;;  %p49_p2 = scmp.eq.s32.totalorder %s6387_s27, 0 }
  0x13   : > { %p414_p3 = scmp.eq.s32.totalorder %s6524_s28, 1  ;;  %p419_p4 = scmp.ne.s32.totalorder %s6379_s25, %s6375_s24 }
  0x14   : > { %s6540_s19 = scalar_select %p39_p1, %s6383_s26, %s41_s30  }
  0x15   : > { %p6542_p5 = por %p49_p2, %p48_p0  ;;  %p6546_p6 = por %p414_p3, %p48_p0 }
  0x16   : > { %9159 = sst [smem:[#allocation23_spill]] %s6540_s19  ;;  %p420_p7 = scmp.eq.s32.totalorder %s5118_s29, 1 }
  0x17   : > { %s9160_s1 = scalar_select %p6542_p5, 1, 0 }
  0x18   : > { %s9161_s20 = scalar_select %p6546_p6, 1, 0 }
  0x19   : > { %p5119_p8 = scmp.ge.s32.totalorder %s6387_s27, 1  ;;  %p427_p9 = scmp.lt.s32.totalorder %s6387_s27, 3 }
  0x1a   : > { %9162 = sst [smem:[#allocation24_spill]] %s9161_s20  ;;  %p6552_p10 = por %p420_p7, %p419_p4 }
  0x1b   : > { %p9005_p11 = scmp.eq.s32.totalorder %s6524_s28, 0  ;;  %p6557_p12 = pnand %p5119_p8, %p427_p9 }
  0x1c   : > { %s9163_s21 = scalar_select %p6552_p10, 1, 0 }
  0x1d   : > { %s9165_s22 = scalar_select %p6557_p12, 1, 0 }
  0x1e   : > { %9164 = sst [smem:[#allocation25_spill]] %s9163_s21  ;;  %s6389_s23 = smov [#allocation6]  }
  0x1f   : > { %s451_s30 = sshll.u32 %s6389_s23, 4  ;;  %p5968_p13 = pneg %p6557_p12  ;;  %s452_s30 = int_to_ptr.vmem [resolvable:$true] %s451_s30 }
  0x20   : > { %s6390_s18 = smov [#allocation9]   ;;  %s6391_s0 = smov [#allocation12]  }
  0x21   : > { %s487_s19 = sshll.u32 %s6390_s18, 4  ;;  %p6565_p0 = pnand %p9005_p11, %p5968_p13  ;;  %s488_s19 = int_to_ptr.vmem [resolvable:$true] %s487_s19 }
  0x22   : > { %s516_s21 = sshll.u32 %s6391_s0, 4  ;;  %s6140_s23 = scalar_lea.vmem %s452_s30, 64  ;;  %s517_s21 = int_to_ptr.vmem [resolvable:$true] %s516_s21 }
  0x23   : > { %p6571_p1 = pneg %p6565_p0  ;;  %p6141_p2 = scmp.ne.s32.totalorder %s452_s30, %s6140_s23 }
  0x24   : > { %p6148_p7 = scmp.lt.s32.totalorder %s452_s30, %s452_s30  ;;  %p6149_p8 = scmp.lt.s32.totalorder %s6140_s23, %s6140_s23 }
  0x25   : > { %p6143_p3 = pnand %p6141_p2, %p6571_p1 }
  0x26   : > { %p6150_p9 = por %p6149_p8, %p6148_p7 }
  0x27   : > { %p6144_p4 = pneg %p6143_p3 }
  0x29   : > { %p6151_p13 = pnand %p6150_p9, %p6144_p4 }
  0x2b   : > { %6154 = shalt.err (!%p6151_p13)
}
  0x2c   : > { %s9168_s2 = sld [smem:[#allocation118_spill]]  ;;  %s6166_s17 = scalar_lea.vmem %s488_s19, 64 }
  0x2d   : > { %p6167_p11 = scmp.ne.s32.totalorder %s488_s19, %s6166_s17  ;;  %p6174_p12 = scmp.lt.s32.totalorder %s488_s19, %s488_s19 }
  0x2e   : > { %p6175_p2 = scmp.lt.s32.totalorder %s6166_s17, %s6166_s17 }
  0x2f   : > { %p6169_p10 = pnand %p6167_p11, %p6571_p1 }
  0x30   : > { %p6176_p3 = por %p6175_p2, %p6174_p12 }
  0x31   : > { %p6170_p6 = pneg %p6169_p10 }
  0x32   : > { %5974 = dma.hbm_to_vmem [thread:$0]  (!%p6565_p0), %s9168_s2, 64, %s452_s30, [#allocation7]  }
  0x33   : > { %p6177_p5 = pnand %p6176_p3, %p6170_p6 }
  0x35   : > { %6180 = shalt.err (!%p6177_p5)
}
  0x36   : > { %s9169_s8 = sld [smem:[#allocation119_spill]]  ;;  %s6192_s18 = scalar_lea.vmem %s517_s21, 1024 }
  0x37   : > { %p6193_p4 = scmp.ne.s32.totalorder %s517_s21, %s6192_s18  ;;  %p6200_p11 = scmp.lt.s32.totalorder %s517_s21, %s517_s21 }
  0x38   : > { %p6201_p10 = scmp.lt.s32.totalorder %s6192_s18, %s6192_s18 }
  0x39   : > { %p6195_p7 = pnand %p6193_p4, %p6571_p1 }
  0x3a   : > { %p6202_p9 = por %p6201_p10, %p6200_p11 }
  0x3b   : > { %p6196_p8 = pneg %p6195_p7 }
  0x3c   : > { %5980 = dma.hbm_to_vmem [thread:$0]  (!%p6565_p0), %s9169_s8, 64, %s488_s19, [#allocation10]  }
  0x3d   : > { %p6203_p13 = pnand %p6202_p9, %p6196_p8 }
  0x3f   : > { %6206 = shalt.err (!%p6203_p13)
}
  0x40   : > { %s6392_s17 = smov 128   ;;  %s6393_s30 = smov 8  }
  0x41   : > { %5986 = dma.hbm_to_vmem [thread:$0]  (!%p6565_p0), %s8994_s12, 1024, %s517_s21, [#allocation13], %s6392_s17, %s6392_s17, %s6393_s30  }
  0x42   : > { %s6394_s0 = smov [#allocation3]   ;;  %s6395_s2 = smov [#allocation8]  }
  0x43   : > { %s440_s23 = sshll.u32 %s6394_s0, 4  ;;  %s461_s18 = sshll.u32 %s6395_s2, 4  ;;  %s441_s23 = int_to_ptr.vmem [resolvable:$true] %s440_s23  ;;  %s462_s18 = int_to_ptr.vmem [resolvable:$true] %s461_s18 }
  0x44   : > { %s6218_s8 = scalar_lea.vmem %s441_s23, 256  ;;  %p6226_p2 = scmp.lt.s32.totalorder %s441_s23, %s441_s23 }
  0x45   : > { %p6219_p5 = scmp.ne.s32.totalorder %s441_s23, %s6218_s8  ;;  %p6227_p3 = scmp.lt.s32.totalorder %s6218_s8, %s6218_s8 }
  0x47   : > { %p6221_p6 = pnand %p6219_p5, %p6571_p1  ;;  %p6228_p4 = por %p6227_p3, %p6226_p2 }
  0x49   : > { %p6222_p12 = pneg %p6221_p6 }
  0x4b   : > { %p6229_p7 = pnand %p6228_p4, %p6222_p12 }
  0x4d   : > { %6232 = shalt.err (!%p6229_p7)
}
  0x4e   : > { %s9170_s21 = sld [smem:[#allocation117_spill]]  ;;  %s6244_s20 = scalar_lea.vmem %s462_s18, 1024 }
  0x4f   : > { %p6245_p8 = scmp.ne.s32.totalorder %s462_s18, %s6244_s20  ;;  %p6252_p9 = scmp.lt.s32.totalorder %s462_s18, %s462_s18 }
  0x50   : > { %p6253_p13 = scmp.lt.s32.totalorder %s6244_s20, %s6244_s20 }
  0x51   : > { %p6247_p11 = pnand %p6245_p8, %p6571_p1 }
  0x52   : > { %p6254_p5 = por %p6253_p13, %p6252_p9 }
  0x53   : > { %p6248_p10 = pneg %p6247_p11 }
  0x54   : > { %5971 = dma.hbm_to_vmem [thread:$0]  (!%p6565_p0), %s9170_s21, 256, %s441_s23, [#allocation4]  }
  0x55   : > { %p6255_p6 = pnand %p6254_p5, %p6248_p10 }
  0x57   : > { %6258 = shalt.err (!%p6255_p6)
}
  0x58   : > { %5977 = dma.hbm_to_vmem [thread:$0]  (!%p6565_p0), %s8985_s3, 1024, %s462_s18, [#allocation7], %s6392_s17, %s6392_s17, %s6393_s30  }
  0x59   : > { %s6396_s16 = smov [#allocation11]   ;;  %s6397_s23 = smov [#allocation14]  }
  0x5a   : > { %s497_s0 = sshll.u32 %s6396_s16, 4  ;;  %s532_s19 = sshll.u32 %s6397_s23, 4  ;;  %s498_s0 = int_to_ptr.vmem [resolvable:$true] %s497_s0  ;;  %s533_s19 = int_to_ptr.vmem [resolvable:$true] %s532_s19 }
  0x5b   : > { %s6270_s21 = scalar_lea.vmem %s498_s0, 1024  ;;  %p6278_p4 = scmp.lt.s32.totalorder %s498_s0, %s498_s0 }
  0x5c   : > { %p6271_p12 = scmp.ne.s32.totalorder %s498_s0, %s6270_s21  ;;  %p6279_p7 = scmp.lt.s32.totalorder %s6270_s21, %s6270_s21 }
  0x5e   : > { %p6273_p2 = pnand %p6271_p12, %p6571_p1  ;;  %p6280_p8 = por %p6279_p7, %p6278_p4 }
  0x60   : > { %p6274_p3 = pneg %p6273_p2 }
  0x62   : > { %p6281_p11 = pnand %p6280_p8, %p6274_p3 }
  0x64   : > { %6284 = shalt.err (!%p6281_p11)
}
  0x65   : > { %5983 = dma.hbm_to_vmem [thread:$0]  (!%p6565_p0), %s8991_s9, 1024, %s498_s0, [#allocation10], %s6392_s17, %s6392_s17, %s6393_s30  }
  0x66   : > { %s6296_s2 = scalar_lea.vmem %s533_s19, 1024  ;;  %p6304_p5 = scmp.lt.s32.totalorder %s533_s19, %s533_s19 }
  0x67   : > { %p6297_p10 = scmp.ne.s32.totalorder %s533_s19, %s6296_s2  ;;  %p6305_p6 = scmp.lt.s32.totalorder %s6296_s2, %s6296_s2 }
  0x69   : > { %p6299_p9 = pnand %p6297_p10, %p6571_p1  ;;  %p6306_p12 = por %p6305_p6, %p6304_p5 }
  0x6b   : > { %p6300_p13 = pneg %p6299_p9 }
  0x6d   : > { %p6307_p2 = pnand %p6306_p12, %p6300_p13 }
  0x6f   : > { %6310 = shalt.err (!%p6307_p2)
}
  0x70   : > { %5989 = dma.hbm_to_vmem [thread:$0]  (!%p6565_p0), %s8996_s14, 1024, %s533_s19, [#allocation13], %s6392_s17, %s6392_s17, %s6393_s30  }
  0x71   : > { %p5127_p3 = scmp.ge.s32.totalorder %s6387_s27, 2 }
  0x72   : > { %p9171_p1 = scmp.ne.s32.totalorder (!%p5127_p3), %s9160_s1, 0 }
  0x73   : > { %548 = sbr.rel (%p5127_p3) target bundleno = 146 (0x92), region = 80 }
  0x78   : > { %551 = sbr.rel (!%p9171_p1) target bundleno = 146 (0x92), region = 84  ;;  %s553_s24 = sand.u32 (%p9171_p1), 1, %s6383_s26  }
  0x79   : > { %s5265_s0 = sshll.u32 (%p9171_p1), %s6387_s27, 7  ;;  %s5128_s29 = sshll.u32 (%p9171_p1), %s553_s24, 8 }
  0x7a   : > { %s9172_s18 = sld [smem:[#allocation116_spill]] (%p9171_p1)  ;;  %s6651_s1 = scalar_lea.vmem (%p9171_p1), [#allocation2], %s5128_s29 }
  0x80   : > { %s6646_s20 = scalar_lea.vmem %s9172_s18, %s5265_s0 }
  0x81   : > { %v650_v0 = vld [vmem:[%s6646_s20] sm:$0xff]  ;;  %v652_v1 = vld [vmem:[%s6646_s20 + $0x8] sm:$0xff]  ;;  %v654_v2 = vld [vmem:[%s6646_s20 + $0x10] sm:$0xff] }
  0x82   : > { %651 = vst [vmem:[%s6651_s1] sm:$0xff] %v650_v0  ;;  %653 = vst [vmem:[%s6651_s1 + $0x8] sm:$0xff] %v652_v1  ;;  %v656_v3 = vld [vmem:[%s6646_s20 + $0x18] sm:$0xff]  ;;  %v658_v4 = vld [vmem:[%s6646_s20 + $0x20] sm:$0xff] }
  0x83   : > { %655 = vst [vmem:[%s6651_s1 + $0x10] sm:$0xff] %v654_v2  ;;  %v660_v5 = vld [vmem:[%s6646_s20 + $0x28] sm:$0xff]  ;;  %657 = vst [vmem:[%s6651_s1 + $0x18] sm:$0xff] %v656_v3  ;;  %v662_v6 = vld [vmem:[%s6646_s20 + $0x30] sm:$0xff] }
  0x84   : > { %659 = vst [vmem:[%s6651_s1 + $0x20] sm:$0xff] %v658_v4  ;;  %661 = vst [vmem:[%s6651_s1 + $0x28] sm:$0xff] %v660_v5  ;;  %v664_v7 = vld [vmem:[%s6646_s20 + $0x38] sm:$0xff]  ;;  %v666_v8 = vld [vmem:[%s6646_s20 + $0x40] sm:$0xff] }
  0x85   : > { %663 = vst [vmem:[%s6651_s1 + $0x30] sm:$0xff] %v662_v6  ;;  %665 = vst [vmem:[%s6651_s1 + $0x38] sm:$0xff] %v664_v7  ;;  %v668_v9 = vld [vmem:[%s6646_s20 + $0x48] sm:$0xff]  ;;  %v670_v10 = vld [vmem:[%s6646_s20 + $0x50] sm:$0xff] }
  0x86   : > { %667 = vst [vmem:[%s6651_s1 + $0x40] sm:$0xff] %v666_v8  ;;  %v672_v11 = vld [vmem:[%s6646_s20 + $0x58] sm:$0xff]  ;;  %669 = vst [vmem:[%s6651_s1 + $0x48] sm:$0xff] %v668_v9  ;;  %v674_v12 = vld [vmem:[%s6646_s20 + $0x60] sm:$0xff] }
  0x87   : > { %671 = vst [vmem:[%s6651_s1 + $0x50] sm:$0xff] %v670_v10  ;;  %673 = vst [vmem:[%s6651_s1 + $0x58] sm:$0xff] %v672_v11  ;;  %v676_v13 = vld [vmem:[%s6646_s20 + $0x68] sm:$0xff]  ;;  %v678_v14 = vld [vmem:[%s6646_s20 + $0x70] sm:$0xff] }
  0x88   : > { %675 = vst [vmem:[%s6651_s1 + $0x60] sm:$0xff] %v674_v12  ;;  %677 = vst [vmem:[%s6651_s1 + $0x68] sm:$0xff] %v676_v13  ;;  %v680_v15 = vld [vmem:[%s6646_s20 + $0x78] sm:$0xff]  ;;  %v682_v16 = vld [vmem:[%s6646_s20 + $0x100] sm:$0xff] }
  0x89   : > { %679 = vst [vmem:[%s6651_s1 + $0x70] sm:$0xff] %v678_v14  ;;  %v684_v17 = vld [vmem:[%s6646_s20 + $0x108] sm:$0xff]  ;;  %681 = vst [vmem:[%s6651_s1 + $0x78] sm:$0xff] %v680_v15  ;;  %v686_v18 = vld [vmem:[%s6646_s20 + $0x110] sm:$0xff] }
  0x8a   : > { %683 = vst [vmem:[%s6651_s1 + $0x80] sm:$0xff] %v682_v16  ;;  %685 = vst [vmem:[%s6651_s1 + $0x88] sm:$0xff] %v684_v17  ;;  %v688_v19 = vld [vmem:[%s6646_s20 + $0x118] sm:$0xff]  ;;  %v690_v20 = vld [vmem:[%s6646_s20 + $0x120] sm:$0xff] }
  0x8b   : > { %687 = vst [vmem:[%s6651_s1 + $0x90] sm:$0xff] %v686_v18  ;;  %689 = vst [vmem:[%s6651_s1 + $0x98] sm:$0xff] %v688_v19  ;;  %v692_v21 = vld [vmem:[%s6646_s20 + $0x128] sm:$0xff]  ;;  %v694_v22 = vld [vmem:[%s6646_s20 + $0x130] sm:$0xff] }
  0x8c   : > { %691 = vst [vmem:[%s6651_s1 + $0xa0] sm:$0xff] %v690_v20  ;;  %v696_v23 = vld [vmem:[%s6646_s20 + $0x138] sm:$0xff]  ;;  %693 = vst [vmem:[%s6651_s1 + $0xa8] sm:$0xff] %v692_v21  ;;  %v698_v24 = vld [vmem:[%s6646_s20 + $0x140] sm:$0xff] }
  0x8d   : > { %695 = vst [vmem:[%s6651_s1 + $0xb0] sm:$0xff] %v694_v22  ;;  %697 = vst [vmem:[%s6651_s1 + $0xb8] sm:$0xff] %v696_v23  ;;  %v700_v25 = vld [vmem:[%s6646_s20 + $0x148] sm:$0xff]  ;;  %v702_v26 = vld [vmem:[%s6646_s20 + $0x150] sm:$0xff] }
  0x8e   : > { %699 = vst [vmem:[%s6651_s1 + $0xc0] sm:$0xff] %v698_v24  ;;  %701 = vst [vmem:[%s6651_s1 + $0xc8] sm:$0xff] %v700_v25  ;;  %v704_v27 = vld [vmem:[%s6646_s20 + $0x158] sm:$0xff]  ;;  %v706_v28 = vld [vmem:[%s6646_s20 + $0x160] sm:$0xff] }
  0x8f   : > { %703 = vst [vmem:[%s6651_s1 + $0xd0] sm:$0xff] %v702_v26  ;;  %v708_v29 = vld [vmem:[%s6646_s20 + $0x168] sm:$0xff]  ;;  %705 = vst [vmem:[%s6651_s1 + $0xd8] sm:$0xff] %v704_v27  ;;  %v710_v30 = vld [vmem:[%s6646_s20 + $0x170] sm:$0xff] }
  0x90   : > { %707 = vst [vmem:[%s6651_s1 + $0xe0] sm:$0xff] %v706_v28  ;;  %709 = vst [vmem:[%s6651_s1 + $0xe8] sm:$0xff] %v708_v29  ;;  %v712_v31 = vld [vmem:[%s6646_s20 + $0x178] sm:$0xff] }
  0x91   : > { %711 = vst [vmem:[%s6651_s1 + $0xf0] sm:$0xff] %v710_v30  ;;  %713 = vst [vmem:[%s6651_s1 + $0xf8] sm:$0xff] %v712_v31 }
  0x92 PF: > { %p9173_p0 = scmp.ne.s32.totalorder %s9165_s22, 0 }
  0x94   : > { %722 = sbr.rel (%p9173_p0) target bundleno = 3415 (0xd57), region = 122 }
  0x99   : > { %s6717_s17 = sand.u32 1, %s6379_s25   ;;  %p9174_p4 = scmp.eq.s32.totalorder %s6524_s28, 0 }
  0x9a   : > { %s5133_s30 = sshll.u32 %s6717_s17, 8 }
  0x9b   : > { %s6720_s19 = scalar_lea.vmem [#allocation2], %s5133_s30 }
  0x9c   : > { %6354 = dma.done.wait (%p9174_p4), [#allocation4], 256   ;;  %p9175_p7 = pmov %p9174_p4 }
  0x9d   : > { %p9176_p8 = pmov %p9174_p4 }
  0x9e   : > { %6356 = vsyncadd (%p9175_p7), [#allocation4], 4294967040 }
  0x9f   : > { %6358 = dma.done.wait (%p9176_p8), [#allocation7], 1088   ;;  %p9177_p11 = pmov %p9174_p4 }
  0xa0   : > { %p9178_p10 = pmov %p9174_p4 }
  0xa1   : > { %6360 = vsyncadd (%p9177_p11), [#allocation7], 4294966208 }
  0xa2   : > { %6362 = dma.done.wait (%p9178_p10), [#allocation10], 1088   ;;  %p9179_p9 = pmov %p9174_p4 }
  0xa3   : > { %p9180_p13 = pmov %p9174_p4 }
  0xa4   : > { %6364 = vsyncadd (%p9179_p9), [#allocation10], 4294966208 }
  0xa5   : > { %6366 = dma.done.wait (%p9180_p13), [#allocation13], 2048   ;;  %p9181_p5 = pmov %p9174_p4 }
  0xa6   : > { %v9015_v32 = vmov 1   ;;  %v9011_v33 = vmov 0   ;;  %v806_v34 = vld [vmem:[%s6720_s19 + $0x8] sm:$0xff]  ;;  %v805_v35 = vld [vmem:[%s6720_s19] sm:$0xff]  ;;  %v9013_v36 = vmov 2   ;;  %v808_v37 = vld [vmem:[%s6720_s19 + $0x18] sm:$0xff] }
  0xa7   : > { %6368 = vsyncadd (%p9181_p5), [#allocation13], 4294965248  ;;  %6064 = vset.pattern.permute.xlu0 %v9015_v32  ;;  %6065 = vset.pattern.permute.xlu1 %v9011_v33  ;;  %v1506_v38 = vld [vmem:[#allocation8 + $0x38] sm:$0xff]  ;;  %v1505_v40 = vld [vmem:[#allocation8 + $0x30] sm:$0xff]  ;;  %vm1514_vm0 = vcmask 523264   ;;  %vm2384_vm1 = vcmask 1041409  }
  0xa8   : > { %845 = vperm.xlu1 %6065, %v806_v34   ;;  %1036 = vperm.xlu0 %6064, %v805_v35   ;;  %v6747_v39 = vld [vmem:[%s6720_s19 + $0x28] sm:$0xff]  ;;  %v1504_v41 = vld [vmem:[#allocation8 + $0x28] sm:$0xff]  ;;  %v807_v42 = vld [vmem:[%s6720_s19 + $0x10] sm:$0xff]  ;;  %vm2386_vm2 = vcmask 1042434   ;;  %vm2388_vm3 = vcmask 1043459   ;;  %vm6402_vm4 = vmmov 0  }
  0xa9   : > { %5551 = vmatprep.subr.mxu0 %v1506_v38  ;;  %5922 = vmatprep.subr.mxu1 %v1506_v38  ;;  %v1503_v43 = vld [vmem:[#allocation8 + $0x20] sm:$0xff]  ;;  %v1502_v44 = vld [vmem:[#allocation8 + $0x18] sm:$0xff]  ;;  %v1501_v45 = vld [vmem:[#allocation8 + $0x10] sm:$0xff]  ;;  %s6409_s21 = smov 2   ;;  %s6410_s18 = smov 11   ;;  %vm4882_vm5 = vcmask 130048  }
  0xaa   : > { %5552 = vmatpush3.msra.mxu0 %v1506_v38  ;;  %5930 = vmatpush3.msra.mxu1 %v1506_v38  ;;  %v1500_v46 = vld [vmem:[#allocation8 + $0x8] sm:$0xff]  ;;  %v1499_v47 = vld [vmem:[#allocation8] sm:$0xff]  ;;  %v814_v50 = vld [vmem:[%s6720_s19 + $0x48] sm:$0xff]  ;;  %s9412_s29 = sld [smem:[#allocation120_spill]]  ;;  %vm4963_vm6 = vcmask 15360   ;;  %vm4965_vm7 = vcmask 89088  }
  0xab   : > { %5553 = vmatprep.subr.mxu0 %v1505_v40  ;;  %5923 = vmatprep.subr.mxu1 %v1505_v40  ;;  %v812_v48 = vld [vmem:[%s6720_s19 + $0x38] sm:$0xff]  ;;  %v809_v49 = vld [vmem:[%s6720_s19 + $0x20] sm:$0xff]  ;;  %v818_v52 = vld [vmem:[%s6720_s19 + $0x68] sm:$0xff]  ;;  %s9413_s20 = sld [smem:[#allocation24_spill]]  ;;  %s5261_s1 = sshll.u32 %s6524_s28, 5  ;;  %vm4967_vm8 = vcmask 162816  }
  0xac   : > { %6066 = vset.pattern.permute.xlu1 %v9015_v32  ;;  %6068 = vset.pattern.permute.xlu0 %v9013_v36  ;;  %v816_v51 = vld [vmem:[%s6720_s19 + $0x58] sm:$0xff]  ;;  %v811_v54 = vld [vmem:[%s6720_s19 + $0x30] sm:$0xff]  ;;  %v6776_v55 = vld [vmem:[%s6720_s19 + $0x88] sm:$0xff]  ;;  %s9414_s8 = sld [smem:[#allocation121_spill]]  ;;  %s4971_s24 = scalar_lea.sflag [#allocation5], %s6717_s17 }
  0xad   : > { %1040 = vperm.xlu1 %6066, %v806_v34   ;;  %1237 = vperm.xlu0 %6068, %v806_v34   ;;  %v6765_v53 = vld [vmem:[%s6720_s19 + $0x78] sm:$0xff]  ;;  %v813_v56 = vld [vmem:[%s6720_s19 + $0x40] sm:$0xff]  ;;  %v6787_v58 = vld [vmem:[%s6720_s19 + $0xa8] sm:$0xff]  ;;  %s6412_s28 = smov [#allocation15]  }
  0xae   : > { %5554 = vmatpush3.msra.mxu0 %v1505_v40  ;;  %5931 = vmatpush3.msra.mxu1 %v1505_v40  ;;  %v6782_v57 = vld [vmem:[%s6720_s19 + $0x98] sm:$0xff]  ;;  %v815_v59 = vld [vmem:[%s6720_s19 + $0x50] sm:$0xff]  ;;  %v6803_v61 = vld [vmem:[%s6720_s19 + $0xc8] sm:$0xff]  ;;  %s6315_s23 = sshll.u32 %s6412_s28, 4  ;;  %s6316_s23 = int_to_ptr.vmem [resolvable:$false] %s6315_s23 }
  0xaf   : > { %5555 = vmatprep.subr.mxu0 %v1504_v41  ;;  %5924 = vmatprep.subr.mxu1 %v1504_v41  ;;  %v6798_v60 = vld [vmem:[%s6720_s19 + $0xb8] sm:$0xff]  ;;  %v817_v63 = vld [vmem:[%s6720_s19 + $0x60] sm:$0xff]  ;;  %v819_v2 = vld [vmem:[%s6720_s19 + $0x70] sm:$0xff] }
  0xb0   : > { %5556 = vmatpush3.msra.mxu0 %v1504_v41  ;;  %5932 = vmatpush3.msra.mxu1 %v1504_v41  ;;  %v6807_v62 = vld [vmem:[%s6720_s19 + $0xd8] sm:$0xff]  ;;  %v6829_v5 = vld [vmem:[#allocation6 + $0x1] ss:$0 sm:$0xff]  ;;  %v6836_v8 = vld [vmem:[#allocation6] ss:$0 sm:$0xff] }
  0xb1   : > { %6067 = vset.pattern.permute.xlu1 %v9013_v36  ;;  %1245 = vperm.xlu0 %6068, %v808_v37   ;;  %v6841_v10 = vld [vmem:[%s6720_s19 + $0xe8] sm:$0xff]  ;;  %v6843_v11 = vld [vmem:[#allocation6 + $0x2] ss:$0 sm:$0xff]  ;;  %v6866_v22 = vld [vmem:[#allocation3] ss:$0 sm:$0xff]  ;;  %p9415_p12 = scmp.ne.s32.totalorder %s9413_s20, 0 }
  0xb2   : > { %1233 = vperm.xlu1 %6067, %v805_v35   ;;  %5557 = vmatprep.subr.mxu0 %v1503_v43  ;;  %v821_v26 = vld [vmem:[%s6720_s19 + $0x80] sm:$0xff]  ;;  %s8945_s16 = scalar_lea.hbm %s9414_s8, %s5261_s1 }
  0xb3   : > { %5558 = vmatpush3.msra.mxu0 %v1503_v43  ;;  %5925 = vmatprep.subr.mxu1 %v1503_v43 }
  0xb4   : > { %5559 = vmatprep.subr.mxu0 %v1502_v44  ;;  %5933 = vmatpush3.msra.mxu1 %v1503_v43 }
  0xb5   : > { %1253 = vperm.xlu0 %6068, %v6747_v39   ;;  %5560 = vmatpush3.msra.mxu0 %v1502_v44 }
  0xb6   : > { %6069 = vset.pattern.permute.xlu1 %v9011_v33  ;;  %5561 = vmatprep.subr.mxu0 %v1501_v45 }
  0xb7   : > { %850 = vperm.xlu1 %6069, %v807_v42   ;;  %5562 = vmatpush3.msra.mxu0 %v1501_v45 }
  0xb8   : > { %5563 = vmatprep.subr.mxu0 %v1500_v46  ;;  %5926 = vmatprep.subr.mxu1 %v1502_v44 }
  0xb9   : > { %6075 = vset.pattern.permute.xlu0 %v9011_v33  ;;  %5564 = vmatpush3.msra.mxu0 %v1500_v46 }
  0xba   : > { %840 = vperm.xlu0 %6075, %v805_v35   ;;  %5565 = vmatprep.subr.mxu0 %v1499_v47 }
  0xbb   : > { %6070 = vset.pattern.permute.xlu1 %v9015_v32  ;;  %5566 = vmatpush3.msra.mxu0 %v1499_v47 }
  0xbc   : > { %1044 = vperm.xlu1 %6070, %v807_v42   ;;  %5934 = vmatpush3.msra.mxu1 %v1502_v44 }
  0xbd   : > { %5927 = vmatprep.subr.mxu1 %v1501_v45 }
  0xbe   : > { %855 = vperm.xlu0 %6075, %v808_v37   ;;  %5935 = vmatpush3.msra.mxu1 %v1501_v45 }
  0xbf   : > { %5928 = vmatprep.subr.mxu1 %v1500_v46 }
  0xc0   : > { %1048 = vperm.xlu1 %6070, %v808_v37   ;;  %5936 = vmatpush3.msra.mxu1 %v1500_v46 }
  0xc1   : > { %5929 = vmatprep.subr.mxu1 %v1499_v47 }
  0xc2   : > { %865 = vperm.xlu0 %6075, %v6747_v39   ;;  %5937 = vmatpush3.msra.mxu1 %v1499_v47 }
  0xc4   : > { %6071 = vset.pattern.permute.xlu1 %v9013_v36 }
  0xc5   : > { %1241 = vperm.xlu1 %6071, %v807_v42  }
  0xc6   : > { %875 = vperm.xlu0 %6075, %v812_v48  }
  0xc9   : > { %6072 = vset.pattern.permute.xlu1 %v9011_v33 }
  0xca   : > { %860 = vperm.xlu1 %6072, %v809_v49   ;;  %885 = vperm.xlu0 %6075, %v814_v50  }
  0xce   : > { %6073 = vset.pattern.permute.xlu1 %v9015_v32  ;;  %895 = vperm.xlu0 %6075, %v816_v51  }
  0xcf   : > { %1052 = vperm.xlu1 %6073, %v809_v49  }
  0xd2   : > { %905 = vperm.xlu0 %6075, %v818_v52  }
  0xd3   : > { %1056 = vperm.xlu1 %6073, %v6747_v39  }
  0xd6   : > { %915 = vperm.xlu0 %6075, %v6765_v53  }
  0xd7   : > { %6074 = vset.pattern.permute.xlu1 %v9013_v36 }
  0xd8   : > { %1249 = vperm.xlu1 %6074, %v809_v49  }
  0xda   : > { %6090 = vset.pattern.permute.xlu0 %v9013_v36 }
  0xdb   : > { %1261 = vperm.xlu0 %6090, %v812_v48  }
  0xdc   : > { %6076 = vset.pattern.permute.xlu1 %v9011_v33 }
  0xdd   : > { %870 = vperm.xlu1 %6076, %v811_v54  }
  0xdf   : > { %1269 = vperm.xlu0 %6090, %v814_v50  }
  0xe1   : > { %6077 = vset.pattern.permute.xlu1 %v9015_v32 }
  0xe2   : > { %1060 = vperm.xlu1 %6077, %v811_v54  }
  0xe3   : > { %1277 = vperm.xlu0 %6090, %v816_v51  }
  0xe6   : > { %1064 = vperm.xlu1 %6077, %v812_v48  }
  0xe7   : > { %1285 = vperm.xlu0 %6090, %v818_v52  }
  0xea   : > { %6078 = vset.pattern.permute.xlu1 %v9013_v36 }
  0xeb   : > { %1257 = vperm.xlu1 %6078, %v811_v54   ;;  %1293 = vperm.xlu0 %6090, %v6765_v53  }
  0xef   : > { %6079 = vset.pattern.permute.xlu1 %v9011_v33  ;;  %1301 = vperm.xlu0 %6090, %v6776_v55  }
  0xf0   : > { %880 = vperm.xlu1 %6079, %v813_v56  }
  0xf3   : > { %1309 = vperm.xlu0 %6090, %v6782_v57  }
  0xf4   : > { %6080 = vset.pattern.permute.xlu1 %v9015_v32 }
  0xf5   : > { %1068 = vperm.xlu1 %6080, %v813_v56  }
  0xf7   : > { %1317 = vperm.xlu0 %6090, %v6787_v58  }
  0xf9   : > { %1072 = vperm.xlu1 %6080, %v814_v50  }
  0xfb   : > { %6101 = vset.pattern.permute.xlu0 %v9011_v33 }
  0xfc   : > { %925 = vperm.xlu0 %6101, %v6776_v55  }
  0xfd   : > { %6081 = vset.pattern.permute.xlu1 %v9013_v36 }
  0xfe   : > { %1265 = vperm.xlu1 %6081, %v813_v56  }
 0x100   : > { %935 = vperm.xlu0 %6101, %v6782_v57  }
 0x102   : > { %6082 = vset.pattern.permute.xlu1 %v9011_v33 }
 0x103   : > { %890 = vperm.xlu1 %6082, %v815_v59  }
 0x104   : > { %945 = vperm.xlu0 %6101, %v6787_v58  }
 0x107   : > { %6083 = vset.pattern.permute.xlu1 %v9015_v32 }
 0x108   : > { %1076 = vperm.xlu1 %6083, %v815_v59   ;;  %955 = vperm.xlu0 %6101, %v6798_v60  }
 0x10c   : > { %1080 = vperm.xlu1 %6083, %v816_v51   ;;  %965 = vperm.xlu0 %6101, %v6803_v61  }
 0x110   : > { %6084 = vset.pattern.permute.xlu1 %v9013_v36  ;;  %975 = vperm.xlu0 %6101, %v6807_v62  }
 0x111   : > { %1273 = vperm.xlu1 %6084, %v815_v59  }
 0x114   : > { %6110 = vset.pattern.permute.xlu0 %v9013_v36 }
 0x115   : > { %6085 = vset.pattern.permute.xlu1 %v9011_v33  ;;  %1325 = vperm.xlu0 %6110, %v6798_v60  }
 0x116   : > { %900 = vperm.xlu1 %6085, %v817_v63  }
 0x119   : > { %1333 = vperm.xlu0 %6110, %v6803_v61  }
 0x11a   : > { %6086 = vset.pattern.permute.xlu1 %v9015_v32 }
 0x11b   : > { %1084 = vperm.xlu1 %6086, %v817_v63  }
 0x11d   : > { %1341 = vperm.xlu0 %6110, %v6807_v62  }
 0x11f   : > { %1088 = vperm.xlu1 %6086, %v818_v52   ;;  %v6905_v52 = vld [vmem:[%s6720_s19 + $0xf8] sm:$0xff] }
 0x121   : > { %1349 = vperm.xlu0 %6110, %v6841_v10  }
 0x123   : > { %v6818_v0 = vpop.permute.xlu1 %845  ;;  %6087 = vset.pattern.permute.xlu1 %v9013_v36  ;;  %v6821_v1 = vpop.permute.xlu0 %1036 }
 0x124   : > { %1281 = vperm.xlu1 %6087, %v817_v63   ;;  %v1003_v13 = vmul.f32 %v6836_v8, %v6818_v0  ;;  %v1167_v17 = vmul.f32 %v6829_v5, %v6821_v1 }
 0x125   : > { %6115 = vset.pattern.permute.xlu0 %v9011_v33 }
 0x126   : > { %985 = vperm.xlu0 %6115, %v6841_v10  }
 0x128   : > { %v6824_v3 = vpop.permute.xlu1 %1040  ;;  %6088 = vset.pattern.permute.xlu1 %v9011_v33  ;;  %v6827_v4 = vpop.permute.xlu0 %1237 }
 0x129   : > { %9182 = vst [vmem:[#allocation26_spill] sm:$0xff] %v6827_v4  ;;  %910 = vperm.xlu1 %6088, %v819_v2   ;;  %v1168_v9 = vmul.f32 %v6829_v5, %v6824_v3  ;;  %v1365_v16 = vmul.f32 %v6843_v11, %v6827_v4 }
 0x12a   : > { %995 = vperm.xlu0 %6115, %v6905_v52  }
 0x12b   : > { %v1200_v15 = vadd.f32 %v1168_v9, %v1003_v13 }
 0x12c   : > { %v6831_v6 = vpop.permute.xlu0 %1245 }
 0x12d   : > { %9183 = vst [vmem:[#allocation27_spill] sm:$0xff] %v6831_v6  ;;  %6089 = vset.pattern.permute.xlu1 %v9015_v32  ;;  %v6834_v7 = vpop.permute.xlu1 %1233  ;;  %v1397_v20 = vadd.f32 %v1365_v16, %v1200_v15  ;;  %v1367_v31 = vmul.f32 %v6843_v11, %v6831_v6 }
 0x12e   : > { %9184 = vst [vmem:[#allocation28_spill] sm:$0xff] %v6834_v7  ;;  %1092 = vperm.xlu1 %6089, %v819_v2   ;;  %v1364_v23 = vmul.f32 %v6843_v11, %v6834_v7  ;;  %6119 = vset.pattern.permute.xlu0 %v9013_v36 }
 0x12f   : > { %v1436_v29 = vadd.f32 %v6866_v22, %v1397_v20  ;;  %1357 = vperm.xlu0 %6119, %v6905_v52  }
 0x130   : > { %v6845_v12 = vpop.permute.xlu0 %1253 }
 0x131   : > { %9185 = vst [vmem:[#allocation29_spill] sm:$0xff] %v6845_v12  ;;  %v1468_v41 = vmax.f32 %v1436_v29, 0.0  ;;  %v1369_v13 = vmul.f32 %v6843_v11, %v6845_v12 }
 0x132   : > { %1096 = vperm.xlu1 %6089, %v6765_v53   ;;  %v6851_v14 = vpop.permute.xlu1 %850 }
 0x133   : > { %v1004_v42 = vmul.f32 %v6836_v8, %v6851_v14 }
 0x135   : > { %v6858_v18 = vpop.permute.xlu0 %840 }
 0x136   : > { %v1002_v19 = vmul.f32 %v6836_v8, %v6858_v18  ;;  %6091 = vset.pattern.permute.xlu1 %v9013_v36 }
 0x137   : > { %1289 = vperm.xlu1 %6091, %v819_v2   ;;  %v6864_v21 = vpop.permute.xlu1 %1044 }
 0x138   : > { %v1199_v24 = vadd.f32 %v1167_v17, %v1002_v19  ;;  %v1169_v37 = vmul.f32 %v6829_v5, %v6864_v21 }
 0x139   : > { %v6870_v25 = vpop.permute.xlu0 %855 }
 0x13a   : > { %v1005_v27 = vmul.f32 %v6836_v8, %v6870_v25  ;;  %v1396_v28 = vadd.f32 %v1364_v23, %v1199_v24  ;;  %v1201_v45 = vadd.f32 %v1169_v37, %v1004_v42 }
 0x13b   : > { %6092 = vset.pattern.permute.xlu1 %v9011_v33  ;;  %v6877_v30 = vpop.permute.xlu1 %1048 }
 0x13c   : > { %9186 = vst [vmem:[#allocation30_spill] sm:$0xff] %v6877_v30  ;;  %v1170_v34 = vmul.f32 %v6829_v5, %v6877_v30  ;;  %920 = vperm.xlu1 %6092, %v821_v26   ;;  %v1435_v35 = vadd.f32 %v6866_v22, %v1396_v28 }
 0x13d   : > { %v6886_v38 = vpop.permute.xlu0 %865 }
 0x13e   : > { %9187 = vst [vmem:[#allocation31_spill] sm:$0xff] %v6886_v38  ;;  %v1202_v39 = vadd.f32 %v1170_v34, %v1005_v27  ;;  %v1467_v40 = vmax.f32 %v1435_v35, 0.0  ;;  %v1007_v63 = vmul.f32 %v6836_v8, %v6886_v38 }
 0x140   : > { %v1399_v43 = vadd.f32 %v1367_v31, %v1202_v39  ;;  %6093 = vset.pattern.permute.xlu1 %v9015_v32  ;;  %v6891_v44 = vpop.permute.xlu1 %1241  ;;  %5567 = vmatprep.mubr.msk.f32.mxu0 %vm1514_vm0, %v1467_v40 }
 0x141   : > { %9188 = vst [vmem:[#allocation32_spill] sm:$0xff] %v6891_v44  ;;  %v1366_v46 = vmul.f32 %v6843_v11, %v6891_v44  ;;  %1100 = vperm.xlu1 %6093, %v821_v26   ;;  %5568 = vmatmul.mubr.msk.f32.vlgmr.msra.gmra.mxu0 %vm1514_vm0, %v1468_v41  ;;  %v6897_v47 = vpop.permute.xlu0 %875  ;;  %v825_v41 = vld [vmem:[%s6720_s19 + $0xa0] sm:$0xff] }
 0x142   : > { %9189 = vst [vmem:[#allocation33_spill] sm:$0xff] %v6897_v47  ;;  %v1438_v49 = vadd.f32 %v6866_v22, %v1399_v43 }
 0x143   : > { %v1398_v48 = vadd.f32 %v1366_v46, %v1201_v45 }
 0x144   : > { %v1470_v56 = vmax.f32 %v1438_v49, 0.0 }
 0x145   : > { %v1437_v50 = vadd.f32 %v6866_v22, %v1398_v48  ;;  %1104 = vperm.xlu1 %6093, %v6776_v55   ;;  %v6902_v51 = vpop.permute.xlu1 %860  ;;  %v6908_v54 = vpop.permute.xlu0 %885  ;;  %v823_v55 = vld [vmem:[%s6720_s19 + $0x90] sm:$0xff] }
 0x146   : > { %9190 = vst [vmem:[#allocation34_spill] sm:$0xff] %v6908_v54  ;;  %v1006_v19 = vmul.f32 %v6836_v8, %v6902_v51 }
 0x147   : > { %v1469_v53 = vmax.f32 %v1437_v50, 0.0 }
 0x149   : > { %6094 = vset.pattern.permute.xlu1 %v9013_v36  ;;  %5570 = vmatprep.mubr.msk.f32.mxu0 %vm1514_vm0, %v1469_v53  ;;  %v6920_v2 = vpop.permute.xlu0 %895 }
 0x14a   : > { %1297 = vperm.xlu1 %6094, %v821_v26   ;;  %v6912_v59 = vpop.permute.xlu1 %1052  ;;  %5571 = vmatmul.mubr.msk.f32.gmra.mxu0 %vm1514_vm0, %v1470_v56  ;;  %9192 = vst [vmem:[#allocation36_spill] sm:$0xff] %v6920_v2 }
 0x14b   : > { %9191 = vst [vmem:[#allocation35_spill] sm:$0xff] %v6912_v59  ;;  %v1171_v16 = vmul.f32 %v6829_v5, %v6912_v59 }
 0x14d   : > { %v6936_v24 = vpop.permute.xlu0 %905  ;;  %v1203_v26 = vadd.f32 %v1171_v16, %v1006_v19 }
 0x14e   : > { %6095 = vset.pattern.permute.xlu1 %v9011_v33  ;;  %v6923_v9 = vpop.permute.xlu1 %1056  ;;  %9195 = vst [vmem:[#allocation39_spill] sm:$0xff] %v6936_v24 }
 0x14f   : > { %9193 = vst [vmem:[#allocation37_spill] sm:$0xff] %v6923_v9  ;;  %v1172_v15 = vmul.f32 %v6829_v5, %v6923_v9  ;;  %930 = vperm.xlu1 %6095, %v823_v55  }
 0x151   : > { %v1204_v17 = vadd.f32 %v1172_v15, %v1007_v63  ;;  %v6945_v35 = vpop.permute.xlu0 %915 }
 0x152   : > { %9197 = vst [vmem:[#allocation41_spill] sm:$0xff] %v6945_v35 }
 0x153   : > { %v1401_v20 = vadd.f32 %v1369_v13, %v1204_v17  ;;  %6096 = vset.pattern.permute.xlu1 %v9015_v32  ;;  %v6934_v23 = vpop.permute.xlu1 %1249 }
 0x154   : > { %9194 = vst [vmem:[#allocation38_spill] sm:$0xff] %v6934_v23  ;;  %v1368_v27 = vmul.f32 %v6843_v11, %v6934_v23  ;;  %1108 = vperm.xlu1 %6096, %v823_v55  }
 0x155   : > { %v1440_v29 = vadd.f32 %v6866_v22, %v1401_v20 }
 0x156   : > { %v1400_v28 = vadd.f32 %v1368_v27, %v1203_v26  ;;  %v6953_v42 = vpop.permute.xlu0 %1261  ;;  %v827_v27 = vld [vmem:[%s6720_s19 + $0xb0] sm:$0xff] }
 0x157   : > { %v1472_v39 = vmax.f32 %v1440_v29, 0.0  ;;  %9199 = vst [vmem:[#allocation43_spill] sm:$0xff] %v6953_v42  ;;  %v1371_v46 = vmul.f32 %v6843_v11, %v6953_v42  ;;  %v1011_v29 = vmul.f32 %v6836_v8, %v6908_v54 }
 0x158   : > { %v1439_v31 = vadd.f32 %v6866_v22, %v1400_v28  ;;  %1112 = vperm.xlu1 %6096, %v6782_v57   ;;  %v6943_v34 = vpop.permute.xlu1 %870  ;;  %v1009_v57 = vmul.f32 %v6836_v8, %v6897_v47 }
 0x159   : > { %9196 = vst [vmem:[#allocation40_spill] sm:$0xff] %v6943_v34  ;;  %v1008_v50 = vmul.f32 %v6836_v8, %v6943_v34 }
 0x15a   : > { %v1471_v37 = vmax.f32 %v1439_v31, 0.0  ;;  %v6984_v28 = vpop.permute.xlu0 %1269 }
 0x15b   : > { %9204 = vst [vmem:[#allocation48_spill] sm:$0xff] %v6984_v28 }
 0x15c   : > { %6097 = vset.pattern.permute.xlu1 %v9013_v36  ;;  %5573 = vmatprep.mubr.msk.f32.mxu0 %vm1514_vm0, %v1471_v37  ;;  %v1373_v37 = vmul.f32 %v6843_v11, %v6984_v28 }
 0x15d   : > { %1305 = vperm.xlu1 %6097, %v823_v55   ;;  %v6949_v40 = vpop.permute.xlu1 %1060  ;;  %5574 = vmatmul.mubr.msk.f32.gmra.mxu0 %vm1514_vm0, %v1472_v39 }
 0x15e   : > { %9198 = vst [vmem:[#allocation42_spill] sm:$0xff] %v6949_v40  ;;  %v1173_v48 = vmul.f32 %v6829_v5, %v6949_v40 }
 0x160   : > { %v1205_v55 = vadd.f32 %v1173_v48, %v1008_v50 }
 0x161   : > { %6098 = vset.pattern.permute.xlu1 %v9011_v33  ;;  %v6958_v43 = vpop.permute.xlu1 %1064 }
 0x162   : > { %9200 = vst [vmem:[#allocation44_spill] sm:$0xff] %v6958_v43  ;;  %v1174_v45 = vmul.f32 %v6829_v5, %v6958_v43  ;;  %940 = vperm.xlu1 %6098, %v825_v41  }
 0x164   : > { %v1206_v49 = vadd.f32 %v1174_v45, %v1009_v57 }
 0x166   : > { %v1403_v53 = vadd.f32 %v1371_v46, %v1206_v49  ;;  %6099 = vset.pattern.permute.xlu1 %v9015_v32  ;;  %v6969_v56 = vpop.permute.xlu1 %1257 }
 0x167   : > { %9201 = vst [vmem:[#allocation45_spill] sm:$0xff] %v6969_v56  ;;  %v1370_v63 = vmul.f32 %v6843_v11, %v6969_v56  ;;  %1116 = vperm.xlu1 %6099, %v825_v41  }
 0x168   : > { %v1442_v15 = vadd.f32 %v6866_v22, %v1403_v53 }
 0x169   : > { %v1402_v13 = vadd.f32 %v1370_v63, %v1205_v55 }
 0x16a   : > { %v1474_v20 = vmax.f32 %v1442_v15, 0.0 }
 0x16b   : > { %v1441_v16 = vadd.f32 %v6866_v22, %v1402_v13  ;;  %1120 = vperm.xlu1 %6099, %v6787_v58   ;;  %v6976_v17 = vpop.permute.xlu1 %880 }
 0x16c   : > { %9202 = vst [vmem:[#allocation46_spill] sm:$0xff] %v6976_v17  ;;  %v1010_v57 = vmul.f32 %v6836_v8, %v6976_v17 }
 0x16d   : > { %v1473_v19 = vmax.f32 %v1441_v16, 0.0 }
 0x16f   : > { %6100 = vset.pattern.permute.xlu1 %v9013_v36  ;;  %5576 = vmatprep.mubr.msk.f32.mxu0 %vm1514_vm0, %v1473_v19  ;;  %v829_v19 = vld [vmem:[%s6720_s19 + $0xc0] sm:$0xff] }
 0x170   : > { %1313 = vperm.xlu1 %6100, %v825_v41   ;;  %v6980_v26 = vpop.permute.xlu1 %1068  ;;  %5577 = vmatmul.mubr.msk.f32.gmra.mxu0 %vm1514_vm0, %v1474_v20  ;;  %v7015_v20 = vpop.permute.xlu0 %1277 }
 0x171   : > { %9203 = vst [vmem:[#allocation47_spill] sm:$0xff] %v6980_v26  ;;  %v1175_v39 = vmul.f32 %v6829_v5, %v6980_v26  ;;  %9209 = vst [vmem:[#allocation53_spill] sm:$0xff] %v7015_v20 }
 0x173   : > { %v1207_v48 = vadd.f32 %v1175_v39, %v1010_v57 }
 0x174   : > { %6102 = vset.pattern.permute.xlu1 %v9011_v33  ;;  %v6989_v58 = vpop.permute.xlu1 %1072 }
 0x175   : > { %9205 = vst [vmem:[#allocation49_spill] sm:$0xff] %v6989_v58  ;;  %v1176_v31 = vmul.f32 %v6829_v5, %v6989_v58  ;;  %950 = vperm.xlu1 %6102, %v827_v27  }
 0x177   : > { %v1208_v41 = vadd.f32 %v1176_v31, %v1011_v29  ;;  %v1013_v29 = vmul.f32 %v6836_v8, %v6920_v2 }
 0x179   : > { %v1405_v45 = vadd.f32 %v1373_v37, %v1208_v41  ;;  %6103 = vset.pattern.permute.xlu1 %v9015_v32  ;;  %v7000_v46 = vpop.permute.xlu1 %1265 }
 0x17a   : > { %9206 = vst [vmem:[#allocation50_spill] sm:$0xff] %v7000_v46  ;;  %v1372_v49 = vmul.f32 %v6843_v11, %v7000_v46  ;;  %1124 = vperm.xlu1 %6103, %v827_v27  }
 0x17b   : > { %v1444_v53 = vadd.f32 %v6866_v22, %v1405_v45 }
 0x17c   : > { %v1404_v50 = vadd.f32 %v1372_v49, %v1207_v48 }
 0x17d   : > { %v1476_v15 = vmax.f32 %v1444_v53, 0.0 }
 0x17e   : > { %v1443_v55 = vadd.f32 %v6866_v22, %v1404_v50  ;;  %1128 = vperm.xlu1 %6103, %v6798_v60   ;;  %v7007_v63 = vpop.permute.xlu1 %890 }
 0x17f   : > { %9207 = vst [vmem:[#allocation51_spill] sm:$0xff] %v7007_v63  ;;  %v1012_v41 = vmul.f32 %v6836_v8, %v7007_v63 }
 0x180   : > { %v1475_v13 = vmax.f32 %v1443_v55, 0.0 }
 0x182   : > { %6104 = vset.pattern.permute.xlu1 %v9013_v36  ;;  %5579 = vmatprep.mubr.msk.f32.mxu0 %vm1514_vm0, %v1475_v13 }
 0x183   : > { %1321 = vperm.xlu1 %6104, %v827_v27   ;;  %v7011_v16 = vpop.permute.xlu1 %1076  ;;  %5580 = vmatmul.mubr.msk.f32.gmra.mxu0 %vm1514_vm0, %v1476_v15  ;;  %v1375_v27 = vmul.f32 %v6843_v11, %v7015_v20 }
 0x184   : > { %9208 = vst [vmem:[#allocation52_spill] sm:$0xff] %v7011_v16  ;;  %v1177_v37 = vmul.f32 %v6829_v5, %v7011_v16 }
 0x186   : > { %v1209_v48 = vadd.f32 %v1177_v37, %v1012_v41  ;;  %v7046_v37 = vpop.permute.xlu0 %1285 }
 0x187   : > { %6105 = vset.pattern.permute.xlu1 %v9011_v33  ;;  %v7020_v60 = vpop.permute.xlu1 %1080  ;;  %9214 = vst [vmem:[#allocation58_spill] sm:$0xff] %v7046_v37 }
 0x188   : > { %9210 = vst [vmem:[#allocation54_spill] sm:$0xff] %v7020_v60  ;;  %v1178_v31 = vmul.f32 %v6829_v5, %v7020_v60  ;;  %960 = vperm.xlu1 %6105, %v829_v19  }
 0x18a   : > { %v1210_v39 = vadd.f32 %v1178_v31, %v1013_v29 }
 0x18c   : > { %v1407_v57 = vadd.f32 %v1375_v27, %v1210_v39  ;;  %6106 = vset.pattern.permute.xlu1 %v9015_v32  ;;  %v7031_v45 = vpop.permute.xlu1 %1273  ;;  %v831_v27 = vld [vmem:[%s6720_s19 + $0xd0] sm:$0xff]  ;;  %v1015_v39 = vmul.f32 %v6836_v8, %v6936_v24 }
 0x18d   : > { %9211 = vst [vmem:[#allocation55_spill] sm:$0xff] %v7031_v45  ;;  %v1374_v49 = vmul.f32 %v6843_v11, %v7031_v45  ;;  %1132 = vperm.xlu1 %6106, %v829_v19  }
 0x18e   : > { %v1446_v53 = vadd.f32 %v6866_v22, %v1407_v57 }
 0x18f   : > { %v1406_v50 = vadd.f32 %v1374_v49, %v1209_v48 }
 0x190   : > { %v1478_v29 = vmax.f32 %v1446_v53, 0.0 }
 0x191   : > { %v1445_v55 = vadd.f32 %v6866_v22, %v1406_v50  ;;  %1136 = vperm.xlu1 %6106, %v6803_v61   ;;  %v7038_v13 = vpop.permute.xlu1 %900 }
 0x192   : > { %9212 = vst [vmem:[#allocation56_spill] sm:$0xff] %v7038_v13  ;;  %v1014_v49 = vmul.f32 %v6836_v8, %v7038_v13 }
 0x193   : > { %v1477_v15 = vmax.f32 %v1445_v55, 0.0 }
 0x195   : > { %6107 = vset.pattern.permute.xlu1 %v9013_v36  ;;  %5582 = vmatprep.mubr.msk.f32.mxu0 %vm1514_vm0, %v1477_v15 }
 0x196   : > { %1329 = vperm.xlu1 %6107, %v829_v19   ;;  %v7042_v31 = vpop.permute.xlu1 %1084  ;;  %5583 = vmatmul.mubr.msk.f32.gmra.mxu0 %vm1514_vm0, %v1478_v29  ;;  %v1377_v19 = vmul.f32 %v6843_v11, %v7046_v37  ;;  %v9225_v37 = vmov 1  }
 0x197   : > { %9213 = vst [vmem:[#allocation57_spill] sm:$0xff] %v7042_v31  ;;  %v1179_v57 = vmul.f32 %v6829_v5, %v7042_v31 }
 0x199   : > { %v1211_v55 = vadd.f32 %v1179_v57, %v1014_v49 }
 0x19a   : > { %6108 = vset.pattern.permute.xlu1 %v9011_v33  ;;  %v7051_v61 = vpop.permute.xlu1 %1088 }
 0x19b   : > { %9215 = vst [vmem:[#allocation59_spill] sm:$0xff] %v7051_v61  ;;  %v1180_v41 = vmul.f32 %v6829_v5, %v7051_v61  ;;  %970 = vperm.xlu1 %6108, %v831_v27  }
 0x19d   : > { %v1212_v48 = vadd.f32 %v1180_v41, %v1015_v39  ;;  %v7071_v41 = vpop.permute.xlu0 %1293 }
 0x19e   : > { %9218 = vst [vmem:[#allocation62_spill] sm:$0xff] %v7071_v41 }
 0x19f   : > { %v1409_v50 = vadd.f32 %v1377_v19, %v1212_v48  ;;  %6109 = vset.pattern.permute.xlu1 %v9015_v32  ;;  %v7062_v53 = vpop.permute.xlu1 %1281  ;;  %v9219_v32 = vmov 2  }
 0x1a0   : > { %9216 = vst [vmem:[#allocation60_spill] sm:$0xff] %v7062_v53  ;;  %v1376_v15 = vmul.f32 %v6843_v11, %v7062_v53  ;;  %1140 = vperm.xlu1 %6109, %v831_v27  }
 0x1a1   : > { %v1448_v33 = vadd.f32 %v6866_v22, %v1409_v50  ;;  %v7078_v49 = vpop.permute.xlu0 %1301  ;;  %v833_v50 = vld [vmem:[%s6720_s19 + $0xe0] sm:$0xff] }
 0x1a2   : > { %v1408_v29 = vadd.f32 %v1376_v15, %v1211_v55  ;;  %9221 = vst [vmem:[#allocation64_spill] sm:$0xff] %v7078_v49  ;;  %v9222_v55 = vmov 0  }
 0x1a3   : > { %v1480_v48 = vmax.f32 %v1448_v33, 0.0 }
 0x1a4   : > { %v1447_v36 = vadd.f32 %v6866_v22, %v1408_v29  ;;  %1144 = vperm.xlu1 %6109, %v6807_v62   ;;  %v7069_v39 = vpop.permute.xlu1 %910  ;;  %v1017_v62 = vmul.f32 %v6836_v8, %v6945_v35 }
 0x1a5   : > { %9217 = vst [vmem:[#allocation61_spill] sm:$0xff] %v7069_v39 }
 0x1a6   : > { %v1479_v19 = vmax.f32 %v1447_v36, 0.0  ;;  %v1379_v36 = vmul.f32 %v6843_v11, %v7071_v41 }
 0x1a8   : > { %6111 = vset.pattern.permute.xlu1 %v9219_v32  ;;  %5585 = vmatprep.mubr.msk.f32.mxu0 %vm1514_vm0, %v1479_v19  ;;  %v7092_v19 = vpop.permute.xlu0 %1309 }
 0x1a9   : > { %1337 = vperm.xlu1 %6111, %v831_v27   ;;  %v7075_v57 = vpop.permute.xlu1 %1092  ;;  %5586 = vmatmul.mubr.msk.f32.gmra.mxu0 %vm1514_vm0, %v1480_v48  ;;  %9224 = vst [vmem:[#allocation66_spill] sm:$0xff] %v7092_v19  ;;  %v1016_v48 = vmul.f32 %v6836_v8, %v7069_v39 }
 0x1aa   : > { %9220 = vst [vmem:[#allocation63_spill] sm:$0xff] %v7075_v57  ;;  %v1181_v27 = vmul.f32 %v6829_v5, %v7075_v57 }
 0x1ac   : > { %v1213_v24 = vadd.f32 %v1181_v27, %v1016_v48  ;;  %v1899_v27 = vld [vmem:[%s8986_s4 + $0xf8] sm:$0xff] }
 0x1ad   : > { %6112 = vset.pattern.permute.xlu1 %v9222_v55  ;;  %v7084_v15 = vpop.permute.xlu1 %1096  ;;  %1912 = vmatprep.subr.mxu1 %v1899_v27 }
 0x1ae   : > { %9223 = vst [vmem:[#allocation65_spill] sm:$0xff] %v7084_v15  ;;  %v1182_v33 = vmul.f32 %v6829_v5, %v7084_v15  ;;  %980 = vperm.xlu1 %6112, %v833_v50  }
 0x1b0   : > { %v1214_v29 = vadd.f32 %v1182_v33, %v1017_v62  ;;  %v7102_v62 = vpop.permute.xlu0 %1317 }
 0x1b1   : > { %9227 = vst [vmem:[#allocation68_spill] sm:$0xff] %v7102_v62 }
 0x1b2   : > { %v1411_v35 = vadd.f32 %v1379_v36, %v1214_v29  ;;  %6113 = vset.pattern.permute.xlu1 %v9225_v37  ;;  %v7097_v61 = vpop.permute.xlu1 %1289 }
 0x1b3   : > { %9226 = vst [vmem:[#allocation67_spill] sm:$0xff] %v7097_v61  ;;  %v1378_v15 = vmul.f32 %v6843_v11, %v7097_v61  ;;  %1148 = vperm.xlu1 %6113, %v833_v50  }
 0x1b4   : > { %v1450_v57 = vadd.f32 %v6866_v22, %v1411_v35  ;;  %v7116_v35 = vpop.permute.xlu0 %925 }
 0x1b5   : > { %v1410_v41 = vadd.f32 %v1378_v15, %v1213_v24  ;;  %9230 = vst [vmem:[#allocation71_spill] sm:$0xff] %v7116_v35 }
 0x1b6   : > { %v1482_v48 = vmax.f32 %v1450_v57, 0.0  ;;  %v1381_v57 = vmul.f32 %v6843_v11, %v7078_v49 }
 0x1b7   : > { %v1449_v33 = vadd.f32 %v6866_v22, %v1410_v41  ;;  %1152 = vperm.xlu1 %6113, %v6841_v10   ;;  %v7106_v36 = vpop.permute.xlu1 %920  ;;  %v835_v10 = vld [vmem:[%s6720_s19 + $0xf0] sm:$0xff]  ;;  %v1019_v41 = vmul.f32 %v6836_v8, %v7116_v35 }
 0x1b8   : > { %9228 = vst [vmem:[#allocation69_spill] sm:$0xff] %v7106_v36 }
 0x1b9   : > { %v1481_v29 = vmax.f32 %v1449_v33, 0.0 }
 0x1bb   : > { %6114 = vset.pattern.permute.xlu1 %v9219_v32  ;;  %5588 = vmatprep.mubr.msk.f32.mxu0 %vm1514_vm0, %v1481_v29  ;;  %v1018_v29 = vmul.f32 %v6836_v8, %v7106_v36 }
 0x1bc   : > { %1345 = vperm.xlu1 %6114, %v833_v50   ;;  %v7113_v24 = vpop.permute.xlu1 %1100  ;;  %5589 = vmatmul.mubr.msk.f32.gmra.mxu0 %vm1514_vm0, %v1482_v48 }
 0x1bd   : > { %9229 = vst [vmem:[#allocation70_spill] sm:$0xff] %v7113_v24  ;;  %v1183_v33 = vmul.f32 %v6829_v5, %v7113_v24 }
 0x1bf   : > { %v1215_v61 = vadd.f32 %v1183_v33, %v1018_v29  ;;  %v1893_v29 = vld [vmem:[%s8986_s4 + $0xc8] sm:$0xff] }
 0x1c0   : > { %6116 = vset.pattern.permute.xlu1 %v9222_v55  ;;  %v7122_v15 = vpop.permute.xlu1 %1104 }
 0x1c1   : > { %9231 = vst [vmem:[#allocation72_spill] sm:$0xff] %v7122_v15  ;;  %v1184_v50 = vmul.f32 %v6829_v5, %v7122_v15  ;;  %990 = vperm.xlu1 %6116, %v835_v10  }
 0x1c3   : > { %v1216_v27 = vadd.f32 %v1184_v50, %v1019_v41 }
 0x1c5   : > { %v1413_v48 = vadd.f32 %v1381_v57, %v1216_v27  ;;  %6117 = vset.pattern.permute.xlu1 %v9225_v37  ;;  %v7133_v35 = vpop.permute.xlu1 %1297  ;;  %v1898_v27 = vld [vmem:[%s8986_s4 + $0xf0] sm:$0xff] }
 0x1c6   : > { %9232 = vst [vmem:[#allocation73_spill] sm:$0xff] %v7133_v35  ;;  %v1380_v49 = vmul.f32 %v6843_v11, %v7133_v35  ;;  %1156 = vperm.xlu1 %6117, %v835_v10  }
 0x1c7   : > { %v1452_v15 = vadd.f32 %v6866_v22, %v1413_v48 }
 0x1c8   : > { %v1412_v39 = vadd.f32 %v1380_v49, %v1215_v61  ;;  %v1897_v61 = vld [vmem:[%s8986_s4 + $0xe8] sm:$0xff]  ;;  %v1896_v49 = vld [vmem:[%s8986_s4 + $0xe0] sm:$0xff] }
 0x1c9   : > { %v1484_v57 = vmax.f32 %v1452_v15, 0.0  ;;  %v1895_v15 = vld [vmem:[%s8986_s4 + $0xd8] sm:$0xff] }
 0x1ca   : > { %1160 = vperm.xlu1 %6117, %v6905_v52   ;;  %v7139_v24 = vpop.permute.xlu1 %930  ;;  %v1451_v41 = vadd.f32 %v6866_v22, %v1412_v39  ;;  %v7153_v39 = vpop.permute.xlu0 %935 }
 0x1cb   : > { %9233 = vst [vmem:[#allocation74_spill] sm:$0xff] %v7139_v24  ;;  %9235 = vst [vmem:[#allocation76_spill] sm:$0xff] %v7153_v39  ;;  %v1021_v33 = vmul.f32 %v6836_v8, %v7153_v39 }
 0x1cc   : > { %v1483_v50 = vmax.f32 %v1451_v41, 0.0  ;;  %v1892_v41 = vld [vmem:[%s8986_s4 + $0xc0] sm:$0xff] }
 0x1ce   : > { %6118 = vset.pattern.permute.xlu1 %v9219_v32  ;;  %5591 = vmatprep.mubr.msk.f32.mxu1 %vm1514_vm0, %v1483_v50  ;;  %v1383_v50 = vmul.f32 %v6843_v11, %v7092_v19  ;;  %v1888_v19 = vld [vmem:[%s8986_s4 + $0xa0] sm:$0xff] }
 0x1cf   : > { %1353 = vperm.xlu1 %6118, %v835_v10   ;;  %v7150_v52 = vpop.permute.xlu1 %1108  ;;  %5592 = vmatmul.mubr.msk.f32.vlgmr.msra.gmra.mxu1 %vm1514_vm0, %v1484_v57  ;;  %v1894_v10 = vld [vmem:[%s8986_s4 + $0xd0] sm:$0xff] }
 0x1d0   : > { %9234 = vst [vmem:[#allocation75_spill] sm:$0xff] %v7150_v52  ;;  %1913 = vmatpush1.msra.mxu1 %v1898_v27  ;;  %v1891_v27 = vld [vmem:[%s8986_s4 + $0xb8] sm:$0xff] }
 0x1d1   : > { %1914 = vmatprep.subr.mxu1 %v1897_v61  ;;  %v1185_v61 = vmul.f32 %v6829_v5, %v7150_v52 }
 0x1d2   : > { %1915 = vmatpush1.msra.mxu1 %v1896_v49  ;;  %v1890_v49 = vld [vmem:[%s8986_s4 + $0xb0] sm:$0xff] }
 0x1d3   : > { %v7169_v48 = vpop.permute.xlu1 %1112  ;;  %1916 = vmatprep.subr.mxu1 %v1895_v15  ;;  %6120 = vset.pattern.permute.xlu1 %v9222_v55  ;;  %v1889_v15 = vld [vmem:[%s8986_s4 + $0xa8] sm:$0xff] }
 0x1d4   : > { %9236 = vst [vmem:[#allocation77_spill] sm:$0xff] %v7169_v48  ;;  %v1186_v57 = vmul.f32 %v6829_v5, %v7169_v48  ;;  %1917 = vmatpush1.msra.mxu1 %v1894_v10  ;;  %v1020_v10 = vmul.f32 %v6836_v8, %v7139_v24 }
 0x1d5   : > { %1918 = vmatprep.subr.mxu1 %v1893_v29 }
 0x1d6   : > { %v1218_v55 = vadd.f32 %v1186_v57, %v1021_v33  ;;  %1919 = vmatpush1.msra.mxu1 %v1892_v41  ;;  %v1887_v33 = vld [vmem:[%s8986_s4 + $0x98] sm:$0xff]  ;;  %v1217_v41 = vadd.f32 %v1185_v61, %v1020_v10 }
 0x1d7   : > { %1920 = vmatprep.subr.mxu1 %v1891_v27  ;;  %v1886_v27 = vld [vmem:[%s8986_s4 + $0x90] sm:$0xff] }
 0x1d8   : > { %v1415_v48 = vadd.f32 %v1383_v50, %v1218_v55  ;;  %v7195_v29 = vpop.permute.xlu1 %1305  ;;  %1921 = vmatpush1.msra.mxu1 %v1890_v49  ;;  %v1885_v50 = vld [vmem:[%s8986_s4 + $0x88] sm:$0xff]  ;;  %v1884_v49 = vld [vmem:[%s8986_s4 + $0x80] sm:$0xff] }
 0x1d9   : > { %9237 = vst [vmem:[#allocation78_spill] sm:$0xff] %v7195_v29  ;;  %v1382_v57 = vmul.f32 %v6843_v11, %v7195_v29  ;;  %1922 = vmatprep.subr.mxu1 %v1889_v15  ;;  %v1883_v15 = vld [vmem:[%s8986_s4 + $0x78] sm:$0xff] }
 0x1da   : > { %1923 = vmatpush1.msra.mxu1 %v1888_v19  ;;  %v1454_v61 = vadd.f32 %v6866_v22, %v1415_v48 }
 0x1db   : > { %v1414_v55 = vadd.f32 %v1382_v57, %v1217_v41  ;;  %1924 = vmatprep.subr.mxu1 %v1887_v33  ;;  %v1882_v33 = vld [vmem:[%s8986_s4 + $0x70] sm:$0xff]  ;;  %v1881_v41 = vld [vmem:[%s8986_s4 + $0x68] sm:$0xff] }
 0x1dc   : > { %1925 = vmatpush1.msra.mxu1 %v1886_v27  ;;  %v1486_v57 = vmax.f32 %v1454_v61, 0.0  ;;  %v1880_v27 = vld [vmem:[%s8986_s4 + $0x60] sm:$0xff]  ;;  %v1878_v61 = vld [vmem:[%s8986_s4 + $0x50] sm:$0xff] }
 0x1dd   : > { %v1453_v10 = vadd.f32 %v6866_v22, %v1414_v55  ;;  %v7216_v19 = vpop.permute.xlu1 %940  ;;  %1926 = vmatprep.subr.mxu1 %v1885_v50  ;;  %v7228_v50 = vpop.permute.xlu0 %945  ;;  %v1879_v55 = vld [vmem:[%s8986_s4 + $0x58] sm:$0xff] }
 0x1de   : > { %9238 = vst [vmem:[#allocation79_spill] sm:$0xff] %v7216_v19  ;;  %1927 = vmatpush1.msra.mxu1 %v1884_v49  ;;  %9239 = vst [vmem:[#allocation80_spill] sm:$0xff] %v7228_v50 }
 0x1df   : > { %v1485_v48 = vmax.f32 %v1453_v10, 0.0  ;;  %1928 = vmatprep.subr.mxu1 %v1883_v15  ;;  %v1877_v15 = vld [vmem:[%s8986_s4 + $0x48] sm:$0xff]  ;;  %v1876_v10 = vld [vmem:[%s8986_s4 + $0x40] sm:$0xff] }
 0x1e0   : > { %1929 = vmatpush1.msra.mxu1 %v1882_v33  ;;  %v1023_v33 = vmul.f32 %v6836_v8, %v7228_v50 }
 0x1e1   : > { %5594 = vmatprep.mubr.msk.f32.mxu1 %vm1514_vm0, %v1485_v48  ;;  %1930 = vmatprep.subr.mxu1 %v1881_v41  ;;  %v7247_v41 = vpop.permute.xlu0 %955  ;;  %v1875_v48 = vld [vmem:[%s8986_s4 + $0x38] sm:$0xff] }
 0x1e2   : > { %v7233_v49 = vpop.permute.xlu1 %1116  ;;  %5595 = vmatmul.mubr.msk.f32.gmra.mxu1 %vm1514_vm0, %v1486_v57  ;;  %9241 = vst [vmem:[#allocation82_spill] sm:$0xff] %v7247_v41 }
 0x1e3   : > { %9240 = vst [vmem:[#allocation81_spill] sm:$0xff] %v7233_v49  ;;  %1931 = vmatpush1.msra.mxu1 %v1880_v27  ;;  %v1874_v27 = vld [vmem:[%s8986_s4 + $0x30] sm:$0xff]  ;;  %v1187_v39 = vmul.f32 %v6829_v5, %v7233_v49 }
 0x1e4   : > { %1932 = vmatprep.subr.mxu1 %v1879_v55  ;;  %v1385_v55 = vmul.f32 %v6843_v11, %v7102_v62  ;;  %v1871_v62 = vld [vmem:[%s8986_s4 + $0x18] sm:$0xff] }
 0x1e5   : > { %1933 = vmatpush1.msra.mxu1 %v1878_v61  ;;  %v1873_v61 = vld [vmem:[%s8986_s4 + $0x28] sm:$0xff]  ;;  %v7279_v52 = vpop.permute.xlu0 %965 }
 0x1e6   : > { %v7252_v57 = vpop.permute.xlu1 %1120  ;;  %1934 = vmatprep.subr.mxu1 %v1877_v15  ;;  %v1872_v15 = vld [vmem:[%s8986_s4 + $0x20] sm:$0xff]  ;;  %9244 = vst [vmem:[#allocation85_spill] sm:$0xff] %v7279_v52 }
 0x1e7   : > { %9242 = vst [vmem:[#allocation83_spill] sm:$0xff] %v7252_v57  ;;  %v1188_v50 = vmul.f32 %v6829_v5, %v7252_v57  ;;  %1935 = vmatpush1.msra.mxu1 %v1876_v10  ;;  %v1022_v10 = vmul.f32 %v6836_v8, %v7216_v19  ;;  %v1870_v57 = vld [vmem:[%s8986_s4 + $0x10] sm:$0xff] }
 0x1e8   : > { %1936 = vmatprep.subr.mxu1 %v1875_v48 }
 0x1e9   : > { %v1220_v29 = vadd.f32 %v1188_v50, %v1023_v33  ;;  %1937 = vmatpush1.msra.mxu1 %v1874_v27  ;;  %v1869_v50 = vld [vmem:[%s8986_s4 + $0x8] sm:$0xff]  ;;  %v1219_v33 = vadd.f32 %v1187_v39, %v1022_v10  ;;  %v7293_v24 = vpop.permute.xlu0 %975 }
 0x1ea   : > { %1938 = vmatprep.subr.mxu1 %v1873_v61  ;;  %v1868_v61 = vld [vmem:[%s8986_s4] sm:$0xff]  ;;  %9246 = vst [vmem:[#allocation87_spill] sm:$0xff] %v7293_v24 }
 0x1eb   : > { %v1417_v49 = vadd.f32 %v1385_v55, %v1220_v29  ;;  %v7277_v48 = vpop.permute.xlu1 %1313  ;;  %1939 = vmatpush1.msra.mxu1 %v1872_v15 }
 0x1ec   : > { %9243 = vst [vmem:[#allocation84_spill] sm:$0xff] %v7277_v48  ;;  %v1384_v27 = vmul.f32 %v6843_v11, %v7277_v48  ;;  %1940 = vmatprep.subr.mxu1 %v1871_v62 }
 0x1ed   : > { %1941 = vmatpush1.msra.mxu1 %v1870_v57  ;;  %v1456_v55 = vadd.f32 %v6866_v22, %v1417_v49  ;;  %v7299_v57 = vpop.permute.xlu0 %1325  ;;  %v1025_v49 = vmul.f32 %v6836_v8, %v7247_v41 }
 0x1ee   : > { %v1416_v29 = vadd.f32 %v1384_v27, %v1219_v33  ;;  %1942 = vmatprep.subr.mxu1 %v1869_v50  ;;  %9248 = vst [vmem:[#allocation89_spill] sm:$0xff] %v7299_v57  ;;  %v1387_v27 = vmul.f32 %v6843_v11, %v7299_v57 }
 0x1ef   : > { %1943 = vmatpush1.msra.mxu1 %v1868_v61  ;;  %v1488_v10 = vmax.f32 %v1456_v55, 0.0 }
 0x1f0   : > { %v1455_v15 = vadd.f32 %v6866_v22, %v1416_v29  ;;  %v7291_v19 = vpop.permute.xlu1 %950 }
 0x1f1   : > { %9245 = vst [vmem:[#allocation86_spill] sm:$0xff] %v7291_v19  ;;  %v1024_v55 = vmul.f32 %v6836_v8, %v7291_v19 }
 0x1f2   : > { %v1487_v39 = vmax.f32 %v1455_v15, 0.0 }
 0x1f4   : > { %5597 = vmatprep.mubr.msk.f32.mxu1 %vm1514_vm0, %v1487_v39 }
 0x1f5   : > { %v7296_v62 = vpop.permute.xlu1 %1124  ;;  %5598 = vmatmul.mubr.msk.f32.gmra.mxu1 %vm1514_vm0, %v1488_v10 }
 0x1f6   : > { %9247 = vst [vmem:[#allocation88_spill] sm:$0xff] %v7296_v62  ;;  %v1189_v61 = vmul.f32 %v6829_v5, %v7296_v62 }
 0x1f8   : > { %v1221_v10 = vadd.f32 %v1189_v61, %v1024_v55 }
 0x1f9   : > { %v7303_v50 = vpop.permute.xlu1 %1128 }
 0x1fa   : > { %9249 = vst [vmem:[#allocation90_spill] sm:$0xff] %v7303_v50  ;;  %v1190_v33 = vmul.f32 %v6829_v5, %v7303_v50 }
 0x1fc   : > { %v1222_v29 = vadd.f32 %v1190_v33, %v1025_v49  ;;  %v7325_v33 = vpop.permute.xlu0 %1333 }
 0x1fd   : > { %9253 = vst [vmem:[#allocation94_spill] sm:$0xff] %v7325_v33 }
 0x1fe   : > { %v1419_v15 = vadd.f32 %v1387_v27, %v1222_v29  ;;  %v7313_v39 = vpop.permute.xlu1 %1321  ;;  %v1027_v27 = vmul.f32 %v6836_v8, %v7279_v52 }
 0x1ff   : > { %9250 = vst [vmem:[#allocation91_spill] sm:$0xff] %v7313_v39  ;;  %v1386_v41 = vmul.f32 %v6843_v11, %v7313_v39 }
 0x200   : > { %v1458_v50 = vadd.f32 %v6866_v22, %v1419_v15 }
 0x201   : > { %v1418_v48 = vadd.f32 %v1386_v41, %v1221_v10 }
 0x202   : > { %v1490_v62 = vmax.f32 %v1458_v50, 0.0 }
 0x203   : > { %v1457_v35 = vadd.f32 %v6866_v22, %v1418_v48  ;;  %v7319_v57 = vpop.permute.xlu1 %960 }
 0x204   : > { %9251 = vst [vmem:[#allocation92_spill] sm:$0xff] %v7319_v57 }
 0x205   : > { %v1489_v36 = vmax.f32 %v1457_v35, 0.0  ;;  %v1389_v35 = vmul.f32 %v6843_v11, %v7325_v33 }
 0x207   : > { %5600 = vmatprep.mubr.msk.f32.mxu1 %vm1514_vm0, %v1489_v36 }
 0x208   : > { %v7322_v49 = vpop.permute.xlu1 %1132  ;;  %5601 = vmatmul.mubr.msk.f32.gmra.mxu1 %vm1514_vm0, %v1490_v62  ;;  %v1026_v62 = vmul.f32 %v6836_v8, %v7319_v57  ;;  %v7427_v57 = vld [vmem:[#allocation3 + $0x1] ss:$0 sm:$0xff] }
 0x209   : > { %9252 = vst [vmem:[#allocation93_spill] sm:$0xff] %v7322_v49  ;;  %v1191_v36 = vmul.f32 %v6829_v5, %v7322_v49 }
 0x20b   : > { %v1223_v55 = vadd.f32 %v1191_v36, %v1026_v62  ;;  %v1029_v36 = vmul.f32 %v6836_v8, %v7293_v24 }
 0x20c   : > { %v7329_v41 = vpop.permute.xlu1 %1136 }
 0x20d   : > { %9254 = vst [vmem:[#allocation95_spill] sm:$0xff] %v7329_v41  ;;  %v1192_v48 = vmul.f32 %v6829_v5, %v7329_v41 }
 0x20f   : > { %v1224_v50 = vadd.f32 %v1192_v48, %v1027_v27  ;;  %v7351_v48 = vpop.permute.xlu0 %1341 }
 0x210   : > { %9258 = vst [vmem:[#allocation99_spill] sm:$0xff] %v7351_v48 }
 0x211   : > { %v1421_v61 = vadd.f32 %v1389_v35, %v1224_v50  ;;  %v7339_v29 = vpop.permute.xlu1 %1329 }
 0x212   : > { %9255 = vst [vmem:[#allocation96_spill] sm:$0xff] %v7339_v29  ;;  %v1388_v15 = vmul.f32 %v6843_v11, %v7339_v29 }
 0x213   : > { %v1460_v41 = vadd.f32 %v6866_v22, %v1421_v61  ;;  %v7373_v29 = vpop.permute.xlu0 %1349 }
 0x214   : > { %v1420_v10 = vadd.f32 %v1388_v15, %v1223_v55  ;;  %9262 = vst [vmem:[#allocation103_spill] sm:$0xff] %v7373_v29 }
 0x215   : > { %v1492_v49 = vmax.f32 %v1460_v41, 0.0 }
 0x216   : > { %v1459_v52 = vadd.f32 %v6866_v22, %v1420_v10  ;;  %v7345_v33 = vpop.permute.xlu1 %970 }
 0x217   : > { %9256 = vst [vmem:[#allocation97_spill] sm:$0xff] %v7345_v33 }
 0x218   : > { %v1491_v39 = vmax.f32 %v1459_v52, 0.0  ;;  %v1391_v52 = vmul.f32 %v6843_v11, %v7351_v48 }
 0x21a   : > { %5603 = vmatprep.mubr.msk.f32.mxu1 %vm1514_vm0, %v1491_v39 }
 0x21b   : > { %v7348_v27 = vpop.permute.xlu1 %1140  ;;  %5604 = vmatmul.mubr.msk.f32.gmra.mxu1 %vm1514_vm0, %v1492_v49  ;;  %v1028_v49 = vmul.f32 %v6836_v8, %v7345_v33 }
 0x21c   : > { %9257 = vst [vmem:[#allocation98_spill] sm:$0xff] %v7348_v27  ;;  %v1193_v39 = vmul.f32 %v6829_v5, %v7348_v27 }
 0x21e   : > { %v1225_v55 = vadd.f32 %v1193_v39, %v1028_v49  ;;  %v7379_v39 = vpop.permute.xlu0 %985 }
 0x21f   : > { %v7353_v35 = vpop.permute.xlu1 %1144  ;;  %9264 = vst [vmem:[#allocation105_spill] sm:$0xff] %v7379_v39 }
 0x220   : > { %9259 = vst [vmem:[#allocation100_spill] sm:$0xff] %v7353_v35  ;;  %v1194_v50 = vmul.f32 %v6829_v5, %v7353_v35 }
 0x222   : > { %v1226_v41 = vadd.f32 %v1194_v50, %v1029_v36 }
 0x224   : > { %v1423_v62 = vadd.f32 %v1391_v52, %v1226_v41  ;;  %v7365_v61 = vpop.permute.xlu1 %1337  ;;  %v1031_v41 = vmul.f32 %v6836_v8, %v7379_v39 }
 0x225   : > { %9260 = vst [vmem:[#allocation101_spill] sm:$0xff] %v7365_v61  ;;  %v1390_v15 = vmul.f32 %v6843_v11, %v7365_v61 }
 0x226   : > { %v1462_v35 = vadd.f32 %v6866_v22, %v1423_v62 }
 0x227   : > { %v1422_v10 = vadd.f32 %v1390_v15, %v1225_v55 }
 0x228   : > { %v1494_v50 = vmax.f32 %v1462_v35, 0.0  ;;  %v1393_v35 = vmul.f32 %v6843_v11, %v7373_v29 }
 0x229   : > { %v1461_v24 = vadd.f32 %v6866_v22, %v1422_v10  ;;  %v7371_v48 = vpop.permute.xlu1 %980 }
 0x22a   : > { %9261 = vst [vmem:[#allocation102_spill] sm:$0xff] %v7371_v48  ;;  %v1030_v15 = vmul.f32 %v6836_v8, %v7371_v48 }
 0x22b   : > { %v1493_v36 = vmax.f32 %v1461_v24, 0.0 }
 0x22d   : > { %5606 = vmatprep.mubr.msk.f32.mxu1 %vm1514_vm0, %v1493_v36 }
 0x22e   : > { %v7376_v52 = vpop.permute.xlu1 %1148  ;;  %5607 = vmatmul.mubr.msk.f32.gmra.mxu1 %vm1514_vm0, %v1494_v50 }
 0x22f   : > { %9263 = vst [vmem:[#allocation104_spill] sm:$0xff] %v7376_v52  ;;  %v1195_v24 = vmul.f32 %v6829_v5, %v7376_v52 }
 0x231   : > { %v1227_v50 = vadd.f32 %v1195_v24, %v1030_v15 }
 0x232   : > { %v7383_v49 = vpop.permute.xlu1 %1152 }
 0x233   : > { %9265 = vst [vmem:[#allocation106_spill] sm:$0xff] %v7383_v49  ;;  %v1196_v62 = vmul.f32 %v6829_v5, %v7383_v49 }
 0x235   : > { %v1228_v55 = vadd.f32 %v1196_v62, %v1031_v41  ;;  %v7401_v41 = vpop.permute.xlu0 %995 }
 0x236   : > { %9268 = vst [vmem:[#allocation109_spill] sm:$0xff] %v7401_v41 }
 0x237   : > { %v1425_v10 = vadd.f32 %v1393_v35, %v1228_v55  ;;  %v7393_v36 = vpop.permute.xlu1 %1345 }
 0x238   : > { %9266 = vst [vmem:[#allocation107_spill] sm:$0xff] %v7393_v36  ;;  %v1392_v39 = vmul.f32 %v6843_v11, %v7393_v36 }
 0x239   : > { %v1464_v49 = vadd.f32 %v6866_v22, %v1425_v10  ;;  %v7407_v24 = vpop.permute.xlu0 %1357  ;;  %v5569_v10 = vpop.f32.mrf.mxu0 }
 0x23a   : > { %v1424_v61 = vadd.f32 %v1392_v39, %v1227_v50  ;;  %9270 = vst [vmem:[#allocation111_spill] sm:$0xff] %v7407_v24  ;;  %v1033_v39 = vmul.f32 %v6836_v8, %v7401_v41 }
 0x23b   : > { %v1496_v29 = vmax.f32 %v1464_v49, 0.0  ;;  %v1677_v48 = vpop.f32.mrf.mxu0 }
 0x23c   : > { %v1463_v27 = vadd.f32 %v6866_v22, %v1424_v61  ;;  %v7399_v52 = vpop.permute.xlu1 %990 }
 0x23d   : > { %9267 = vst [vmem:[#allocation108_spill] sm:$0xff] %v7399_v52 }
 0x23e   : > { %v1495_v33 = vmax.f32 %v1463_v27, 0.0  ;;  %v1395_v27 = vmul.f32 %v6843_v11, %v7407_v24 }
 0x240   : > { %5609 = vmatprep.mubr.msk.f32.mxu1 %vm1514_vm0, %v1495_v33 }
 0x241   : > { %v7404_v62 = vpop.permute.xlu1 %1156  ;;  %5610 = vmatmul.mubr.msk.f32.gmra.mxu1 %vm1514_vm0, %v1496_v29  ;;  %v1032_v29 = vmul.f32 %v6836_v8, %v7399_v52 }
 0x242   : > { %9269 = vst [vmem:[#allocation110_spill] sm:$0xff] %v7404_v62  ;;  %v1197_v33 = vmul.f32 %v6829_v5, %v7404_v62 }
 0x244   : > { %v1229_v50 = vadd.f32 %v1197_v33, %v1032_v29 }
 0x245   : > { %v7409_v35 = vpop.permute.xlu1 %1160 }
 0x246   : > { %9271 = vst [vmem:[#allocation112_spill] sm:$0xff] %v7409_v35  ;;  %v1198_v61 = vmul.f32 %v6829_v5, %v7409_v35 }
 0x248   : > { %v1230_v49 = vadd.f32 %v1198_v61, %v1033_v39  ;;  %v1678_v39 = vadd.f32 %v7427_v57, %v1677_v48  ;;  %v5572_v61 = vpop.f32.mrf.mxu0 }
 0x24a   : > { %v1427_v55 = vadd.f32 %v1395_v27, %v1230_v49  ;;  %v7421_v15 = vpop.permute.xlu1 %1353  ;;  %v9074_v27 = vmov 0.0   ;;  %v1687_v33 = vpop.f32.mrf.mxu0 }
 0x24b   : > { %9272 = vst [vmem:[#allocation113_spill] sm:$0xff] %v7421_v15  ;;  %v1394_v41 = vmul.f32 %v6843_v11, %v7421_v15  ;;  %v1683_v11 = vadd.f32 %v5569_v10, %v7427_v57 }
 0x24c   : > { %v1466_v35 = vadd.f32 %v6866_v22, %v1427_v55  ;;  %v5575_v48 = vpop.f32.mrf.mxu0 }
 0x24d   : > { %v1426_v36 = vadd.f32 %v1394_v41, %v1229_v50  ;;  %v1836_v41 = vmax.f32 %v1678_v39, 0.0  ;;  %v1703_v50 = vadd.f32 %v5575_v48, %v7427_v57 }
 0x24e   : > { %v1498_v8 = vmax.f32 %v1466_v35, 0.0  ;;  %v1697_v49 = vpop.f32.mrf.mxu0 }
 0x24f   : > { %v1465_v24 = vadd.f32 %v6866_v22, %v1426_v36  ;;  %v1837_v22 = vmax.f32 %v1683_v11, 0.0  ;;  %v1688_v36 = vadd.f32 %v7427_v57, %v1687_v33  ;;  %v1698_v55 = vadd.f32 %v7427_v57, %v1697_v49 }
 0x250   : > { %v5578_v10 = vpop.f32.mrf.mxu0 }
 0x251   : > { %v1497_v5 = vmax.f32 %v1465_v24, 0.0  ;;  %v1693_v24 = vadd.f32 %v5572_v61, %v7427_v57  ;;  %v1838_v35 = vmax.f32 %v1688_v36, 0.0 }
 0x252   : > { %v1707_v39 = vpop.f32.mrf.mxu0 }
 0x253   : > { %5612 = vmatprep.mubr.msk.f32.mxu1 %vm1514_vm0, %v1497_v5  ;;  %v1839_v29 = vmax.f32 %v1693_v24, 0.0  ;;  %v1840_v5 = vmax.f32 %v1698_v55, 0.0  ;;  %v1708_v61 = vadd.f32 %v7427_v57, %v1707_v39 }
 0x254   : > { %5613 = vmatmul.mubr.msk.f32.gmra.mxu1 %vm1514_vm0, %v1498_v8  ;;  %v1841_v8 = vmax.f32 %v1703_v50, 0.0  ;;  %v5581_v11 = vpop.f32.mrf.mxu0 }
 0x255   : > { %1976 = vmatprep.mubr.f32.mxu1 %v9074_v27  ;;  %v1842_v33 = vmax.f32 %v1708_v61, 0.0 }
 0x258   : > { %1977 = vmatmul.mubr.f32.vlgmr.msra.gmra.mxu1 %v1836_v41  ;;  %v1713_v41 = vadd.f32 %v5578_v10, %v7427_v57 }
 0x259   : > { %1982 = vmatprep.mubr.f32.mxu1 %v9074_v27 }
 0x25a   : > { %v1843_v36 = vmax.f32 %v1713_v41, 0.0 }
 0x25c   : > { %1983 = vmatmul.mubr.f32.gmra.mxu1 %v1837_v22  ;;  %v1717_v22 = vpop.f32.mrf.mxu0 }
 0x25d   : > { %1988 = vmatprep.mubr.f32.mxu1 %v9074_v27  ;;  %v1718_v48 = vadd.f32 %v7427_v57, %v1717_v22 }
 0x25e   : > { %v5584_v24 = vpop.f32.mrf.mxu0 }
 0x25f   : > { %v1844_v49 = vmax.f32 %v1718_v48, 0.0 }
 0x260   : > { %1989 = vmatmul.mubr.f32.gmra.mxu1 %v1838_v35  ;;  %v1723_v35 = vadd.f32 %v5581_v11, %v7427_v57 }
 0x261   : > { %1994 = vmatprep.mubr.f32.mxu1 %v9074_v27 }
 0x262   : > { %v1845_v55 = vmax.f32 %v1723_v35, 0.0 }
 0x264   : > { %1995 = vmatmul.mubr.f32.gmra.mxu1 %v1839_v29  ;;  %v1727_v29 = vpop.f32.mrf.mxu0 }
 0x265   : > { %2000 = vmatprep.mubr.f32.mxu1 %v9074_v27  ;;  %v1728_v10 = vadd.f32 %v7427_v57, %v1727_v29 }
 0x267   : > { %v1846_v39 = vmax.f32 %v1728_v10, 0.0 }
 0x268   : > { %2001 = vmatmul.mubr.f32.gmra.mxu1 %v1840_v5  ;;  %v1733_v5 = vadd.f32 %v5584_v24, %v7427_v57 }
 0x269   : > { %2006 = vmatprep.mubr.f32.mxu1 %v9074_v27  ;;  %v5587_v50 = vpop.f32.mrf.mxu0 }
 0x26a   : > { %v1847_v61 = vmax.f32 %v1733_v5, 0.0 }
 0x26c   : > { %2007 = vmatmul.mubr.f32.gmra.mxu1 %v1841_v8  ;;  %v1737_v8 = vpop.f32.mrf.mxu0 }
 0x26d   : > { %2012 = vmatprep.mubr.f32.mxu1 %v9074_v27  ;;  %v1738_v11 = vadd.f32 %v7427_v57, %v1737_v8 }
 0x26f   : > { %v1848_v22 = vmax.f32 %v1738_v11, 0.0 }
 0x270   : > { %2013 = vmatmul.mubr.f32.gmra.mxu1 %v1842_v33  ;;  %v1743_v33 = vadd.f32 %v5587_v50, %v7427_v57 }
 0x271   : > { %2018 = vmatprep.mubr.f32.mxu1 %v9074_v27 }
 0x272   : > { %v1849_v48 = vmax.f32 %v1743_v33, 0.0 }
 0x274   : > { %2019 = vmatmul.mubr.f32.gmra.mxu1 %v1843_v36 }
 0x275   : > { %2024 = vmatprep.mubr.f32.mxu1 %v9074_v27 }
 0x278   : > { %2025 = vmatmul.mubr.f32.gmra.mxu1 %v1844_v49 }
 0x279   : > { %2030 = vmatprep.mubr.f32.mxu1 %v9074_v27 }
 0x27c   : > { %2031 = vmatmul.mubr.f32.gmra.mxu1 %v1845_v55  ;;  %v5590_v41 = vpop.f32.mrf.mxu0 }
 0x27d   : > { %2036 = vmatprep.mubr.f32.mxu1 %v9074_v27  ;;  %v1753_v35 = vadd.f32 %v5590_v41, %v7427_v57 }
 0x27e   : > { %v1747_v36 = vpop.f32.mrf.mxu0 }
 0x27f   : > { %v1748_v24 = vadd.f32 %v7427_v57, %v1747_v36  ;;  %v1851_v10 = vmax.f32 %v1753_v35, 0.0 }
 0x280   : > { %2037 = vmatmul.mubr.f32.gmra.mxu1 %v1846_v39 }
 0x281   : > { %2042 = vmatprep.mubr.f32.mxu1 %v9074_v27  ;;  %v1850_v49 = vmax.f32 %v1748_v24, 0.0 }
 0x284   : > { %2043 = vmatmul.mubr.f32.gmra.mxu1 %v1847_v61 }
 0x285   : > { %2048 = vmatprep.mubr.f32.mxu1 %v9074_v27 }
 0x288   : > { %2049 = vmatmul.mubr.f32.gmra.mxu1 %v1848_v22 }
 0x289   : > { %2054 = vmatprep.mubr.f32.mxu1 %v9074_v27 }
 0x28c   : > { %2055 = vmatmul.mubr.f32.gmra.mxu1 %v1849_v48 }
 0x28d   : > { %2060 = vmatprep.mubr.f32.mxu1 %v9074_v27 }
 0x28f   : > { %v5593_v29 = vpop.f32.mrf.mxu1 }
 0x290   : > { %2061 = vmatmul.mubr.f32.gmra.mxu1 %v1850_v49  ;;  %v1763_v5 = vadd.f32 %v5593_v29, %v7427_v57 }
 0x291   : > { %v1757_v55 = vpop.f32.mrf.mxu1  ;;  %2066 = vmatprep.mubr.f32.mxu1 %v9074_v27 }
 0x292   : > { %v1758_v50 = vadd.f32 %v7427_v57, %v1757_v55  ;;  %v1853_v8 = vmax.f32 %v1763_v5, 0.0 }
 0x294   : > { %2067 = vmatmul.mubr.f32.gmra.mxu1 %v1851_v10  ;;  %v1852_v39 = vmax.f32 %v1758_v50, 0.0 }
 0x295   : > { %2072 = vmatprep.mubr.f32.mxu1 %v9074_v27 }
 0x298   : > { %2073 = vmatmul.mubr.f32.gmra.mxu1 %v1852_v39 }
 0x299   : > { %2078 = vmatprep.mubr.f32.mxu1 %v9074_v27 }
 0x29c   : > { %2079 = vmatmul.mubr.f32.gmra.mxu1 %v1853_v8 }
 0x29d   : > { %2084 = vmatprep.mubr.f32.mxu1 %v9074_v27 }
 0x2a2   : > { %v5596_v61 = vpop.f32.mrf.mxu1 }
 0x2a3   : > { %v1773_v33 = vadd.f32 %v5596_v61, %v7427_v57 }
 0x2a4   : > { %v1767_v11 = vpop.f32.mrf.mxu1 }
 0x2a5   : > { %v1768_v41 = vadd.f32 %v7427_v57, %v1767_v11  ;;  %v1855_v36 = vmax.f32 %v1773_v33, 0.0 }
 0x2a7   : > { %v1854_v22 = vmax.f32 %v1768_v41, 0.0 }
 0x2a9   : > { %2085 = vmatmul.mubr.f32.gmra.mxu1 %v1854_v22 }
 0x2aa   : > { %2090 = vmatprep.mubr.f32.mxu1 %v9074_v27 }
 0x2ad   : > { %2091 = vmatmul.mubr.f32.gmra.mxu1 %v1855_v36 }
 0x2ae   : > { %2096 = vmatprep.mubr.f32.mxu1 %v9074_v27 }
 0x2b5   : > { %v5599_v48 = vpop.f32.mrf.mxu1 }
 0x2b6   : > { %v1783_v49 = vadd.f32 %v5599_v48, %v7427_v57 }
 0x2b7   : > { %v1777_v24 = vpop.f32.mrf.mxu1 }
 0x2b8   : > { %v1778_v35 = vadd.f32 %v7427_v57, %v1777_v24  ;;  %v1857_v55 = vmax.f32 %v1783_v49, 0.0 }
 0x2ba   : > { %v1856_v29 = vmax.f32 %v1778_v35, 0.0 }
 0x2bc   : > { %2097 = vmatmul.mubr.f32.gmra.mxu1 %v1856_v29 }
 0x2bd   : > { %2102 = vmatprep.mubr.f32.mxu1 %v9074_v27 }
 0x2c0   : > { %2103 = vmatmul.mubr.f32.gmra.mxu1 %v1857_v55 }
 0x2c1   : > { %2108 = vmatprep.mubr.f32.mxu1 %v9074_v27 }
 0x2c8   : > { %v5602_v10 = vpop.f32.mrf.mxu1 }
 0x2c9   : > { %v1793_v39 = vadd.f32 %v5602_v10, %v7427_v57 }
 0x2ca   : > { %v1787_v50 = vpop.f32.mrf.mxu1 }
 0x2cb   : > { %v1788_v5 = vadd.f32 %v7427_v57, %v1787_v50  ;;  %v1859_v61 = vmax.f32 %v1793_v39, 0.0 }
 0x2cd   : > { %v1858_v8 = vmax.f32 %v1788_v5, 0.0 }
 0x2cf   : > { %2109 = vmatmul.mubr.f32.gmra.mxu1 %v1858_v8 }
 0x2d0   : > { %2114 = vmatprep.mubr.f32.mxu1 %v9074_v27 }
 0x2d3   : > { %2115 = vmatmul.mubr.f32.gmra.mxu1 %v1859_v61 }
 0x2d4   : > { %2120 = vmatprep.mubr.f32.mxu1 %v9074_v27 }
 0x2db   : > { %v5605_v11 = vpop.f32.mrf.mxu1 }
 0x2dc   : > { %v1803_v22 = vadd.f32 %v5605_v11, %v7427_v57 }
 0x2dd   : > { %v1797_v41 = vpop.f32.mrf.mxu1 }
 0x2de   : > { %v1798_v33 = vadd.f32 %v7427_v57, %v1797_v41  ;;  %v1861_v48 = vmax.f32 %v1803_v22, 0.0  ;;  %v1902_v41 = vlaneseq }
 0x2e0   : > { %v1860_v36 = vmax.f32 %v1798_v33, 0.0  ;;  %v7492_v33 = vshrl.u32 %v1902_v41, 7 }
 0x2e2   : > { %2121 = vmatmul.mubr.f32.gmra.mxu1 %v1860_v36  ;;  %v7495_v22 = vsub.s32 0, %v7492_v33 }
 0x2e3   : > { %2126 = vmatprep.mubr.f32.mxu1 %v9074_v27 }
 0x2e4   : > { %9273 = vst [vmem:[#allocation114_spill] sm:$0xff] %v7495_v22 }
 0x2e6   : > { %2127 = vmatmul.mubr.f32.gmra.mxu1 %v1861_v48  ;;  %v1900_v48 = vld [vmem:[#allocation3 + $0x2] sm:$0x3] }
 0x2e7   : > { %2132 = vmatprep.mubr.f32.mxu1 %v9074_v27 }
 0x2ee   : > { %v5608_v24 = vpop.f32.mrf.mxu1 }
 0x2ef   : > { %v1813_v29 = vadd.f32 %v5608_v24, %v7427_v57 }
 0x2f0   : > { %v1807_v35 = vpop.f32.mrf.mxu1 }
 0x2f1   : > { %v1808_v49 = vadd.f32 %v7427_v57, %v1807_v35  ;;  %v1863_v10 = vmax.f32 %v1813_v29, 0.0 }
 0x2f3   : > { %v1862_v55 = vmax.f32 %v1808_v49, 0.0  ;;  %v7499_v49 = vrot.slane %v1900_v48, %v7495_v22 }
 0x2f5   : > { %2133 = vmatmul.mubr.f32.gmra.mxu1 %v1862_v55 }
 0x2f6   : > { %2138 = vmatprep.mubr.f32.mxu1 %v9074_v27 }
 0x2f9   : > { %2139 = vmatmul.mubr.f32.gmra.mxu1 %v1863_v10 }
 0x2fa   : > { %2144 = vmatprep.mubr.f32.mxu1 %v9074_v27 }
 0x301   : > { %v5611_v50 = vpop.f32.mrf.mxu1 }
 0x302   : > { %v1823_v8 = vadd.f32 %v5611_v50, %v7427_v57 }
 0x303   : > { %v1817_v5 = vpop.f32.mrf.mxu1 }
 0x304   : > { %v1818_v39 = vadd.f32 %v7427_v57, %v1817_v5  ;;  %v1865_v11 = vmax.f32 %v1823_v8, 0.0 }
 0x306   : > { %v1864_v61 = vmax.f32 %v1818_v39, 0.0 }
 0x308   : > { %2145 = vmatmul.mubr.f32.gmra.mxu1 %v1864_v61 }
 0x309   : > { %2150 = vmatprep.mubr.f32.mxu1 %v9074_v27 }
 0x30c   : > { %2151 = vmatmul.mubr.f32.gmra.mxu1 %v1865_v11 }
 0x30d   : > { %2156 = vmatprep.mubr.f32.mxu1 %v9074_v27 }
 0x314   : > { %v5614_v36 = vpop.f32.mrf.mxu1 }
 0x315   : > { %v1833_v55 = vadd.f32 %v5614_v36, %v7427_v57 }
 0x316   : > { %v1827_v24 = vpop.f32.mrf.mxu1 }
 0x317   : > { %v1828_v35 = vadd.f32 %v7427_v57, %v1827_v24  ;;  %v1867_v8 = vmax.f32 %v1833_v55, 0.0 }
 0x318   : > { %v1978_v29 = vpop.f32.mrf.mxu1 }
 0x319   : > { %v1866_v10 = vmax.f32 %v1828_v35, 0.0  ;;  %v1979_v5 = vadd.f32 %v1978_v29, %v7499_v49 }
 0x31a   : > { %v7502_v50 = vpop.f32.mrf.mxu1 }
 0x31b   : > { %2157 = vmatmul.mubr.f32.gmra.mxu1 %v1866_v10  ;;  %v2169_v41 = vmax.f32 %v1979_v5, 0.0 }
 0x31c   : > { %v1984_v39 = vpop.f32.mrf.mxu1  ;;  %2162 = vmatprep.mubr.f32.mxu1 %v9074_v27 }
 0x31d   : > { %v1985_v61 = vadd.f32 %v1984_v39, %v7499_v49 }
 0x31e   : > { %v7507_v11 = vpop.f32.mrf.mxu1 }
 0x31f   : > { %v2171_v24 = vmax.f32 %v1985_v61, 0.0  ;;  %2163 = vmatmul.mubr.f32.gmra.mxu1 %v1867_v8 }
 0x320   : > { %v1990_v15 = vpop.f32.mrf.mxu1  ;;  %3557 = vmatprep.mubr.f32.mxu1 %v9074_v27 }
 0x321   : > { %v2233_v57 = vmax.f32 %v2169_v41, %v2171_v24  ;;  %v1991_v36 = vadd.f32 %v1990_v15, %v7499_v49 }
 0x322   : > { %v7511_v35 = vpop.f32.mrf.mxu1 }
 0x323   : > { %v2173_v29 = vmax.f32 %v1991_v36, 0.0 }
 0x324   : > { %v1996_v10 = vpop.f32.mrf.mxu1 }
 0x325   : > { %v2234_v62 = vmax.f32 %v2233_v57, %v2173_v29  ;;  %v1997_v55 = vadd.f32 %v1996_v10, %v7499_v49 }
 0x326   : > { %v7514_v52 = vpop.f32.mrf.mxu1 }
 0x327   : > { %v2175_v39 = vmax.f32 %v1997_v55, 0.0 }
 0x328   : > { %v2002_v19 = vpop.f32.mrf.mxu1 }
 0x329   : > { %v2235_v5 = vmax.f32 %v2234_v62, %v2175_v39  ;;  %v2003_v8 = vadd.f32 %v2002_v19, %v7499_v49 }
 0x32a   : > { %v7517_v61 = vpop.f32.mrf.mxu1 }
 0x32b   : > { %v2177_v27 = vmax.f32 %v2003_v8, 0.0 }
 0x32c   : > { %v2008_v41 = vpop.f32.mrf.mxu1 }
 0x32d   : > { %v2236_v24 = vmax.f32 %v2235_v5, %v2177_v27  ;;  %v2009_v15 = vadd.f32 %v2008_v41, %v7499_v49  ;;  %v9084_v5 = vsub.s32 1, %v7492_v33 }
 0x32e   : > { %v7520_v53 = vpop.f32.mrf.mxu1 }
 0x32f   : > { %v2179_v36 = vmax.f32 %v2009_v15, 0.0 }
 0x330   : > { %v2014_v57 = vpop.f32.mrf.mxu1 }
 0x331   : > { %v2237_v29 = vmax.f32 %v2236_v24, %v2179_v36  ;;  %v2015_v10 = vadd.f32 %v2014_v57, %v7499_v49  ;;  %v7532_v36 = vrot.slane %v1900_v48, %v9084_v5 }
 0x332   : > { %v7523_v31 = vpop.f32.mrf.mxu1 }
 0x333   : > { %v2181_v55 = vmax.f32 %v2015_v10, 0.0  ;;  %v1987_v26 = vadd.f32 %v7507_v11, %v7532_v36  ;;  %v1981_v17 = vadd.f32 %v7502_v50, %v7532_v36  ;;  %v1993_v56 = vadd.f32 %v7511_v35, %v7532_v36 }
 0x334   : > { %v2020_v62 = vpop.f32.mrf.mxu1  ;;  %v1999_v23 = vadd.f32 %v7514_v52, %v7532_v36 }
 0x335   : > { %v2238_v39 = vmax.f32 %v2237_v29, %v2181_v55  ;;  %v2021_v19 = vadd.f32 %v2020_v62, %v7499_v49  ;;  %v2172_v40 = vmax.f32 %v1987_v26, 0.0  ;;  %v2170_v44 = vmax.f32 %v1981_v17, 0.0 }
 0x336   : > { %v7526_v20 = vpop.f32.mrf.mxu1  ;;  %v2174_v35 = vmax.f32 %v1993_v56, 0.0  ;;  %v2176_v7 = vmax.f32 %v1999_v23, 0.0  ;;  %v2011_v17 = vadd.f32 %v7520_v53, %v7532_v36 }
 0x337   : > { %v2183_v8 = vmax.f32 %v2021_v19, 0.0  ;;  %v2246_v26 = vmax.f32 %v2170_v44, %v2172_v40 }
 0x338   : > { %v2026_v27 = vpop.f32.mrf.mxu1 }
 0x339   : > { %v2239_v41 = vmax.f32 %v2238_v39, %v2183_v8  ;;  %v2027_v15 = vadd.f32 %v2026_v27, %v7499_v49 }
 0x33a   : > { %v2028_v45 = vpop.f32.mrf.mxu1 }
 0x33b   : > { %v2185_v10 = vmax.f32 %v2027_v15, 0.0  ;;  %v2029_v28 = vadd.f32 %v2028_v45, %v7532_v36 }
 0x33c   : > { %v2032_v24 = vpop.f32.mrf.mxu1 }
 0x33d   : > { %v2033_v57 = vadd.f32 %v2032_v24, %v7499_v49  ;;  %v2186_v5 = vmax.f32 %v2029_v28, 0.0 }
 0x33e   : > { %v2034_v29 = vpop.f32.mrf.mxu1 }
 0x33f   : > { %v2187_v55 = vmax.f32 %v2033_v57, 0.0  ;;  %v2035_v62 = vadd.f32 %v2034_v29, %v7532_v36 }
 0x340   : > { %v2038_v19 = vpop.f32.mrf.mxu1 }
 0x341   : > { %v2259_v13 = vmax.f32 %v2185_v10, %v2187_v55  ;;  %v2039_v39 = vadd.f32 %v2038_v19, %v7499_v49  ;;  %v2188_v27 = vmax.f32 %v2035_v62, 0.0 }
 0x342   : > { %v2040_v8 = vpop.f32.mrf.mxu1 }
 0x343   : > { %v2041_v60 = vadd.f32 %v2040_v8, %v7532_v36  ;;  %v2189_v2 = vmax.f32 %v2039_v39, 0.0  ;;  %v2272_v63 = vmax.f32 %v2186_v5, %v2188_v27 }
 0x344   : > { %v2044_v48 = vpop.f32.mrf.mxu1 }
 0x345   : > { %v2190_v16 = vmax.f32 %v2041_v60, 0.0  ;;  %v2045_v24 = vadd.f32 %v2044_v48, %v7499_v49  ;;  %v2260_v15 = vmax.f32 %v2259_v13, %v2189_v2 }
 0x346   : > { %v2046_v57 = vpop.f32.mrf.mxu1 }
 0x347   : > { %v2191_v29 = vmax.f32 %v2045_v24, 0.0  ;;  %v2047_v58 = vadd.f32 %v2046_v57, %v7532_v36  ;;  %v2273_v10 = vmax.f32 %v2272_v63, %v2190_v16  ;;  %v2240_v16 = vrot.slane %v2239_v41, 4 }
 0x348   : > { %v2050_v45 = vpop.f32.mrf.mxu1 }
 0x349   : > { %v2261_v55 = vmax.f32 %v2260_v15, %v2191_v29  ;;  %v2192_v19 = vmax.f32 %v2047_v58, 0.0  ;;  %v2051_v62 = vadd.f32 %v2050_v45, %v7499_v49 }
 0x34a   : > { %v2052_v46 = vpop.f32.mrf.mxu1 }
 0x34b   : > { %v2274_v8 = vmax.f32 %v2273_v10, %v2192_v19  ;;  %v2193_v39 = vmax.f32 %v2051_v62, 0.0  ;;  %v2053_v28 = vadd.f32 %v2052_v46, %v7532_v36  ;;  %v2352_v19 = vld [vmem:[%s8987_s5 + $0x78] sm:$0xff] }
 0x34c   : > { %v2056_v60 = vpop.f32.mrf.mxu1 }
 0x34d   : > { %v2262_v42 = vmax.f32 %v2261_v55, %v2193_v39  ;;  %v2194_v48 = vmax.f32 %v2053_v28, 0.0  ;;  %v2057_v2 = vadd.f32 %v2056_v60, %v7499_v49  ;;  %v2368_v55 = vld [vmem:[%s8987_s5 + $0xf8] sm:$0xff]  ;;  %v2241_v39 = vmax.f32 %v2239_v41, %v2240_v16  ;;  %v2365_v16 = vld [vmem:[%s8987_s5 + $0xe0] sm:$0xff] }
 0x34e   : > { %v2058_v13 = vpop.f32.mrf.mxu1  ;;  %5306 = vmatprep.subr.mxu0 %v2368_v55 }
 0x34f   : > { %v2275_v5 = vmax.f32 %v2274_v8, %v2194_v48  ;;  %v2195_v27 = vmax.f32 %v2057_v2, 0.0  ;;  %v2059_v24 = vadd.f32 %v2058_v13, %v7532_v36  ;;  %v2351_v8 = vld [vmem:[%s8987_s5 + $0x70] sm:$0xff]  ;;  %5307 = vmatpush3.msra.mxu0 %v2352_v19  ;;  %v2366_v2 = vld [vmem:[%s8987_s5 + $0xe8] sm:$0xff]  ;;  %v2242_v41 = vrot.slane %v2241_v39, 2 }
 0x350   : > { %v2062_v63 = vpop.f32.mrf.mxu1  ;;  %v2350_v13 = vld [vmem:[%s8987_s5 + $0x68] sm:$0xff] }
 0x351   : > { %v2263_v58 = vmax.f32 %v2262_v42, %v2195_v27  ;;  %v2196_v15 = vmax.f32 %v2059_v24, 0.0  ;;  %v2063_v57 = vadd.f32 %v2062_v63, %v7499_v49  ;;  %v2367_v42 = vld [vmem:[%s8987_s5 + $0xf0] sm:$0xff] }
 0x352   : > { %v2064_v29 = vpop.f32.mrf.mxu1  ;;  %5308 = vmatprep.subr.mxu0 %v2367_v42  ;;  %v2347_v42 = vld [vmem:[%s8987_s5 + $0x50] sm:$0xff] }
 0x353   : > { %v2276_v45 = vmax.f32 %v2275_v5, %v2196_v15  ;;  %v2197_v10 = vmax.f32 %v2063_v57, 0.0  ;;  %v2065_v46 = vadd.f32 %v2064_v29, %v7532_v36  ;;  %5309 = vmatpush3.msra.mxu0 %v2351_v8  ;;  %v2349_v57 = vld [vmem:[%s8987_s5 + $0x60] sm:$0xff]  ;;  %v2364_v29 = vld [vmem:[%s8987_s5 + $0xd8] sm:$0xff] }
 0x354   : > { %v2068_v62 = vpop.f32.mrf.mxu1  ;;  %5310 = vmatprep.subr.mxu0 %v2366_v2  ;;  %v2345_v2 = vld [vmem:[%s8987_s5 + $0x40] sm:$0xff] }
 0x355   : > { %v2264_v28 = vmax.f32 %v2263_v58, %v2197_v10  ;;  %v2198_v60 = vmax.f32 %v2065_v46, 0.0  ;;  %v2069_v48 = vadd.f32 %v2068_v62, %v7499_v49  ;;  %5311 = vmatpush3.msra.mxu0 %v2350_v13  ;;  %v2243_v58 = vmax.f32 %v2241_v39, %v2242_v41  ;;  %v2348_v10 = vld [vmem:[%s8987_s5 + $0x58] sm:$0xff]  ;;  %v2363_v46 = vld [vmem:[%s8987_s5 + $0xd0] sm:$0xff]  ;;  %v2362_v62 = vld [vmem:[%s8987_s5 + $0xc8] sm:$0xff] }
 0x356   : > { %5312 = vmatprep.subr.mxu0 %v2365_v16  ;;  %v2346_v39 = vld [vmem:[%s8987_s5 + $0x48] sm:$0xff]  ;;  %v2360_v13 = vld [vmem:[%s8987_s5 + $0xb8] sm:$0xff] }
 0x357   : > { %v7566_v5 = vmax.f32 %v2276_v45, %v2198_v60  ;;  %v2199_v27 = vmax.f32 %v2069_v48, 0.0  ;;  %5313 = vmatpush3.msra.mxu0 %v2349_v57  ;;  %v2244_v55 = vrot.slane %v2243_v58, 1  ;;  %v2358_v16 = vld [vmem:[%s8987_s5 + $0xa8] sm:$0xff]  ;;  %v2341_v57 = vld [vmem:[%s8987_s5 + $0x20] sm:$0xff] }
 0x358   : > { %5314 = vmatprep.subr.mxu0 %v2364_v29  ;;  %v2356_v29 = vld [vmem:[%s8987_s5 + $0x98] sm:$0xff] }
 0x359   : > { %v2265_v24 = vmax.f32 %v2264_v28, %v2199_v27  ;;  %5315 = vmatpush3.msra.mxu0 %v2348_v10  ;;  %v2361_v28 = vld [vmem:[%s8987_s5 + $0xc0] sm:$0xff]  ;;  %v2245_v60 = vmax.f32 %v2243_v58, %v2244_v55  ;;  %v2344_v27 = vld [vmem:[%s8987_s5 + $0x38] sm:$0xff]  ;;  %v2342_v58 = vld [vmem:[%s8987_s5 + $0x28] sm:$0xff] }
 0x35a   : > { %5316 = vmatprep.subr.mxu0 %v2363_v46  ;;  %v2355_v10 = vld [vmem:[%s8987_s5 + $0x90] sm:$0xff]  ;;  %v2354_v55 = vld [vmem:[%s8987_s5 + $0x88] sm:$0xff] }
 0x35b   : > { %v2266_v63 = vrot.slane %v2265_v24, 4  ;;  %5317 = vmatpush3.msra.mxu0 %v2347_v42  ;;  %v2339_v46 = vld [vmem:[%s8987_s5 + $0x10] sm:$0xff]  ;;  %v2353_v42 = vld [vmem:[%s8987_s5 + $0x80] sm:$0xff] }
 0x35c   : > { %5318 = vmatprep.subr.mxu0 %v2362_v62  ;;  %v7646_v62 = vpop.f32.mrf.mxu1 }
 0x35d   : > { %v2267_v15 = vmax.f32 %v2265_v24, %v2266_v63  ;;  %5319 = vmatpush3.msra.mxu0 %v2346_v39  ;;  %v2359_v24 = vld [vmem:[%s8987_s5 + $0xb0] sm:$0xff] }
 0x35e   : > { %5320 = vmatprep.subr.mxu0 %v2361_v28  ;;  %v2343_v63 = vld [vmem:[%s8987_s5 + $0x30] sm:$0xff]  ;;  %v2074_v39 = vpop.f32.mrf.mxu1  ;;  %v9274_v28 = vmov 0.0  }
 0x35f   : > { %v2268_v45 = vrot.slane %v2267_v15, 2  ;;  %5321 = vmatpush3.msra.mxu0 %v2345_v2  ;;  %v2075_v6 = vadd.f32 %v2074_v39, %v7499_v49 }
 0x360   : > { %5322 = vmatprep.subr.mxu0 %v2360_v13 }
 0x361   : > { %v2269_v19 = vmax.f32 %v2267_v15, %v2268_v45  ;;  %5323 = vmatpush3.msra.mxu0 %v2344_v27  ;;  %v2357_v15 = vld [vmem:[%s8987_s5 + $0xa0] sm:$0xff]  ;;  %v2340_v45 = vld [vmem:[%s8987_s5 + $0x18] sm:$0xff] }
 0x362   : > { %5324 = vmatprep.subr.mxu0 %v2359_v24 }
 0x363   : > { %v2270_v8 = vrot.slane %v2269_v19, 1  ;;  %5325 = vmatpush3.msra.mxu0 %v2343_v63 }
 0x364   : > { %5326 = vmatprep.subr.mxu0 %v2358_v16 }
 0x365   : > { %v2271_v48 = vmax.f32 %v2269_v19, %v2270_v8  ;;  %5327 = vmatpush3.msra.mxu0 %v2342_v58  ;;  %v2338_v19 = vld [vmem:[%s8987_s5 + $0x8] sm:$0xff]  ;;  %v2337_v8 = vld [vmem:[%s8987_s5] sm:$0xff] }
 0x366   : > { %5328 = vmatprep.subr.mxu0 %v2357_v15 }
 0x367   : > { %v7605_v41 = vsel %vm2384_vm1, %v2271_v48, %v2245_v60  ;;  %5329 = vmatpush3.msra.mxu0 %v2341_v57  ;;  %v2076_v60 = vpop.f32.mrf.mxu1 }
 0x368   : > { %5330 = vmatprep.subr.mxu0 %v2356_v29  ;;  %v2077_v11 = vadd.f32 %v2076_v60, %v7532_v36  ;;  %v2201_v60 = vmax.f32 %v2075_v6, 0.0  ;;  %v2180_v6 = vmax.f32 %v2011_v17, 0.0 }
 0x369   : > { %5331 = vmatpush3.msra.mxu0 %v2340_v45  ;;  %v2080_v48 = vpop.f32.mrf.mxu1 }
 0x36a   : > { %5332 = vmatprep.subr.mxu0 %v2355_v10  ;;  %v2081_v12 = vadd.f32 %v2080_v48, %v7499_v49  ;;  %v2005_v48 = vadd.f32 %v7517_v61, %v7532_v36 }
 0x36b   : > { %5333 = vmatpush3.msra.mxu0 %v2339_v46  ;;  %v2082_v2 = vpop.f32.mrf.mxu1 }
 0x36c   : > { %5334 = vmatprep.subr.mxu0 %v2354_v55  ;;  %v2083_v43 = vadd.f32 %v2082_v2, %v7532_v36  ;;  %v2203_v2 = vmax.f32 %v2081_v12, 0.0  ;;  %v2178_v61 = vmax.f32 %v2005_v48, 0.0 }
 0x36d   : > { %5335 = vmatpush3.msra.mxu0 %v2338_v19  ;;  %v2086_v13 = vpop.f32.mrf.mxu1 }
 0x36e   : > { %5336 = vmatprep.subr.mxu0 %v2353_v42  ;;  %v2087_v50 = vadd.f32 %v2086_v13, %v7499_v49  ;;  %v2204_v34 = vmax.f32 %v2083_v43, 0.0  ;;  %v2202_v13 = vmax.f32 %v2077_v11, 0.0  ;;  %v2247_v43 = vmax.f32 %v2246_v26, %v2174_v35 }
 0x36f   : > { %5337 = vmatpush3.msra.mxu0 %v2337_v8  ;;  %v2088_v27 = vpop.f32.mrf.mxu1  ;;  %v2285_v59 = vmax.f32 %v2201_v60, %v2203_v2  ;;  %v2023_v2 = vadd.f32 %v7526_v20, %v7532_v36 }
 0x370   : > { %5615 = vmatprep.subr.mxu0 %v9274_v28  ;;  %v2089_v4 = vadd.f32 %v2088_v27, %v7532_v36  ;;  %v2205_v27 = vmax.f32 %v2087_v50, 0.0  ;;  %v2298_v44 = vmax.f32 %v2202_v13, %v2204_v34  ;;  %v2248_v53 = vmax.f32 %v2247_v43, %v2176_v7 }
 0x371   : > { %v2092_v24 = vpop.f32.mrf.mxu1 }
 0x372   : > { %v2093_v52 = vadd.f32 %v2092_v24, %v7499_v49  ;;  %v2206_v56 = vmax.f32 %v2089_v4, 0.0  ;;  %v2017_v4 = vadd.f32 %v7523_v31, %v7532_v36  ;;  %v2286_v11 = vmax.f32 %v2285_v59, %v2205_v27 }
 0x373   : > { %v2094_v63 = vpop.f32.mrf.mxu1  ;;  %v2249_v48 = vmax.f32 %v2248_v53, %v2178_v61 }
 0x374   : > { %v2095_v39 = vadd.f32 %v2094_v63, %v7532_v36  ;;  %v2207_v24 = vmax.f32 %v2093_v52, 0.0  ;;  %v2299_v50 = vmax.f32 %v2298_v44, %v2206_v56  ;;  %v2182_v17 = vmax.f32 %v2017_v4, 0.0 }
 0x376   : > { %v2208_v30 = vmax.f32 %v2095_v39, 0.0  ;;  %v2250_v39 = vmax.f32 %v2249_v48, %v2180_v6 }
 0x378   : > { %v2300_v26 = vmax.f32 %v2299_v50, %v2208_v30 }
 0x37c   : > { %v2098_v16 = vpop.f32.mrf.mxu1 }
 0x37d   : > { %v2099_v38 = vadd.f32 %v2098_v16, %v7499_v49  ;;  %v2071_v16 = vadd.f32 %v7646_v62, %v7532_v36 }
 0x37e   : > { %v2100_v58 = vpop.f32.mrf.mxu1 }
 0x37f   : > { %v2101_v12 = vadd.f32 %v2100_v58, %v7532_v36  ;;  %v2209_v35 = vmax.f32 %v2099_v38, 0.0  ;;  %v2200_v60 = vmax.f32 %v2071_v16, 0.0 }
 0x380   : > { %v2104_v15 = vpop.f32.mrf.mxu1 }
 0x381   : > { %v2105_v23 = vadd.f32 %v2104_v15, %v7499_v49  ;;  %v2210_v34 = vmax.f32 %v2101_v12, 0.0 }
 0x382   : > { %v2106_v57 = vpop.f32.mrf.mxu1 }
 0x383   : > { %v2107_v63 = vadd.f32 %v2106_v57, %v7532_v36  ;;  %v2287_v57 = vmax.f32 %v2286_v11, %v2207_v24  ;;  %v2211_v52 = vmax.f32 %v2105_v23, 0.0  ;;  %v2301_v20 = vmax.f32 %v2300_v26, %v2210_v34 }
 0x385   : > { %v2212_v31 = vmax.f32 %v2107_v63, 0.0  ;;  %v2288_v13 = vmax.f32 %v2287_v57, %v2209_v35  ;;  %v2251_v63 = vmax.f32 %v2250_v39, %v2182_v17 }
 0x387   : > { %v2289_v12 = vmax.f32 %v2288_v13, %v2211_v52  ;;  %v2302_v43 = vmax.f32 %v2301_v20, %v2212_v31 }
 0x38f   : > { %v2110_v29 = vpop.f32.mrf.mxu1 }
 0x390   : > { %v2111_v15 = vadd.f32 %v2110_v29, %v7499_v49 }
 0x391   : > { %v2112_v45 = vpop.f32.mrf.mxu1 }
 0x392   : > { %v2113_v7 = vadd.f32 %v2112_v45, %v7532_v36  ;;  %v2184_v45 = vmax.f32 %v2023_v2, 0.0  ;;  %v2213_v27 = vmax.f32 %v2111_v15, 0.0 }
 0x393   : > { %v7652_v10 = vpop.f32.mrf.mxu1 }
 0x394   : > { %v2117_v59 = vadd.f32 %v7652_v10, %v7499_v49  ;;  %v2214_v30 = vmax.f32 %v2113_v7, 0.0  ;;  %v2252_v11 = vmax.f32 %v2251_v63, %v2184_v45 }
 0x395   : > { %v7654_v46 = vpop.f32.mrf.mxu1 }
 0x396   : > { %v2119_v38 = vadd.f32 %v7654_v46, %v7532_v36  ;;  %v2215_v61 = vmax.f32 %v2117_v59, 0.0  ;;  %v2303_v4 = vmax.f32 %v2302_v43, %v2214_v30  ;;  %v2253_v59 = vrot.slane %v2252_v11, 4 }
 0x398   : > { %v2216_v44 = vmax.f32 %v2119_v38, 0.0 }
 0x3a2   : > { %v7656_v55 = vpop.f32.mrf.mxu1 }
 0x3a3   : > { %v2123_v10 = vadd.f32 %v7656_v55, %v7499_v49  ;;  %v2290_v55 = vmax.f32 %v2289_v12, %v2213_v27 }
 0x3a4   : > { %v7658_v19 = vpop.f32.mrf.mxu1 }
 0x3a5   : > { %v2125_v24 = vadd.f32 %v7658_v19, %v7532_v36  ;;  %v2217_v50 = vmax.f32 %v2123_v10, 0.0  ;;  %v2291_v34 = vmax.f32 %v2290_v55, %v2215_v61  ;;  %v2254_v61 = vmax.f32 %v2252_v11, %v2253_v59 }
 0x3a6   : > { %v7660_v42 = vpop.f32.mrf.mxu1 }
 0x3a7   : > { %v2129_v29 = vadd.f32 %v7660_v42, %v7499_v49  ;;  %v2218_v48 = vmax.f32 %v2125_v24, 0.0 }
 0x3a8   : > { %v7662_v8 = vpop.f32.mrf.mxu1 }
 0x3a9   : > { %v2131_v56 = vadd.f32 %v7662_v8, %v7532_v36  ;;  %v2278_v8 = vmax.f32 %v7566_v5, %v2200_v60  ;;  %v2219_v53 = vmax.f32 %v2129_v29, 0.0 }
 0x3ab   : > { %v2220_v16 = vmax.f32 %v2131_v56, 0.0  ;;  %v2311_v5 = vmax.f32 %v2217_v50, %v2219_v53  ;;  %v2279_v26 = vrot.slane %v2278_v8, 4 }
 0x3ad   : > { %v2324_v52 = vmax.f32 %v2218_v48, %v2220_v16 }
 0x3b5   : > { %v7664_v54 = vpop.f32.mrf.mxu1 }
 0x3b6   : > { %v2135_v46 = vadd.f32 %v7664_v54, %v7499_v49 }
 0x3b7   : > { %v7674_v47 = vpop.f32.mrf.mxu1 }
 0x3b8   : > { %v2137_v42 = vadd.f32 %v7674_v47, %v7532_v36  ;;  %v2221_v35 = vmax.f32 %v2135_v46, 0.0  ;;  %v2304_v47 = vmax.f32 %v2303_v4, %v2216_v44 }
 0x3b9   : > { %v7684_v9 = vpop.f32.mrf.mxu1 }
 0x3ba   : > { %v2141_v6 = vadd.f32 %v7684_v9, %v7499_v49  ;;  %v2222_v2 = vmax.f32 %v2137_v42, 0.0  ;;  %v2305_v38 = vrot.slane %v2304_v47, 4 }
 0x3bb   : > { %v2142_v40 = vpop.f32.mrf.mxu1 }
 0x3bc   : > { %v2143_v54 = vadd.f32 %v2142_v40, %v7532_v36  ;;  %v2223_v7 = vmax.f32 %v2141_v6, 0.0  ;;  %v2312_v40 = vmax.f32 %v2311_v5, %v2221_v35  ;;  %v2325_v60 = vmax.f32 %v2324_v52, %v2222_v2 }
 0x3bd   : > { %v2306_v24 = vmax.f32 %v2304_v47, %v2305_v38  ;;  %v2255_v35 = vrot.slane %v2254_v61, 2 }
 0x3be   : > { %v2224_v31 = vmax.f32 %v2143_v54, 0.0  ;;  %v2313_v20 = vmax.f32 %v2312_v40, %v2223_v7 }
 0x3c0   : > { %v2326_v30 = vmax.f32 %v2325_v60, %v2224_v31 }
 0x3c8   : > { %v2146_v58 = vpop.f32.mrf.mxu1 }
 0x3c9   : > { %v2147_v19 = vadd.f32 %v2146_v58, %v7499_v49  ;;  %v2292_v58 = vrot.slane %v2291_v34, 4 }
 0x3ca   : > { %v2148_v62 = vpop.f32.mrf.mxu1 }
 0x3cb   : > { %v2149_v57 = vadd.f32 %v2148_v62, %v7532_v36  ;;  %v2225_v39 = vmax.f32 %v2147_v19, 0.0  ;;  %v2280_v62 = vmax.f32 %v2278_v8, %v2279_v26  ;;  %v2293_v44 = vmax.f32 %v2291_v34, %v2292_v58 }
 0x3cc   : > { %v2152_v23 = vpop.f32.mrf.mxu1  ;;  %v2307_v19 = vrot.slane %v2306_v24, 2 }
 0x3cd   : > { %v2153_v9 = vadd.f32 %v2152_v23, %v7499_v49  ;;  %v2226_v29 = vmax.f32 %v2149_v57, 0.0  ;;  %v2314_v12 = vmax.f32 %v2313_v20, %v2225_v39  ;;  %v2281_v55 = vrot.slane %v2280_v62, 2 }
 0x3ce   : > { %v2154_v15 = vpop.f32.mrf.mxu1  ;;  %v2294_v48 = vrot.slane %v2293_v44, 2  ;;  %v2308_v7 = vmax.f32 %v2306_v24, %v2307_v19  ;;  %v2256_v57 = vmax.f32 %v2254_v61, %v2255_v35  ;;  %v2479_v24 = vld [vmem:[%s8988_s6 + $0x68] sm:$0xff]  ;;  %v2466_v35 = vld [vmem:[%s8988_s6] sm:$0xff] }
 0x3cf   : > { %v2155_v17 = vadd.f32 %v2154_v15, %v7532_v36  ;;  %v2227_v45 = vmax.f32 %v2153_v9, 0.0  ;;  %v2327_v23 = vmax.f32 %v2326_v30, %v2226_v29  ;;  %v2282_v47 = vmax.f32 %v2280_v62, %v2281_v55  ;;  %v2472_v55 = vld [vmem:[%s8988_s6 + $0x30] sm:$0xff] }
 0x3d0   : > { %v2295_v9 = vmax.f32 %v2293_v44, %v2294_v48  ;;  %v2309_v39 = vrot.slane %v2308_v7, 1  ;;  %v2480_v44 = vld [vmem:[%s8988_s6 + $0x70] sm:$0xff]  ;;  %v5179_v48 = vld [vmem:[#allocation3 + $0x4] ss:$0 sm:$0xff] }
 0x3d1   : > { %v2228_v43 = vmax.f32 %v2155_v17, 0.0  ;;  %v2315_v63 = vmax.f32 %v2314_v12, %v2227_v45  ;;  %v2283_v52 = vrot.slane %v2282_v47, 1  ;;  %v2257_v17 = vrot.slane %v2256_v57, 1 }
 0x3d2   : > { %v2310_v20 = vmax.f32 %v2308_v7, %v2309_v39  ;;  %v2565_v7 = vld [vmem:[%s8989_s7 + $0x28] sm:$0xff] }
 0x3d3   : > { %v2328_v16 = vmax.f32 %v2327_v23, %v2228_v43  ;;  %v2284_v38 = vmax.f32 %v2282_v47, %v2283_v52  ;;  %v2258_v29 = vmax.f32 %v2256_v57, %v2257_v17  ;;  %v2476_v23 = vld [vmem:[%s8988_s6 + $0x50] sm:$0xff]  ;;  %v2564_v57 = vld [vmem:[%s8989_s7 + $0x20] sm:$0xff] }
 0x3d4   : > { %v2560_v52 = vld [vmem:[%s8989_s7] sm:$0xff] }
 0x3db   : > { %v2158_v13 = vpop.f32.mrf.mxu1 }
 0x3dc   : > { %v2159_v27 = vadd.f32 %v2158_v13, %v7499_v49 }
 0x3dd   : > { %v2160_v56 = vpop.f32.mrf.mxu1 }
 0x3de   : > { %v2229_v10 = vmax.f32 %v2159_v27, 0.0  ;;  %v2161_v46 = vadd.f32 %v2160_v56, %v7532_v36  ;;  %v2390_v56 = vsel %vm2384_vm1, %v2284_v38, %v2258_v29  ;;  %v6405_v29 = vmov 8  }
 0x3df   : > { %v2164_v42 = vpop.f32.mrf.mxu1  ;;  %v2391_v12 = vsel %vm2386_vm2, %v2310_v20, %v2390_v56  ;;  %v6404_v20 = vmov 5   ;;  %v3086_v56 = vld [vmem:[#allocation11 + $0x28] sm:$0xff] }
 0x3e0   : > { %v2230_v53 = vmax.f32 %v2161_v46, 0.0  ;;  %v2165_v6 = vadd.f32 %v2164_v42, %v7499_v49  ;;  %v2316_v8 = vmax.f32 %v2315_v63, %v2229_v10  ;;  %v2481_v46 = vld [vmem:[%s8988_s6 + $0x78] sm:$0xff]  ;;  %v2475_v63 = vld [vmem:[%s8988_s6 + $0x48] sm:$0xff] }
 0x3e1   : > { %v2166_v4 = vpop.f32.mrf.mxu1  ;;  %v2477_v42 = vld [vmem:[%s8988_s6 + $0x58] sm:$0xff] }
 0x3e2   : > { %v2231_v54 = vmax.f32 %v2165_v6, 0.0  ;;  %v2167_v50 = vadd.f32 %v2166_v4, %v7532_v36  ;;  %v2329_v2 = vmax.f32 %v2328_v16, %v2230_v53  ;;  %v2296_v36 = vrot.slane %v2295_v9, 1  ;;  %v2474_v53 = vld [vmem:[%s8988_s6 + $0x40] sm:$0xff]  ;;  %v2473_v6 = vld [vmem:[%s8988_s6 + $0x38] sm:$0xff]  ;;  %v2471_v4 = vld [vmem:[%s8988_s6 + $0x28] sm:$0xff] }
 0x3e3   : > { %v2470_v16 = vld [vmem:[%s8988_s6 + $0x20] sm:$0xff] }
 0x3e4   : > { %v2317_v11 = vmax.f32 %v2316_v8, %v2231_v54  ;;  %v2232_v34 = vmax.f32 %v2167_v50, 0.0  ;;  %v2297_v45 = vmax.f32 %v2295_v9, %v2296_v36  ;;  %v2469_v8 = vld [vmem:[%s8988_s6 + $0x18] sm:$0xff]  ;;  %v2468_v54 = vld [vmem:[%s8988_s6 + $0x10] sm:$0xff]  ;;  %v2467_v50 = vld [vmem:[%s8988_s6 + $0x8] sm:$0xff] }
 0x3e5   : > { %v2563_v9 = vld [vmem:[%s8989_s7 + $0x18] sm:$0xff] }
 0x3e6   : > { %v2318_v15 = vrot.slane %v2317_v11, 4  ;;  %v2330_v5 = vmax.f32 %v2329_v2, %v2232_v34  ;;  %v2387_v10 = vsel %vm2386_vm2, %v2297_v45, %v7605_v41  ;;  %v2478_v41 = vld [vmem:[%s8988_s6 + $0x60] sm:$0xff]  ;;  %v6406_v45 = vmov 4  }
 0x3e8   : > { %v2319_v49 = vmax.f32 %v2317_v11, %v2318_v15  ;;  %v2331_v26 = vrot.slane %v2330_v5, 4  ;;  %v2567_v15 = vld [vmem:[%s8989_s7 + $0x38] sm:$0xff] }
 0x3ea   : > { %v2320_v31 = vrot.slane %v2319_v49, 2  ;;  %v2332_v40 = vmax.f32 %v2330_v5, %v2331_v26  ;;  %v2566_v5 = vld [vmem:[%s8989_s7 + $0x30] sm:$0xff]  ;;  %v2561_v26 = vld [vmem:[%s8989_s7 + $0x8] sm:$0xff] }
 0x3ec   : > { %v2321_v59 = vmax.f32 %v2319_v49, %v2320_v31  ;;  %v2333_v58 = vrot.slane %v2332_v40, 2  ;;  %v2562_v49 = vld [vmem:[%s8989_s7 + $0x10] sm:$0xff]  ;;  %v5180_v31 = vld [vmem:[#allocation3 + $0x5] ss:$0 sm:$0xff] }
 0x3ee   : > { %v2322_v60 = vrot.slane %v2321_v59, 1  ;;  %v2334_v13 = vmax.f32 %v2332_v40, %v2333_v58  ;;  %v5181_v58 = vld [vmem:[#allocation3 + $0x6] ss:$0 sm:$0xff] }
 0x3f0   : > { %v2335_v27 = vrot.slane %v2334_v13, 1  ;;  %v2323_v62 = vmax.f32 %v2321_v59, %v2322_v60  ;;  %v6403_v59 = vmov 3  }
 0x3f1   : > { %6122 = vset.pattern.permute.xlu0 %v6403_v59  ;;  %v3449_v59 = vld [vmem:[%s8992_s10] sm:$0xff] }
 0x3f2   : > { %v2336_v30 = vmax.f32 %v2334_v13, %v2335_v27  ;;  %v2389_v61 = vsel %vm2388_vm3, %v2323_v62, %v2387_v10  ;;  %v6407_v27 = vmov 6   ;;  %v6408_v62 = vmov 7   ;;  %v3083_v10 = vld [vmem:[#allocation11 + $0x10] sm:$0xff] }
 0x3f4   : > { %v2392_v43 = vsel %vm2388_vm3, %v2336_v30, %v2391_v12  ;;  %v3088_v30 = vld [vmem:[#allocation11 + $0x38] sm:$0xff] }
 0x3f5   : > { %2459 = vmatprep.mubr.f32.mxu0 %v2392_v43  ;;  %v3084_v43 = vld [vmem:[#allocation11 + $0x18] sm:$0xff] }
 0x3f6   : > { %2460 = vmatmul.mubr.f32.vlgmr.msra.gmra.mxu0 %v2389_v61  ;;  %v3081_v61 = vld [vmem:[#allocation11] sm:$0xff] }
 0x3f7   : > { %5616 = vmatpush3.msra.mxu0 %v2481_v46  ;;  %5647 = vmatprep.mubr.msk.f32.mxu0 %vm6402_vm4, %v9274_v28  ;;  %v3082_v46 = vld [vmem:[#allocation11 + $0x8] sm:$0xff] }
 0x3f8   : > { %5617 = vmatprep.subr.mxu0 %v9274_v28 }
 0x3f9   : > { %5618 = vmatpush3.msra.mxu0 %v2480_v44  ;;  %v3480_v44 = vld [vmem:[%s8992_s10 + $0xf8] sm:$0xff] }
 0x3fa   : > { %5619 = vmatprep.subr.mxu0 %v9274_v28  ;;  %3493 = vmatprep.subr.mxu1 %v3480_v44 }
 0x3fb   : > { %5620 = vmatpush3.msra.mxu0 %v2479_v24  ;;  %v3479_v24 = vld [vmem:[%s8992_s10 + $0xf0] sm:$0xff] }
 0x3fc   : > { %5621 = vmatprep.subr.mxu0 %v9274_v28  ;;  %3494 = vmatpush1.msra.mxu1 %v3479_v24 }
 0x3fd   : > { %5622 = vmatpush3.msra.mxu0 %v2478_v41  ;;  %v3478_v41 = vld [vmem:[%s8992_s10 + $0xe8] sm:$0xff] }
 0x3fe   : > { %5623 = vmatprep.subr.mxu0 %v9274_v28  ;;  %3495 = vmatprep.subr.mxu1 %v3478_v41 }
 0x3ff   : > { %5624 = vmatpush3.msra.mxu0 %v2477_v42  ;;  %v3477_v42 = vld [vmem:[%s8992_s10 + $0xe0] sm:$0xff] }
 0x400   : > { %5625 = vmatprep.subr.mxu0 %v9274_v28  ;;  %3496 = vmatpush1.msra.mxu1 %v3477_v42 }
 0x401   : > { %5626 = vmatpush3.msra.mxu0 %v2476_v23  ;;  %v3476_v23 = vld [vmem:[%s8992_s10 + $0xd8] sm:$0xff] }
 0x402   : > { %5627 = vmatprep.subr.mxu0 %v9274_v28  ;;  %3497 = vmatprep.subr.mxu1 %v3476_v23 }
 0x403   : > { %5628 = vmatpush3.msra.mxu0 %v2475_v63  ;;  %v3475_v63 = vld [vmem:[%s8992_s10 + $0xd0] sm:$0xff] }
 0x404   : > { %5629 = vmatprep.subr.mxu0 %v9274_v28  ;;  %3498 = vmatpush1.msra.mxu1 %v3475_v63 }
 0x405   : > { %5630 = vmatpush3.msra.mxu0 %v2474_v53  ;;  %v3474_v53 = vld [vmem:[%s8992_s10 + $0xc8] sm:$0xff] }
 0x406   : > { %5631 = vmatprep.subr.mxu0 %v9274_v28  ;;  %3499 = vmatprep.subr.mxu1 %v3474_v53 }
 0x407   : > { %5632 = vmatpush3.msra.mxu0 %v2473_v6  ;;  %v3473_v6 = vld [vmem:[%s8992_s10 + $0xc0] sm:$0xff] }
 0x408   : > { %5633 = vmatprep.subr.mxu0 %v9274_v28  ;;  %3500 = vmatpush1.msra.mxu1 %v3473_v6 }
 0x409   : > { %5634 = vmatpush3.msra.mxu0 %v2472_v55  ;;  %v3472_v55 = vld [vmem:[%s8992_s10 + $0xb8] sm:$0xff] }
 0x40a   : > { %5635 = vmatprep.subr.mxu0 %v9274_v28  ;;  %3501 = vmatprep.subr.mxu1 %v3472_v55 }
 0x40b   : > { %5636 = vmatpush3.msra.mxu0 %v2471_v4  ;;  %v3471_v4 = vld [vmem:[%s8992_s10 + $0xb0] sm:$0xff] }
 0x40c   : > { %5637 = vmatprep.subr.mxu0 %v9274_v28  ;;  %3502 = vmatpush1.msra.mxu1 %v3471_v4 }
 0x40d   : > { %5638 = vmatpush3.msra.mxu0 %v2470_v16  ;;  %v3470_v16 = vld [vmem:[%s8992_s10 + $0xa8] sm:$0xff] }
 0x40e   : > { %5639 = vmatprep.subr.mxu0 %v9274_v28  ;;  %3503 = vmatprep.subr.mxu1 %v3470_v16 }
 0x40f   : > { %5640 = vmatpush3.msra.mxu0 %v2469_v8  ;;  %v3469_v8 = vld [vmem:[%s8992_s10 + $0xa0] sm:$0xff] }
 0x410   : > { %5641 = vmatprep.subr.mxu0 %v9274_v28  ;;  %3504 = vmatpush1.msra.mxu1 %v3469_v8 }
 0x411   : > { %5642 = vmatpush3.msra.mxu0 %v2468_v54  ;;  %v3468_v54 = vld [vmem:[%s8992_s10 + $0x98] sm:$0xff] }
 0x412   : > { %5643 = vmatprep.subr.mxu0 %v9274_v28  ;;  %3505 = vmatprep.subr.mxu1 %v3468_v54 }
 0x413   : > { %5644 = vmatpush3.msra.mxu0 %v2467_v50  ;;  %v3467_v50 = vld [vmem:[%s8992_s10 + $0x90] sm:$0xff] }
 0x414   : > { %5645 = vmatprep.subr.mxu0 %v9274_v28  ;;  %3506 = vmatpush1.msra.mxu1 %v3467_v50 }
 0x415   : > { %5646 = vmatpush3.msra.mxu0 %v2466_v35  ;;  %v3466_v35 = vld [vmem:[%s8992_s10 + $0x88] sm:$0xff] }
 0x416   : > { %5650 = vmatprep.subr.mxu0 %v9274_v28  ;;  %3507 = vmatprep.subr.mxu1 %v3466_v35 }
 0x4b6   : > { %v5338_v19 = vpop.f32.mrf.mxu0 }
 0x4b8   : > { %v5339_v2 = vpop.f32.mrf.mxu0 }
 0x4b9   : > { %v5340_v11 = vadd.f32 %v5339_v2, %v5338_v19  ;;  %v3465_v19 = vld [vmem:[%s8992_s10 + $0x80] sm:$0xff]  ;;  %v3463_v2 = vld [vmem:[%s8992_s10 + $0x70] sm:$0xff] }
 0x4ba   : > { %3508 = vmatpush1.msra.mxu1 %v3465_v19 }
 0x4bb   : > { %v2462_v34 = vadd.f32 %v5340_v11, %v5179_v48  ;;  %v3464_v48 = vld [vmem:[%s8992_s10 + $0x78] sm:$0xff]  ;;  %v3462_v11 = vld [vmem:[%s8992_s10 + $0x68] sm:$0xff] }
 0x4bc   : > { %3509 = vmatprep.subr.mxu1 %v3464_v48 }
 0x4bd   : > { %v2465_v47 = vmax.f32 %v2462_v34, 0.0  ;;  %v3461_v34 = vld [vmem:[%s8992_s10 + $0x60] sm:$0xff]  ;;  %3510 = vmatpush1.msra.mxu1 %v3463_v2 }
 0x4be   : > { %3511 = vmatprep.subr.mxu1 %v3462_v11 }
 0x4bf   : > { %5648 = vmatmul.mubr.f32.vlgmr.msra.gmra.mxu0 %v2465_v47  ;;  %v3460_v47 = vld [vmem:[%s8992_s10 + $0x58] sm:$0xff]  ;;  %3512 = vmatpush1.msra.mxu1 %v3461_v34 }
 0x4c0   : > { %5651 = vmatpush3.msra.mxu0 %v2567_v15  ;;  %5666 = vmatprep.mubr.msk.f32.mxu0 %vm6402_vm4, %v9274_v28  ;;  %v3459_v15 = vld [vmem:[%s8992_s10 + $0x50] sm:$0xff] }
 0x4c1   : > { %5652 = vmatprep.subr.mxu0 %v9274_v28  ;;  %3513 = vmatprep.subr.mxu1 %v3460_v47 }
 0x4c2   : > { %5653 = vmatpush3.msra.mxu0 %v2566_v5  ;;  %v3458_v5 = vld [vmem:[%s8992_s10 + $0x48] sm:$0xff]  ;;  %3514 = vmatpush1.msra.mxu1 %v3459_v15 }
 0x4c3   : > { %5654 = vmatprep.subr.mxu0 %v9274_v28  ;;  %3515 = vmatprep.subr.mxu1 %v3458_v5 }
 0x4c4   : > { %5655 = vmatpush3.msra.mxu0 %v2565_v7 }
 0x4c5   : > { %5656 = vmatprep.subr.mxu0 %v9274_v28 }
 0x4c6   : > { %5657 = vmatpush3.msra.mxu0 %v2564_v57  ;;  %v3457_v57 = vld [vmem:[%s8992_s10 + $0x40] sm:$0xff] }
 0x4c7   : > { %5658 = vmatprep.subr.mxu0 %v9274_v28  ;;  %3516 = vmatpush1.msra.mxu1 %v3457_v57 }
 0x4c8   : > { %5659 = vmatpush3.msra.mxu0 %v2563_v9  ;;  %v3456_v9 = vld [vmem:[%s8992_s10 + $0x38] sm:$0xff] }
 0x4c9   : > { %5660 = vmatprep.subr.mxu0 %v9274_v28  ;;  %3517 = vmatprep.subr.mxu1 %v3456_v9 }
 0x4ca   : > { %5661 = vmatpush3.msra.mxu0 %v2562_v49  ;;  %v3455_v49 = vld [vmem:[%s8992_s10 + $0x30] sm:$0xff] }
 0x4cb   : > { %5662 = vmatprep.subr.mxu0 %v9274_v28  ;;  %3518 = vmatpush1.msra.mxu1 %v3455_v49 }
 0x4cc   : > { %5663 = vmatpush3.msra.mxu0 %v2561_v26  ;;  %v3454_v26 = vld [vmem:[%s8992_s10 + $0x28] sm:$0xff] }
 0x4cd   : > { %5664 = vmatprep.subr.mxu0 %v9274_v28  ;;  %3519 = vmatprep.subr.mxu1 %v3454_v26 }
 0x4ce   : > { %5665 = vmatpush3.msra.mxu0 %v2560_v52  ;;  %v3453_v52 = vld [vmem:[%s8992_s10 + $0x20] sm:$0xff] }
 0x4cf   : > { %5669 = vmatprep.subr.mxu0 %v3088_v30  ;;  %3520 = vmatpush1.msra.mxu1 %v3453_v52 }
 0x57f   : > { %v2555_v40 = vpop.f32.mrf.mxu0 }
 0x580   : > { %v2556_v39 = vadd.f32 %v5180_v31, %v2555_v40  ;;  %v3452_v40 = vld [vmem:[%s8992_s10 + $0x18] sm:$0xff] }
 0x581   : > { %v5649_v17 = vpop.f32.mrf.mxu0  ;;  %3521 = vmatprep.subr.mxu1 %v3452_v40 }
 0x582   : > { %v2559_v36 = vmax.f32 %v2556_v39, 0.0  ;;  %v3451_v39 = vld [vmem:[%s8992_s10 + $0x10] sm:$0xff] }
 0x583   : > { %3522 = vmatpush1.msra.mxu1 %v3451_v39  ;;  %v9276_v39 = vld [vmem:[#allocation30_spill] sm:$0xff] }
 0x584   : > { %5667 = vmatmul.mubr.msk.f32.vlgmr.msra.gmra.mxu0 %vm1514_vm0, %v2559_v36  ;;  %v3450_v36 = vld [vmem:[%s8992_s10 + $0x8] sm:$0xff] }
 0x585   : > { %5670 = vmatpush3.msra.mxu0 %v3088_v30  ;;  %3523 = vmatprep.subr.mxu1 %v3450_v36 }
 0x586   : > { %3524 = vmatpush1.msra.mxu1 %v3449_v59 }
 0x587   : > { %5896 = vmatprep.subr.mxu1 %v9274_v28 }
 0x644   : > { %v2644_v38 = vpop.f32.mrf.mxu0 }
 0x645   : > { %v2645_v60 = vadd.f32 %v5181_v58, %v2644_v38  ;;  %v5183_v58 = vld [vmem:[#allocation9] ss:$0 sm:$0xff]  ;;  %v5184_v38 = vld [vmem:[#allocation9 + $0x1] ss:$0 sm:$0xff] }
 0x646   : > { %v5668_v13 = vpop.f32.mrf.mxu0 }
 0x647   : > { %2682 = vperm.xlu0 %6122, %v2645_v60   ;;  %2651 = vperm.xlu1 %6120, %v2645_v60   ;;  %v4959_v12 = vrot.slane %v2645_v60, 2 }
 0x64b   : > { %6125 = vset.pattern.permute.xlu0 %v6404_v20  ;;  %6121 = vset.pattern.permute.xlu1 %v9225_v37  ;;  %v3087_v37 = vld [vmem:[#allocation11 + $0x30] sm:$0xff] }
 0x64c   : > { %2693 = vperm.xlu0 %6125, %v2645_v60   ;;  %2661 = vperm.xlu1 %6121, %v2645_v60  }
 0x64d   : > { %5671 = vmatprep.subr.mxu0 %v3087_v37 }
 0x64e   : > { %5672 = vmatpush3.msra.mxu0 %v3087_v37 }
 0x64f   : > { %5673 = vmatprep.subr.mxu0 %v3086_v56 }
 0x650   : > { %6128 = vset.pattern.permute.xlu0 %v6405_v29  ;;  %6123 = vset.pattern.permute.xlu1 %v6406_v45 }
 0x651   : > { %2710 = vperm.xlu0 %6128, %v2645_v60   ;;  %2687 = vperm.xlu1 %6123, %v2645_v60  }
 0x652   : > { %5674 = vmatpush3.msra.mxu0 %v3086_v56 }
 0x655   : > { %6124 = vset.pattern.permute.xlu1 %v9219_v32  ;;  %v3085_v32 = vld [vmem:[#allocation11 + $0x20] sm:$0xff] }
 0x656   : > { %2672 = vperm.xlu1 %6124, %v2645_v60   ;;  %5675 = vmatprep.subr.mxu0 %v3085_v32 }
 0x657   : > { %5676 = vmatpush3.msra.mxu0 %v3085_v32 }
 0x658   : > { %5677 = vmatprep.subr.mxu0 %v3084_v43 }
 0x659   : > { %5678 = vmatpush3.msra.mxu0 %v3084_v43 }
 0x65a   : > { %6126 = vset.pattern.permute.xlu1 %v6407_v27  ;;  %5679 = vmatprep.subr.mxu0 %v3083_v10 }
 0x65b   : > { %2699 = vperm.xlu1 %6126, %v2645_v60   ;;  %5680 = vmatpush3.msra.mxu0 %v3083_v10 }
 0x65c   : > { %5681 = vmatprep.subr.mxu0 %v3082_v46 }
 0x65d   : > { %5682 = vmatpush3.msra.mxu0 %v3082_v46 }
 0x65e   : > { %5683 = vmatprep.subr.mxu0 %v3081_v61 }
 0x65f   : > { %6127 = vset.pattern.permute.xlu1 %v6408_v62  ;;  %5684 = vmatpush3.msra.mxu0 %v3081_v61  ;;  %v5185_v62 = vld [vmem:[#allocation9 + $0x2] ss:$0 sm:$0xff] }
 0x660   : > { %2704 = vperm.xlu1 %6127, %v2645_v60  }
 0x664   : > { %4956 = vrot.lane.b32.xlu1 %v2645_v60, %s6409_s21  ;;  %v6411_v60 = vmov 1966171168   ;;  %s6317_s21 = scalar_lea.vmem %s6316_s23, 64 }
 0x665   : > { %v2717_v13 = vunpack.c.l.s4 %v6411_v60 }
 0x667   : > { %v2718_v56 = vunpack.c.0.s8 %v2717_v13 }
 0x668   : > { %4960 = vrot.lane.b32.xlu1 %v4959_v12, %s6410_s18  ;;  %s5141_s18 = sshll.u32 %s6717_s17, 1 }
 0x669   : > { %v7936_v61 = vsub.s32 %v2718_v56, %v7492_v33  ;;  %v9282_v56 = vld [vmem:[#allocation26_spill] sm:$0xff]  ;;  %s803_s30 = scalar_lea.vmem [#allocation15], %s5141_s18 }
 0x66a   : > { %s4984_s19 = sshll.u32 %s803_s30, 4  ;;  %s4985_s19 = int_to_ptr.vmem [resolvable:$true] %s4984_s19 }
 0x66b   : > { %9275 = vst [vmem:[#allocation115_spill] sm:$0xff] %v7936_v61  ;;  %s6311_s0 = scalar_lea.vmem %s4985_s19, 32  ;;  %p6318_p0 = scmp.lt.s32.totalorder %s4985_s19, %s6316_s23 }
 0x66c   : > { %p6312_p6 = scmp.ne.s32.totalorder %s4985_s19, %s6311_s0  ;;  %p6319_p4 = scmp.lt.s32.totalorder %s6317_s21, %s6311_s0 }
 0x66e   : > { %p6313_p2 = pnand %p6312_p6, %p9415_p12  ;;  %p6320_p7 = por %p6319_p4, %p6318_p0 }
 0x670   : > { %p6314_p1 = pneg %p6313_p2 }
 0x672   : > { %p6321_p8 = pnand %p6320_p7, %p6314_p1 }
 0x6c2   : > { %v2652_v7 = vpop.permute.xlu1 %2651  ;;  %v2683_v17 = vpop.permute.xlu0 %2682 }
 0x6c3   : > { %v2685_v45 = vmul.f32 %v5183_v58, %v2683_v17  ;;  %v2658_v37 = vmul.f32 %v5183_v58, %v2652_v7  ;;  %v9277_v17 = vld [vmem:[#allocation35_spill] sm:$0xff] }
 0x6c7   : > { %v2662_v31 = vpop.permute.xlu1 %2661  ;;  %v2694_v30 = vpop.permute.xlu0 %2693 }
 0x6c8   : > { %v2668_v27 = vmul.f32 %v5184_v38, %v2662_v31  ;;  %v2696_v43 = vmul.f32 %v5185_v62, %v2694_v30 }
 0x6ca   : > { %v2669_v10 = vadd.f32 %v2668_v27, %v2658_v37  ;;  %v7989_v37 = vld [vmem:[#allocation3 + $0x7] ss:$0 sm:$0xff] }
 0x6cc   : > { %v2688_v20 = vpop.permute.xlu1 %2687  ;;  %v2711_v53 = vpop.permute.xlu0 %2710 }
 0x6cd   : > { %v2690_v29 = vmul.f32 %v5184_v38, %v2688_v20  ;;  %v2713_v54 = vmul.f32 %v5185_v62, %v2711_v53  ;;  %v9279_v20 = vld [vmem:[#allocation28_spill] sm:$0xff]  ;;  %v9287_v53 = vld [vmem:[#allocation33_spill] sm:$0xff] }
 0x6cf   : > { %v2691_v12 = vadd.f32 %v2690_v29, %v2685_v45  ;;  %v9280_v45 = vld [vmem:[#allocation37_spill] sm:$0xff] }
 0x6d1   : > { %v2673_v32 = vpop.permute.xlu1 %2672  ;;  %v2697_v44 = vadd.f32 %v2696_v43, %v2691_v12 }
 0x6d2   : > { %v2679_v46 = vmul.f32 %v5185_v62, %v2673_v32  ;;  %v9281_v62 = vld [vmem:[#allocation40_spill] sm:$0xff] }
 0x6d3   : > { %v2799_v23 = vrot.slane %v2697_v44, %v7936_v61  ;;  %v9283_v32 = vld [vmem:[#allocation32_spill] sm:$0xff]  ;;  %v9285_v44 = vld [vmem:[#allocation38_spill] sm:$0xff] }
 0x6d4   : > { %v2680_v24 = vadd.f32 %v2679_v46, %v2669_v10  ;;  %v9284_v10 = vld [vmem:[#allocation27_spill] sm:$0xff] }
 0x6d5   : > { %v2800_v55 = vcombine.high %v2799_v23, %v2799_v23  ;;  %v7944_v4 = vrot.slane %v2799_v23, %v7936_v61 }
 0x6d6   : > { %v2722_v41 = vrot.slane %v2680_v24, %v7936_v61  ;;  %v2700_v42 = vpop.permute.xlu1 %2699 }
 0x6d7   : > { %v2702_v16 = vmul.f32 %v5183_v58, %v2700_v42  ;;  %v7949_v48 = vrot.slane %v2800_v55, %v7936_v61  ;;  %v2820_v2 = vrot.slane %v7944_v4, %v7495_v22  ;;  %v2815_v34 = vcombine.high %v7944_v4, %v7944_v4  ;;  %v9278_v58 = vld [vmem:[#allocation31_spill] sm:$0xff]  ;;  %v9286_v42 = vld [vmem:[#allocation42_spill] sm:$0xff]  ;;  %v9288_v55 = vld [vmem:[#allocation44_spill] sm:$0xff] }
 0x6d8   : > { %v7941_v63 = vrot.slane %v2722_v41, %v7936_v61  ;;  %v2723_v50 = vcombine.high %v2722_v41, %v2722_v41  ;;  %v9311_v4 = vld [vmem:[#allocation63_spill] sm:$0xff] }
 0x6d9   : > { %v7966_v26 = vrot.slane %v7949_v48, %v7495_v22  ;;  %v2837_v40 = vmul.f32 %v2820_v2, %v6821_v1  ;;  %v2842_v27 = vmul.f32 %v2820_v2, %v9280_v45  ;;  %v2843_v23 = vmul.f32 %v2820_v2, %v9286_v42 }
 0x6da   : > { %v2743_v35 = vrot.slane %v7941_v63, %v7495_v22  ;;  %v7956_v47 = vrot.slane %v2723_v50, %v7936_v61 }
 0x6db   : > { %v2705_v6 = vpop.permute.xlu1 %2704 }
 0x6dc   : > { %v2707_v8 = vmul.f32 %v5184_v38, %v2705_v6  ;;  %v2760_v5 = vmul.f32 %v2743_v35, %v6858_v18  ;;  %v2761_v7 = vmul.f32 %v2743_v35, %v6818_v0  ;;  %v2762_v57 = vmul.f32 %v2743_v35, %v6851_v14 }
 0x6dd   : > { %v2763_v9 = vmul.f32 %v2743_v35, %v6870_v25  ;;  %v2764_v49 = vmul.f32 %v2743_v35, %v6902_v51  ;;  %v2838_v18 = vmul.f32 %v2820_v2, %v6824_v3  ;;  %v2839_v0 = vmul.f32 %v2820_v2, %v6864_v21 }
 0x6de   : > { %v2708_v19 = vadd.f32 %v2707_v8, %v2702_v16  ;;  %v2840_v14 = vmul.f32 %v2820_v2, %v9276_v39  ;;  %v2841_v25 = vmul.f32 %v2820_v2, %v9277_v17  ;;  %v7978_v51 = vrot.slane %v7956_v47, %v7495_v22  ;;  %v9292_v39 = vld [vmem:[#allocation47_spill] sm:$0xff]  ;;  %v9293_v17 = vld [vmem:[#allocation34_spill] sm:$0xff] }
 0x6df   : > { %v2869_v59 = vadd.f32 %v2837_v40, %v2760_v5  ;;  %v2765_v38 = vmul.f32 %v2743_v35, %v9278_v58  ;;  %v2870_v60 = vadd.f32 %v2838_v18, %v2761_v7  ;;  %v2871_v1 = vadd.f32 %v2839_v0, %v2762_v57  ;;  %v9290_v57 = vld [vmem:[#allocation45_spill] sm:$0xff] }
 0x6e0   : > { %v2714_v11 = vadd.f32 %v2713_v54, %v2708_v19  ;;  %v2872_v13 = vadd.f32 %v2840_v14, %v2763_v9  ;;  %v2873_v3 = vadd.f32 %v2841_v25, %v2764_v49  ;;  %v2766_v30 = vmul.f32 %v2743_v35, %v9281_v62  ;;  %v9289_v19 = vld [vmem:[#allocation29_spill] sm:$0xff] }
 0x6e1   : > { %v2767_v6 = vmul.f32 %v2743_v35, %v9287_v53  ;;  %v2844_v16 = vmul.f32 %v2820_v2, %v9288_v55  ;;  %v2874_v2 = vadd.f32 %v2842_v27, %v2765_v38  ;;  %v2845_v14 = vmul.f32 %v7966_v26, %v9292_v39  ;;  %v9302_v55 = vld [vmem:[#allocation48_spill] sm:$0xff]  ;;  %v9305_v39 = vld [vmem:[#allocation57_spill] sm:$0xff] }
 0x6e2   : > { %v2908_v15 = vrot.slane %v2714_v11, %v7936_v61  ;;  %v2875_v0 = vadd.f32 %v2843_v23, %v2766_v30  ;;  %v2769_v25 = vmul.f32 %v7978_v51, %v9293_v17 }
 0x6e3   : > { %v2876_v27 = vadd.f32 %v2844_v16, %v2767_v6 }
 0x6e4   : > { %v2909_v52 = vcombine.high %v2908_v15, %v2908_v15  ;;  %v7969_v31 = vrot.slane %v2908_v15, %v7936_v61 }
 0x6e6   : > { %v2929_v36 = vrot.slane %v7969_v31, %v7495_v22  ;;  %v7984_v21 = vrot.slane %v2909_v52, %v7936_v61  ;;  %v9291_v52 = vld [vmem:[#allocation46_spill] sm:$0xff] }
 0x6e7   : > { %v2768_v40 = vmul.f32 %v7978_v51, %v9291_v52 }
 0x6e8   : > { %v2946_v29 = vmul.f32 %v2929_v36, %v9279_v20  ;;  %v2947_v12 = vmul.f32 %v2929_v36, %v9282_v56  ;;  %v2948_v43 = vmul.f32 %v2929_v36, %v9283_v32  ;;  %v2949_v46 = vmul.f32 %v2929_v36, %v9284_v10  ;;  %v9297_v56 = vld [vmem:[#allocation51_spill] sm:$0xff]  ;;  %v9298_v32 = vld [vmem:[#allocation52_spill] sm:$0xff] }
 0x6e9   : > { %v2950_v24 = vmul.f32 %v2929_v36, %v9285_v44  ;;  %v2951_v11 = vmul.f32 %v2929_v36, %v9289_v19  ;;  %v8001_v15 = vrot.slane %v7984_v21, %v7495_v22  ;;  %v2952_v9 = vmul.f32 %v2929_v36, %v9290_v57  ;;  %v9299_v10 = vld [vmem:[#allocation36_spill] sm:$0xff]  ;;  %v9300_v44 = vld [vmem:[#allocation54_spill] sm:$0xff]  ;;  %v9303_v19 = vld [vmem:[#allocation55_spill] sm:$0xff] }
 0x6ea   : > { %v2978_v41 = vadd.f32 %v2946_v29, %v2869_v59  ;;  %v2979_v8 = vadd.f32 %v2947_v12, %v2870_v60  ;;  %v2980_v54 = vadd.f32 %v2948_v43, %v2871_v1  ;;  %v2981_v50 = vadd.f32 %v2949_v46, %v2872_v13  ;;  %v9294_v1 = vld [vmem:[#allocation43_spill] sm:$0xff]  ;;  %v9295_v29 = vld [vmem:[#allocation50_spill] sm:$0xff] }
 0x6eb   : > { %v2982_v7 = vadd.f32 %v2950_v24, %v2873_v3  ;;  %v2983_v60 = vadd.f32 %v2951_v11, %v2874_v2  ;;  %v2953_v38 = vmul.f32 %v2929_v36, %v9294_v1  ;;  %v2984_v20 = vadd.f32 %v2952_v9, %v2875_v0  ;;  %v9296_v36 = vld [vmem:[#allocation49_spill] sm:$0xff]  ;;  %v9307_v1 = vld [vmem:[#allocation39_spill] sm:$0xff] }
 0x6ec   : > { %v8004_v5 = vadd.f32 %v7989_v37, %v2978_v41  ;;  %v8008_v49 = vadd.f32 %v7989_v37, %v2979_v8  ;;  %v8011_v35 = vadd.f32 %v7989_v37, %v2980_v54  ;;  %v8022_v58 = vadd.f32 %v7989_v37, %v2981_v50  ;;  %v9301_v41 = vld [vmem:[#allocation56_spill] sm:$0xff]  ;;  %v9304_v2 = vld [vmem:[#allocation53_spill] sm:$0xff] }
 0x6ed   : > { %v8030_v3 = vadd.f32 %v7989_v37, %v2982_v7  ;;  %v2954_v45 = vmul.f32 %v8001_v15, %v9295_v29  ;;  %v2877_v62 = vadd.f32 %v2845_v14, %v2768_v40  ;;  %v2846_v30 = vmul.f32 %v7966_v26, %v9296_v36  ;;  %v9306_v14 = vld [vmem:[#allocation60_spill] sm:$0xff] }
 0x6ee   : > { %v9139_v18 = vmax.f32 %v8004_v5, 0.0  ;;  %v9138_v59 = vmax.f32 %v8008_v49, 0.0  ;;  %v9137_v13 = vmax.f32 %v8011_v35, 0.0  ;;  %v2770_v12 = vmul.f32 %v7978_v51, %v9297_v56 }
 0x6ef   : > { %v2847_v43 = vmul.f32 %v7966_v26, %v9298_v32  ;;  %v2771_v46 = vmul.f32 %v7978_v51, %v9299_v10  ;;  %v2848_v24 = vmul.f32 %v7966_v26, %v9300_v44  ;;  %v2772_v42 = vmul.f32 %v7978_v51, %v9301_v41  ;;  %v9310_v44 = vld [vmem:[#allocation61_spill] sm:$0xff] }
 0x6f0   : > { %5685 = vmatprep.mubr.msk.f32.mxu0 %vm1514_vm0, %v9139_v18  ;;  %v9136_v23 = vmax.f32 %v8022_v58, 0.0  ;;  %v8054_v53 = vadd.f32 %v7989_v37, %v2983_v60  ;;  %v2985_v6 = vadd.f32 %v2953_v38, %v2876_v27  ;;  %v2955_v16 = vmul.f32 %v8001_v15, %v9302_v55 }
 0x6f1   : > { %5686 = vmatmul.mubr.msk.f32.vlgmr.msra.gmra.mxu0 %vm1514_vm0, %v9138_v59  ;;  %v9135_v8 = vmax.f32 %v8030_v3, 0.0  ;;  %v8060_v54 = vadd.f32 %v7989_v37, %v2984_v20  ;;  %v2986_v50 = vadd.f32 %v2954_v45, %v2877_v62  ;;  %v2956_v11 = vmul.f32 %v8001_v15, %v9303_v19 }
 0x6f2   : > { %5688 = vmatprep.mubr.msk.f32.mxu0 %vm1514_vm0, %v9137_v13  ;;  %v2738_v7 = vcombine.high %v7941_v63, %v7941_v63  ;;  %v2924_v57 = vcombine.high %v7969_v31, %v7969_v31  ;;  %v2878_v9 = vadd.f32 %v2846_v30, %v2769_v25  ;;  %v2957_v52 = vmul.f32 %v8001_v15, %v9304_v2  ;;  %v9308_v30 = vld [vmem:[#allocation59_spill] sm:$0xff]  ;;  %v9314_v2 = vld [vmem:[#allocation69_spill] sm:$0xff] }
 0x6f3   : > { %v2879_v40 = vadd.f32 %v2847_v43, %v2770_v12  ;;  %v2880_v0 = vadd.f32 %v2848_v24, %v2771_v46  ;;  %v2849_v63 = vmul.f32 %v7966_v26, %v9305_v39  ;;  %v2958_v31 = vmul.f32 %v8001_v15, %v9306_v14  ;;  %v9309_v12 = vld [vmem:[#allocation58_spill] sm:$0xff] }
 0x6f4   : > { %v9134_v17 = vmax.f32 %v8054_v53, 0.0  ;;  %v8082_v60 = vadd.f32 %v7989_v37, %v2985_v6  ;;  %v2987_v25 = vadd.f32 %v2955_v16, %v2878_v9  ;;  %v2773_v38 = vmul.f32 %v7978_v51, %v9307_v1 }
 0x6f5   : > { %5689 = vmatmul.mubr.msk.f32.gmra.mxu0 %vm1514_vm0, %v9136_v23  ;;  %v9133_v20 = vmax.f32 %v8060_v54, 0.0  ;;  %v8088_v29 = vadd.f32 %v7989_v37, %v2986_v50  ;;  %v2988_v45 = vadd.f32 %v2956_v11, %v2879_v40  ;;  %v2881_v27 = vadd.f32 %v2849_v63, %v2772_v42  ;;  %v9312_v50 = vld [vmem:[#allocation67_spill] sm:$0xff]  ;;  %v9313_v11 = vld [vmem:[#allocation41_spill] sm:$0xff]  ;;  %v9316_v63 = vld [vmem:[#allocation62_spill] sm:$0xff] }
 0x6f6   : > { %5691 = vmatprep.mubr.msk.f32.mxu0 %vm1514_vm0, %v9135_v8  ;;  %v8091_v62 = vrot.slane %v2738_v7, %v7495_v22  ;;  %v2989_v36 = vadd.f32 %v2957_v52, %v2880_v0  ;;  %v2850_v56 = vmul.f32 %v7966_v26, %v9308_v30  ;;  %v2959_v32 = vmul.f32 %v8001_v15, %v9309_v12 }
 0x6f7   : > { %v8104_v43 = vrot.slane %v2815_v34, %v7495_v22  ;;  %v8107_v10 = vrot.slane %v2924_v57, %v7495_v22  ;;  %v2990_v46 = vadd.f32 %v2958_v31, %v2881_v27  ;;  %v2774_v24 = vmul.f32 %v7978_v51, %v9310_v44  ;;  %v9319_v27 = vld [vmem:[#allocation71_spill] sm:$0xff] }
 0x6f8   : > { %v9132_v41 = vmax.f32 %v8082_v60, 0.0  ;;  %v8116_v42 = vadd.f32 %v7989_v37, %v2987_v25  ;;  %v2882_v6 = vadd.f32 %v2850_v56, %v2773_v38  ;;  %v2851_v34 = vmul.f32 %v7966_v26, %v9311_v4  ;;  %v9317_v25 = vld [vmem:[#allocation70_spill] sm:$0xff]  ;;  %v9318_v38 = vld [vmem:[#allocation73_spill] sm:$0xff] }
 0x6f9   : > { %5692 = vmatmul.mubr.msk.f32.gmra.mxu0 %vm1514_vm0, %v9134_v17  ;;  %v9131_v55 = vmax.f32 %v8088_v29, 0.0  ;;  %v8122_v16 = vadd.f32 %v7989_v37, %v2988_v45  ;;  %v2960_v19 = vmul.f32 %v8001_v15, %v9312_v50  ;;  %v2775_v7 = vmul.f32 %v7978_v51, %v9313_v11  ;;  %v9315_v51 = vld [vmem:[#allocation65_spill] sm:$0xff] }
 0x6fa   : > { %5694 = vmatprep.mubr.msk.f32.mxu0 %vm1514_vm0, %v9133_v20  ;;  %v8132_v57 = vadd.f32 %v7989_v37, %v2989_v36  ;;  %v2991_v9 = vadd.f32 %v2959_v32, %v2882_v6  ;;  %v2776_v52 = vmul.f32 %v8091_v62, %v9314_v2  ;;  %v8140_v40 = vadd.f32 %v7989_v37, %v2990_v46  ;;  %v9321_v46 = vld [vmem:[#allocation64_spill] sm:$0xff] }
 0x6fb   : > { %v2883_v0 = vadd.f32 %v2851_v34, %v2774_v24  ;;  %v2852_v39 = vmul.f32 %v7966_v26, %v9315_v51  ;;  %v2961_v14 = vmul.f32 %v8001_v15, %v9316_v63  ;;  %v9121_v31 = vmax.f32 %v8116_v42, 0.0  ;;  %v9320_v15 = vld [vmem:[#allocation72_spill] sm:$0xff]  ;;  %v9322_v34 = vld [vmem:[#allocation74_spill] sm:$0xff] }
 0x6fc   : > { %v2853_v1 = vmul.f32 %v8104_v43, %v9317_v25  ;;  %v2962_v45 = vmul.f32 %v8107_v10, %v9318_v38  ;;  %v2777_v36 = vmul.f32 %v8091_v62, %v9319_v27  ;;  %v9120_v30 = vmax.f32 %v8122_v16, 0.0  ;;  %v9324_v51 = vld [vmem:[#allocation78_spill] sm:$0xff]  ;;  %v9325_v63 = vld [vmem:[#allocation76_spill] sm:$0xff]  ;;  %v9326_v38 = vld [vmem:[#allocation79_spill] sm:$0xff] }
 0x6fd   : > { %5695 = vmatmul.mubr.msk.f32.gmra.mxu0 %vm1514_vm0, %v9132_v41  ;;  %v2992_v56 = vadd.f32 %v2960_v19, %v2883_v0  ;;  %v2884_v12 = vadd.f32 %v2852_v39, %v2775_v7  ;;  %v2854_v32 = vmul.f32 %v8104_v43, %v9320_v15  ;;  %v2963_v44 = vmul.f32 %v8107_v10, %v9321_v46 }
 0x6fe   : > { %5697 = vmatprep.mubr.msk.f32.mxu0 %vm1514_vm0, %v9131_v55  ;;  %v2885_v26 = vadd.f32 %v2853_v1, %v2776_v52  ;;  %v2816_v24 = vcombine.high %v7949_v48, %v7949_v48  ;;  %v9118_v6 = vmax.f32 %v8132_v57, 0.0  ;;  %v2778_v50 = vmul.f32 %v8091_v62, %v9322_v34  ;;  %v9323_v48 = vld [vmem:[#allocation75_spill] sm:$0xff] }
 0x6ff   : > { %v2993_v4 = vadd.f32 %v2961_v14, %v2884_v12  ;;  %v9112_v19 = vmax.f32 %v8140_v40, 0.0  ;;  %v8171_v11 = vadd.f32 %v7989_v37, %v2991_v9  ;;  %v2886_v2 = vadd.f32 %v2854_v32, %v2777_v36  ;;  %v9329_v32 = vld [vmem:[#allocation81_spill] sm:$0xff] }
 0x700   : > { %v2994_v7 = vadd.f32 %v2962_v45, %v2885_v26  ;;  %v8174_v52 = vadd.f32 %v7989_v37, %v2992_v56  ;;  %v2855_v0 = vmul.f32 %v8104_v43, %v9323_v48  ;;  %v2964_v39 = vmul.f32 %v8107_v10, %v9324_v51 }
 0x701   : > { %5698 = vmatmul.mubr.msk.f32.gmra.mxu0 %vm1514_vm0, %v9121_v31  ;;  %v2779_v14 = vmul.f32 %v8091_v62, %v9325_v63  ;;  %v2739_v25 = vcombine.high %v7956_v47, %v7956_v47  ;;  %v2925_v9 = vcombine.high %v7984_v21, %v7984_v21  ;;  %v2995_v1 = vadd.f32 %v2963_v44, %v2886_v2  ;;  %v9327_v47 = vld [vmem:[#allocation77_spill] sm:$0xff]  ;;  %v9328_v21 = vld [vmem:[#allocation66_spill] sm:$0xff]  ;;  %v9330_v44 = vld [vmem:[#allocation84_spill] sm:$0xff] }
 0x702   : > { %5700 = vmatprep.mubr.msk.f32.mxu0 %vm1514_vm0, %v9120_v30  ;;  %v2780_v45 = vmul.f32 %v8091_v62, %v9326_v38  ;;  %v8195_v27 = vadd.f32 %v7989_v37, %v2993_v4  ;;  %v2887_v36 = vadd.f32 %v2855_v0, %v2778_v50  ;;  %v2856_v56 = vmul.f32 %v8104_v43, %v9327_v47  ;;  %v9331_v63 = vld [vmem:[#allocation80_spill] sm:$0xff]  ;;  %v9360_v31 = vld [vmem:[#allocation110_spill] sm:$0xff] }
 0x703   : > { %v2965_v12 = vmul.f32 %v8107_v10, %v9328_v21  ;;  %v9110_v26 = vmax.f32 %v8171_v11, 0.0  ;;  %v8203_v15 = vadd.f32 %v7989_v37, %v2994_v7  ;;  %v2857_v46 = vmul.f32 %v8104_v43, %v9329_v32  ;;  %v9334_v21 = vld [vmem:[#allocation68_spill] sm:$0xff] }
 0x704   : > { %v2966_v34 = vmul.f32 %v8107_v10, %v9330_v44  ;;  %v8210_v4 = vrot.slane %v2816_v24, %v7495_v22  ;;  %v9109_v50 = vmax.f32 %v8174_v52, 0.0  ;;  %v2996_v2 = vadd.f32 %v2964_v39, %v2887_v36 }
 0x705   : > { %5701 = vmatmul.mubr.msk.f32.gmra.mxu0 %vm1514_vm0, %v9118_v6  ;;  %v2888_v48 = vadd.f32 %v2856_v56, %v2779_v14  ;;  %v8214_v0 = vrot.slane %v2739_v25, %v7495_v22  ;;  %v8220_v7 = vadd.f32 %v7989_v37, %v2995_v1  ;;  %v2889_v51 = vadd.f32 %v2857_v46, %v2780_v45  ;;  %v9332_v25 = vld [vmem:[#allocation86_spill] sm:$0xff]  ;;  %v9333_v45 = vld [vmem:[#allocation83_spill] sm:$0xff]  ;;  %v9335_v46 = vld [vmem:[#allocation88_spill] sm:$0xff] }
 0x706   : > { %5703 = vmatprep.mubr.msk.f32.mxu0 %vm1514_vm0, %v9112_v19  ;;  %v2781_v38 = vmul.f32 %v8091_v62, %v9331_v63  ;;  %v8225_v24 = vrot.slane %v2925_v9, %v7495_v22  ;;  %v9108_v39 = vmax.f32 %v8195_v27, 0.0  ;;  %v2782_v36 = vmul.f32 %v8091_v62, %v9332_v25  ;;  %v9336_v63 = vld [vmem:[#allocation91_spill] sm:$0xff] }
 0x707   : > { %v2997_v14 = vadd.f32 %v2965_v12, %v2888_v48  ;;  %v9111_v1 = vmax.f32 %v8203_v15, 0.0  ;;  %v2998_v47 = vadd.f32 %v2966_v34, %v2889_v51  ;;  %v2858_v56 = vmul.f32 %v8104_v43, %v9333_v45  ;;  %v9337_v48 = vld [vmem:[#allocation82_spill] sm:$0xff]  ;;  %v9338_v45 = vld [vmem:[#allocation92_spill] sm:$0xff] }
 0x708   : > { %v2967_v9 = vmul.f32 %v8107_v10, %v9334_v21  ;;  %v8239_v32 = vadd.f32 %v7989_v37, %v2996_v2  ;;  %v2859_v44 = vmul.f32 %v8104_v43, %v9335_v46  ;;  %v2968_v12 = vmul.f32 %v8107_v10, %v9336_v63  ;;  %v9339_v63 = vld [vmem:[#allocation90_spill] sm:$0xff] }
 0x709   : > { %5704 = vmatmul.mubr.msk.f32.gmra.mxu0 %vm1514_vm0, %v9110_v26  ;;  %v2783_v25 = vmul.f32 %v8091_v62, %v9337_v48  ;;  %v9116_v34 = vmax.f32 %v8220_v7, 0.0  ;;  %v2890_v51 = vadd.f32 %v2858_v56, %v2781_v38  ;;  %v2784_v2 = vmul.f32 %v8214_v0, %v9338_v45  ;;  %v9340_v48 = vld [vmem:[#allocation89_spill] sm:$0xff]  ;;  %v9342_v26 = vld [vmem:[#allocation96_spill] sm:$0xff] }
 0x70a   : > { %5706 = vmatprep.mubr.msk.f32.mxu0 %vm1514_vm0, %v9109_v50  ;;  %v8257_v21 = vadd.f32 %v7989_v37, %v2997_v14  ;;  %v2891_v46 = vadd.f32 %v2859_v44, %v2782_v36  ;;  %v2860_v62 = vmul.f32 %v8104_v43, %v9339_v63  ;;  %v8264_v50 = vadd.f32 %v7989_v37, %v2998_v47  ;;  %v9341_v56 = vld [vmem:[#allocation93_spill] sm:$0xff] }
 0x70b   : > { %v2999_v38 = vadd.f32 %v2967_v9, %v2890_v51  ;;  %v2861_v45 = vmul.f32 %v8210_v4, %v9341_v56  ;;  %v9114_v14 = vmax.f32 %v8239_v32, 0.0  ;;  %v9343_v44 = vld [vmem:[#allocation85_spill] sm:$0xff]  ;;  %v9344_v9 = vld [vmem:[#allocation95_spill] sm:$0xff]  ;;  %v9345_v51 = vld [vmem:[#allocation94_spill] sm:$0xff] }
 0x70c   : > { %v3000_v19 = vadd.f32 %v2968_v12, %v2891_v46  ;;  %v2892_v36 = vadd.f32 %v2860_v62, %v2783_v25  ;;  %v2785_v43 = vmul.f32 %v8214_v0, %v9343_v44  ;;  %v2971_v12 = vmul.f32 %v8225_v24, %v9345_v51  ;;  %v9346_v25 = vld [vmem:[#allocation97_spill] sm:$0xff]  ;;  %v9349_v51 = vld [vmem:[#allocation87_spill] sm:$0xff] }
 0x70d   : > { %5707 = vmatmul.mubr.msk.f32.gmra.mxu0 %vm1514_vm0, %v9108_v39  ;;  %v2969_v39 = vmul.f32 %v8107_v10, %v9340_v48  ;;  %v2893_v10 = vadd.f32 %v2861_v45, %v2784_v2  ;;  %v2786_v46 = vmul.f32 %v8214_v0, %v9346_v25  ;;  %v9113_v63 = vmax.f32 %v8257_v21, 0.0  ;;  %v9347_v45 = vld [vmem:[#allocation98_spill] sm:$0xff]  ;;  %v9348_v44 = vld [vmem:[#allocation101_spill] sm:$0xff] }
 0x70e   : > { %5709 = vmatprep.mubr.msk.f32.mxu0 %vm1514_vm0, %v9111_v1  ;;  %v2970_v1 = vmul.f32 %v8225_v24, %v9342_v26  ;;  %v2862_v26 = vmul.f32 %v8210_v4, %v9344_v9  ;;  %v9115_v62 = vmax.f32 %v8264_v50, 0.0  ;;  %v8288_v2 = vadd.f32 %v7989_v37, %v2999_v38 }
 0x70f   : > { %v3001_v47 = vadd.f32 %v2969_v39, %v2892_v36  ;;  %v8291_v56 = vadd.f32 %v7989_v37, %v3000_v19  ;;  %v2863_v36 = vmul.f32 %v8210_v4, %v9347_v45  ;;  %v2972_v9 = vmul.f32 %v8225_v24, %v9348_v44  ;;  %v9351_v44 = vld [vmem:[#allocation100_spill] sm:$0xff] }
 0x710   : > { %v3002_v48 = vadd.f32 %v2970_v1, %v2893_v10  ;;  %v2894_v39 = vadd.f32 %v2862_v26, %v2785_v43  ;;  %v2787_v25 = vmul.f32 %v8214_v0, %v9349_v51  ;;  %v9350_v43 = vld [vmem:[#allocation102_spill] sm:$0xff]  ;;  %v9117_v26 = vmax.f32 %v8288_v2, 0.0 }
 0x711   : > { %5710 = vmatmul.mubr.msk.f32.gmra.mxu0 %vm1514_vm0, %v9116_v34  ;;  %v8306_v19 = vadd.f32 %v7989_v37, %v3001_v47  ;;  %v2895_v38 = vadd.f32 %v2863_v36, %v2786_v46  ;;  %v2788_v10 = vmul.f32 %v8214_v0, %v9350_v43  ;;  %v2864_v51 = vmul.f32 %v8210_v4, %v9351_v44  ;;  %v9353_v34 = vld [vmem:[#allocation104_spill] sm:$0xff]  ;;  %v9354_v46 = vld [vmem:[#allocation107_spill] sm:$0xff]  ;;  %v9355_v36 = vld [vmem:[#allocation105_spill] sm:$0xff] }
 0x712   : > { %5712 = vmatprep.mubr.msk.f32.mxu0 %vm1514_vm0, %v9114_v14  ;;  %v3003_v1 = vadd.f32 %v2971_v12, %v2894_v39  ;;  %v8312_v45 = vadd.f32 %v7989_v37, %v3002_v48  ;;  %v2865_v12 = vmul.f32 %v8210_v4, %v9353_v34  ;;  %v2974_v39 = vmul.f32 %v8225_v24, %v9354_v46 }
 0x713   : > { %v3004_v47 = vadd.f32 %v2972_v9, %v2895_v38  ;;  %v2896_v48 = vadd.f32 %v2864_v51, %v2787_v25  ;;  %v2789_v43 = vmul.f32 %v8214_v0, %v9355_v36  ;;  %v9356_v38 = vld [vmem:[#allocation108_spill] sm:$0xff]  ;;  %v9357_v25 = vld [vmem:[#allocation106_spill] sm:$0xff]  ;;  %v9358_v36 = vld [vmem:[#allocation103_spill] sm:$0xff] }
 0x714   : > { %v8333_v9 = vadd.f32 %v7989_v37, %v3003_v1  ;;  %v2897_v34 = vadd.f32 %v2865_v12, %v2788_v10  ;;  %v2790_v44 = vmul.f32 %v8214_v0, %v9356_v38  ;;  %v9129_v46 = vmax.f32 %v8312_v45, 0.0  ;;  %v9361_v10 = vld [vmem:[#allocation113_spill] sm:$0xff] }
 0x715   : > { %5713 = vmatmul.mubr.msk.f32.gmra.mxu0 %vm1514_vm0, %v9113_v63  ;;  %v9352_v63 = vld [vmem:[#allocation99_spill] sm:$0xff]  ;;  %v2866_v51 = vmul.f32 %v8210_v4, %v9357_v25  ;;  %v2975_v6 = vmul.f32 %v8225_v24, %v9358_v36  ;;  %v2867_v1 = vmul.f32 %v8210_v4, %v9360_v31  ;;  %v2976_v12 = vmul.f32 %v8225_v24, %v9361_v10  ;;  %v9364_v25 = vld [vmem:[#allocation112_spill] sm:$0xff] }
 0x716   : > { %5715 = vmatprep.mubr.msk.f32.mxu0 %vm1514_vm0, %v9115_v62  ;;  %v2973_v14 = vmul.f32 %v8225_v24, %v9352_v63  ;;  %v9119_v62 = vmax.f32 %v8291_v56, 0.0  ;;  %v9130_v63 = vmax.f32 %v8306_v19, 0.0  ;;  %v3006_v30 = vadd.f32 %v2974_v39, %v2897_v34  ;;  %v9365_v10 = vld [vmem:[#allocation111_spill] sm:$0xff] }
 0x717   : > { %v2899_v39 = vadd.f32 %v2867_v1, %v2790_v44  ;;  %v2868_v36 = vmul.f32 %v8210_v4, %v9364_v25 }
 0x719   : > { %5716 = vmatmul.mubr.msk.f32.gmra.mxu0 %vm1514_vm0, %v9117_v26  ;;  %v3005_v26 = vadd.f32 %v2973_v14, %v2896_v48  ;;  %v2898_v14 = vadd.f32 %v2866_v51, %v2789_v43  ;;  %v9362_v48 = vld [vmem:[#allocation109_spill] sm:$0xff]  ;;  %v2977_v43 = vmul.f32 %v8225_v24, %v9365_v10 }
 0x71a   : > { %5718 = vmatprep.mubr.msk.f32.mxu0 %vm1514_vm0, %v9119_v62  ;;  %v8343_v62 = vadd.f32 %v7989_v37, %v3004_v47  ;;  %v2791_v38 = vmul.f32 %v8214_v0, %v9362_v48  ;;  %v9128_v47 = vmax.f32 %v8333_v9, 0.0  ;;  %v8367_v0 = vadd.f32 %v7989_v37, %v3006_v30 }
 0x71b   : > { %v8359_v31 = vadd.f32 %v7989_v37, %v3005_v26  ;;  %v3007_v34 = vadd.f32 %v2975_v6, %v2898_v14  ;;  %v3008_v48 = vadd.f32 %v2976_v12, %v2899_v39 }
 0x71c   : > { %9359 = vst [vmem:[#allocation30_spill] sm:$0xff] %v8343_v62  ;;  %v9127_v51 = vmax.f32 %v8343_v62, 0.0  ;;  %9366 = vst [vmem:[#allocation31_spill] sm:$0xff] %v8367_v0  ;;  %v2900_v44 = vadd.f32 %v2868_v36, %v2791_v38  ;;  %v9125_v26 = vmax.f32 %v8367_v0, 0.0 }
 0x71d   : > { %5719 = vmatmul.mubr.msk.f32.gmra.mxu0 %vm1514_vm0, %v9130_v63  ;;  %9363 = vst [vmem:[#allocation35_spill] sm:$0xff] %v8359_v31  ;;  %v9126_v6 = vmax.f32 %v8359_v31, 0.0  ;;  %v8377_v4 = vadd.f32 %v7989_v37, %v3007_v34  ;;  %v8381_v30 = vadd.f32 %v7989_v37, %v3008_v48  ;;  %v8404_v34 = vld [vmem:[#allocation3 + $0x8] ss:$0 sm:$0xff] }
 0x71e   : > { %5721 = vmatprep.mubr.msk.f32.mxu0 %vm1514_vm0, %v9129_v46  ;;  %v3009_v24 = vadd.f32 %v2977_v43, %v2900_v44 }
 0x71f   : > { %9367 = vst [vmem:[#allocation28_spill] sm:$0xff] %v8377_v4  ;;  %9368 = vst [vmem:[#allocation37_spill] sm:$0xff] %v8381_v30  ;;  %v9124_v1 = vmax.f32 %v8377_v4, 0.0  ;;  %v9122_v14 = vmax.f32 %v8381_v30, 0.0 }
 0x720   : > { %v8391_v12 = vadd.f32 %v7989_v37, %v3009_v24 }
 0x721   : > { %5722 = vmatmul.mubr.msk.f32.gmra.mxu0 %vm1514_vm0, %v9128_v47 }
 0x722   : > { %5724 = vmatprep.mubr.msk.f32.mxu0 %vm1514_vm0, %v9127_v51  ;;  %9369 = vst [vmem:[#allocation40_spill] sm:$0xff] %v8391_v12  ;;  %v9123_v38 = vmax.f32 %v8391_v12, 0.0 }
 0x725   : > { %5725 = vmatmul.mubr.msk.f32.gmra.mxu0 %vm1514_vm0, %v9126_v6 }
 0x726   : > { %5727 = vmatprep.mubr.msk.f32.mxu0 %vm1514_vm0, %v9125_v26 }
 0x729   : > { %5728 = vmatmul.mubr.msk.f32.gmra.mxu0 %vm1514_vm0, %v9124_v1 }
 0x72a   : > { %5730 = vmatprep.mubr.msk.f32.mxu0 %vm1514_vm0, %v9122_v14 }
 0x72d   : > { %5731 = vmatmul.mubr.msk.f32.gmra.mxu0 %vm1514_vm0, %v9123_v38 }
 0x7b1   : > { %v5687_v39 = vpop.f32.mrf.mxu0 }
 0x7b2   : > { %v3264_v10 = vadd.f32 %v5687_v39, %v8404_v34 }
 0x7b3   : > { %v3258_v37 = vpop.f32.mrf.mxu0 }
 0x7b4   : > { %v3259_v25 = vadd.f32 %v8404_v34, %v3258_v37  ;;  %v3418_v44 = vmax.f32 %v3264_v10, 0.0 }
 0x7b5   : > { %v5690_v36 = vpop.f32.mrf.mxu0 }
 0x7b6   : > { %v3417_v43 = vmax.f32 %v3259_v25, 0.0  ;;  %v3274_v38 = vadd.f32 %v5690_v36, %v8404_v34 }
 0x7b7   : > { %v3268_v48 = vpop.f32.mrf.mxu0 }
 0x7b8   : > { %3558 = vmatmul.mubr.f32.vlgmr.msra.gmra.mxu1 %v3417_v43  ;;  %v3269_v24 = vadd.f32 %v8404_v34, %v3268_v48  ;;  %v3420_v39 = vmax.f32 %v3274_v38, 0.0 }
 0x7b9   : > { %3563 = vmatprep.mubr.f32.mxu1 %v9274_v28  ;;  %v5693_v14 = vpop.f32.mrf.mxu0 }
 0x7ba   : > { %v3419_v1 = vmax.f32 %v3269_v24, 0.0  ;;  %v3284_v10 = vadd.f32 %v5693_v14, %v8404_v34 }
 0x7bb   : > { %v3278_v26 = vpop.f32.mrf.mxu0 }
 0x7bc   : > { %3564 = vmatmul.mubr.f32.gmra.mxu1 %v3418_v44  ;;  %v3279_v37 = vadd.f32 %v8404_v34, %v3278_v26  ;;  %v3422_v36 = vmax.f32 %v3284_v10, 0.0 }
 0x7bd   : > { %3569 = vmatprep.mubr.f32.mxu1 %v9274_v28  ;;  %v5696_v25 = vpop.f32.mrf.mxu0 }
 0x7be   : > { %v3421_v43 = vmax.f32 %v3279_v37, 0.0  ;;  %v3294_v26 = vadd.f32 %v5696_v25, %v8404_v34 }
 0x7bf   : > { %v3288_v48 = vpop.f32.mrf.mxu0 }
 0x7c0   : > { %3570 = vmatmul.mubr.f32.gmra.mxu1 %v3419_v1  ;;  %v3289_v44 = vadd.f32 %v8404_v34, %v3288_v48  ;;  %v3424_v14 = vmax.f32 %v3294_v26, 0.0 }
 0x7c1   : > { %3575 = vmatprep.mubr.f32.mxu1 %v9274_v28  ;;  %v5699_v1 = vpop.f32.mrf.mxu0 }
 0x7c2   : > { %v3423_v38 = vmax.f32 %v3289_v44, 0.0  ;;  %v3304_v10 = vadd.f32 %v5699_v1, %v8404_v34 }
 0x7c3   : > { %v3298_v24 = vpop.f32.mrf.mxu0 }
 0x7c4   : > { %3576 = vmatmul.mubr.f32.gmra.mxu1 %v3420_v39  ;;  %v3299_v39 = vadd.f32 %v8404_v34, %v3298_v24  ;;  %v3426_v25 = vmax.f32 %v3304_v10, 0.0 }
 0x7c5   : > { %3581 = vmatprep.mubr.f32.mxu1 %v9274_v28  ;;  %v5702_v37 = vpop.f32.mrf.mxu0 }
 0x7c6   : > { %v3314_v26 = vadd.f32 %v5702_v37, %v8404_v34 }
 0x7c7   : > { %v3308_v48 = vpop.f32.mrf.mxu0 }
 0x7c8   : > { %3582 = vmatmul.mubr.f32.gmra.mxu1 %v3421_v43  ;;  %v3425_v43 = vmax.f32 %v3299_v39, 0.0  ;;  %v3428_v1 = vmax.f32 %v3314_v26, 0.0 }
 0x7c9   : > { %3587 = vmatprep.mubr.f32.mxu1 %v9274_v28  ;;  %v5705_v44 = vpop.f32.mrf.mxu0 }
 0x7ca   : > { %v3324_v10 = vadd.f32 %v5705_v44, %v8404_v34 }
 0x7cb   : > { %v3318_v24 = vpop.f32.mrf.mxu0 }
 0x7cc   : > { %3588 = vmatmul.mubr.f32.gmra.mxu1 %v3422_v36  ;;  %v3309_v36 = vadd.f32 %v8404_v34, %v3308_v48  ;;  %v3430_v37 = vmax.f32 %v3324_v10, 0.0 }
 0x7cd   : > { %3593 = vmatprep.mubr.f32.mxu1 %v9274_v28  ;;  %v5708_v39 = vpop.f32.mrf.mxu0 }
 0x7ce   : > { %v3334_v26 = vadd.f32 %v5708_v39, %v8404_v34 }
 0x7cf   : > { %v3328_v48 = vpop.f32.mrf.mxu0 }
 0x7d0   : > { %3594 = vmatmul.mubr.f32.gmra.mxu1 %v3423_v38  ;;  %v3427_v38 = vmax.f32 %v3309_v36, 0.0  ;;  %v3432_v44 = vmax.f32 %v3334_v26, 0.0 }
 0x7d1   : > { %3599 = vmatprep.mubr.f32.mxu1 %v9274_v28  ;;  %v5711_v36 = vpop.f32.mrf.mxu0 }
 0x7d2   : > { %v3344_v10 = vadd.f32 %v5711_v36, %v8404_v34 }
 0x7d4   : > { %3600 = vmatmul.mubr.f32.gmra.mxu1 %v3424_v14  ;;  %v3319_v14 = vadd.f32 %v8404_v34, %v3318_v24  ;;  %v3338_v24 = vpop.f32.mrf.mxu0  ;;  %v3434_v39 = vmax.f32 %v3344_v10, 0.0 }
 0x7d5   : > { %3605 = vmatprep.mubr.f32.mxu1 %v9274_v28 }
 0x7d8   : > { %3606 = vmatmul.mubr.f32.gmra.mxu1 %v3425_v43  ;;  %v3429_v43 = vmax.f32 %v3319_v14, 0.0  ;;  %v5714_v14 = vpop.f32.mrf.mxu0 }
 0x7d9   : > { %3611 = vmatprep.mubr.f32.mxu1 %v9274_v28  ;;  %v3354_v26 = vadd.f32 %v5714_v14, %v8404_v34 }
 0x7db   : > { %v3436_v36 = vmax.f32 %v3354_v26, 0.0 }
 0x7dc   : > { %3612 = vmatmul.mubr.f32.gmra.mxu1 %v3426_v25  ;;  %v3329_v25 = vadd.f32 %v8404_v34, %v3328_v48  ;;  %v3348_v48 = vpop.f32.mrf.mxu0 }
 0x7dd   : > { %3617 = vmatprep.mubr.f32.mxu1 %v9274_v28 }
 0x7e0   : > { %3618 = vmatmul.mubr.f32.gmra.mxu1 %v3427_v38  ;;  %v3431_v38 = vmax.f32 %v3329_v25, 0.0  ;;  %v5717_v25 = vpop.f32.mrf.mxu0 }
 0x7e1   : > { %3623 = vmatprep.mubr.f32.mxu1 %v9274_v28  ;;  %v3364_v10 = vadd.f32 %v5717_v25, %v8404_v34 }
 0x7e3   : > { %v3438_v14 = vmax.f32 %v3364_v10, 0.0 }
 0x7e4   : > { %3624 = vmatmul.mubr.f32.gmra.mxu1 %v3428_v1  ;;  %v3339_v1 = vadd.f32 %v8404_v34, %v3338_v24  ;;  %v3358_v24 = vpop.f32.mrf.mxu0 }
 0x7e5   : > { %3629 = vmatprep.mubr.f32.mxu1 %v9274_v28 }
 0x7e8   : > { %3630 = vmatmul.mubr.f32.gmra.mxu1 %v3429_v43  ;;  %v3433_v43 = vmax.f32 %v3339_v1, 0.0  ;;  %v5720_v1 = vpop.f32.mrf.mxu0 }
 0x7e9   : > { %3635 = vmatprep.mubr.f32.mxu1 %v9274_v28  ;;  %v3374_v26 = vadd.f32 %v5720_v1, %v8404_v34 }
 0x7eb   : > { %v3440_v25 = vmax.f32 %v3374_v26, 0.0 }
 0x7ec   : > { %3636 = vmatmul.mubr.f32.gmra.mxu1 %v3430_v37  ;;  %v3349_v37 = vadd.f32 %v8404_v34, %v3348_v48  ;;  %v3368_v48 = vpop.f32.mrf.mxu0 }
 0x7ed   : > { %3641 = vmatprep.mubr.f32.mxu1 %v9274_v28 }
 0x7f0   : > { %3642 = vmatmul.mubr.f32.gmra.mxu1 %v3431_v38  ;;  %v3435_v38 = vmax.f32 %v3349_v37, 0.0  ;;  %v5723_v37 = vpop.f32.mrf.mxu0 }
 0x7f1   : > { %3647 = vmatprep.mubr.f32.mxu1 %v9274_v28  ;;  %v3384_v10 = vadd.f32 %v5723_v37, %v8404_v34 }
 0x7f3   : > { %v3442_v1 = vmax.f32 %v3384_v10, 0.0 }
 0x7f4   : > { %3648 = vmatmul.mubr.f32.gmra.mxu1 %v3432_v44  ;;  %v3359_v44 = vadd.f32 %v8404_v34, %v3358_v24  ;;  %v3378_v24 = vpop.f32.mrf.mxu0 }
 0x7f5   : > { %3653 = vmatprep.mubr.f32.mxu1 %v9274_v28 }
 0x7f8   : > { %3654 = vmatmul.mubr.f32.gmra.mxu1 %v3433_v43  ;;  %v3437_v43 = vmax.f32 %v3359_v44, 0.0  ;;  %v5726_v44 = vpop.f32.mrf.mxu0 }
 0x7f9   : > { %3659 = vmatprep.mubr.f32.mxu1 %v9274_v28  ;;  %v3394_v26 = vadd.f32 %v5726_v44, %v8404_v34 }
 0x7fb   : > { %v3444_v37 = vmax.f32 %v3394_v26, 0.0 }
 0x7fc   : > { %3660 = vmatmul.mubr.f32.gmra.mxu1 %v3434_v39  ;;  %v3369_v39 = vadd.f32 %v8404_v34, %v3368_v48  ;;  %v3388_v48 = vpop.f32.mrf.mxu0 }
 0x7fd   : > { %3665 = vmatprep.mubr.f32.mxu1 %v9274_v28 }
 0x800   : > { %3666 = vmatmul.mubr.f32.gmra.mxu1 %v3435_v38  ;;  %v3439_v38 = vmax.f32 %v3369_v39, 0.0  ;;  %v5729_v39 = vpop.f32.mrf.mxu0 }
 0x801   : > { %3671 = vmatprep.mubr.f32.mxu1 %v9274_v28  ;;  %v3404_v10 = vadd.f32 %v5729_v39, %v8404_v34  ;;  %v3885_v39 = vld [vmem:[%s8993_s11 + $0xf8] sm:$0xff] }
 0x802   : > { %5407 = vmatprep.subr.mxu0 %v3885_v39  ;;  %v3878_v39 = vld [vmem:[%s8993_s11 + $0xc0] sm:$0xff] }
 0x803   : > { %v3446_v44 = vmax.f32 %v3404_v10, 0.0  ;;  %v3882_v10 = vld [vmem:[%s8993_s11 + $0xe0] sm:$0xff] }
 0x804   : > { %3672 = vmatmul.mubr.f32.gmra.mxu1 %v3436_v36  ;;  %v3379_v36 = vadd.f32 %v8404_v34, %v3378_v24  ;;  %v3398_v24 = vpop.f32.mrf.mxu0 }
 0x805   : > { %3677 = vmatprep.mubr.f32.mxu1 %v9274_v28 }
 0x808   : > { %3678 = vmatmul.mubr.f32.gmra.mxu1 %v3437_v43  ;;  %v3441_v43 = vmax.f32 %v3379_v36, 0.0  ;;  %v5732_v36 = vpop.f32.mrf.mxu0 }
 0x809   : > { %3683 = vmatprep.mubr.f32.mxu1 %v9274_v28 }
 0x80c   : > { %3684 = vmatmul.mubr.f32.gmra.mxu1 %v3438_v14  ;;  %v3389_v14 = vadd.f32 %v8404_v34, %v3388_v48  ;;  %v3408_v48 = vpop.f32.mrf.mxu0 }
 0x80d   : > { %3689 = vmatprep.mubr.f32.mxu1 %v9274_v28 }
 0x810   : > { %3690 = vmatmul.mubr.f32.gmra.mxu1 %v3439_v38  ;;  %v3443_v38 = vmax.f32 %v3389_v14, 0.0  ;;  %v3414_v14 = vadd.f32 %v5732_v36, %v8404_v34  ;;  %v3867_v36 = vld [vmem:[%s8993_s11 + $0x68] sm:$0xff] }
 0x811   : > { %3695 = vmatprep.mubr.f32.mxu1 %v9274_v28 }
 0x814   : > { %3696 = vmatmul.mubr.f32.gmra.mxu1 %v3440_v25  ;;  %v3399_v25 = vadd.f32 %v8404_v34, %v3398_v24  ;;  %v3869_v24 = vld [vmem:[%s8993_s11 + $0x78] sm:$0xff] }
 0x815   : > { %3701 = vmatprep.mubr.f32.mxu1 %v9274_v28  ;;  %5408 = vmatpush3.msra.mxu0 %v3869_v24  ;;  %v3862_v24 = vld [vmem:[%s8993_s11 + $0x40] sm:$0xff] }
 0x818   : > { %3702 = vmatmul.mubr.f32.gmra.mxu1 %v3441_v43  ;;  %v3445_v43 = vmax.f32 %v3399_v25, 0.0  ;;  %v3883_v25 = vld [vmem:[%s8993_s11 + $0xe8] sm:$0xff] }
 0x819   : > { %3707 = vmatprep.mubr.f32.mxu1 %v9274_v28 }
 0x81c   : > { %3708 = vmatmul.mubr.f32.gmra.mxu1 %v3442_v1  ;;  %v3409_v1 = vadd.f32 %v8404_v34, %v3408_v48  ;;  %v3884_v34 = vld [vmem:[%s8993_s11 + $0xf0] sm:$0xff]  ;;  %v3881_v48 = vld [vmem:[%s8993_s11 + $0xd8] sm:$0xff] }
 0x81d   : > { %3713 = vmatprep.mubr.f32.mxu1 %v9274_v28  ;;  %5409 = vmatprep.subr.mxu0 %v3884_v34  ;;  %v3877_v34 = vld [vmem:[%s8993_s11 + $0xb8] sm:$0xff] }
 0x81e   : > { %v3447_v26 = vmax.f32 %v3409_v1, 0.0  ;;  %v3880_v1 = vld [vmem:[%s8993_s11 + $0xd0] sm:$0xff] }
 0x820   : > { %3714 = vmatmul.mubr.f32.gmra.mxu1 %v3443_v38  ;;  %v3448_v38 = vmax.f32 %v3414_v14, 0.0  ;;  %v3864_v14 = vld [vmem:[%s8993_s11 + $0x50] sm:$0xff] }
 0x821   : > { %3719 = vmatprep.mubr.f32.mxu1 %v9274_v28 }
 0x824   : > { %3720 = vmatmul.mubr.f32.gmra.mxu1 %v3444_v37  ;;  %v3868_v37 = vld [vmem:[%s8993_s11 + $0x70] sm:$0xff] }
 0x825   : > { %3725 = vmatprep.mubr.f32.mxu1 %v9274_v28  ;;  %5410 = vmatpush3.msra.mxu0 %v3868_v37  ;;  %v3861_v37 = vld [vmem:[%s8993_s11 + $0x38] sm:$0xff] }
 0x826   : > { %5411 = vmatprep.subr.mxu0 %v3883_v25  ;;  %v3876_v25 = vld [vmem:[%s8993_s11 + $0xb0] sm:$0xff] }
 0x827   : > { %5412 = vmatpush3.msra.mxu0 %v3867_v36  ;;  %v3860_v36 = vld [vmem:[%s8993_s11 + $0x30] sm:$0xff] }
 0x828   : > { %3726 = vmatmul.mubr.f32.gmra.mxu1 %v3445_v43  ;;  %v3866_v43 = vld [vmem:[%s8993_s11 + $0x60] sm:$0xff]  ;;  %5413 = vmatprep.subr.mxu0 %v3882_v10  ;;  %v3875_v10 = vld [vmem:[%s8993_s11 + $0xa8] sm:$0xff] }
 0x829   : > { %3731 = vmatprep.mubr.f32.mxu1 %v9274_v28  ;;  %5414 = vmatpush3.msra.mxu0 %v3866_v43  ;;  %v3859_v43 = vld [vmem:[%s8993_s11 + $0x28] sm:$0xff] }
 0x82a   : > { %5415 = vmatprep.subr.mxu0 %v3881_v48  ;;  %v3481_v48 = vld [vmem:[#allocation3 + $0x9] sm:$0x3] }
 0x82c   : > { %3732 = vmatmul.mubr.f32.gmra.mxu1 %v3446_v44  ;;  %v3865_v44 = vld [vmem:[%s8993_s11 + $0x58] sm:$0xff] }
 0x82d   : > { %3737 = vmatprep.mubr.f32.mxu1 %v9274_v28  ;;  %5416 = vmatpush3.msra.mxu0 %v3865_v44 }
 0x82e   : > { %5417 = vmatprep.subr.mxu0 %v3880_v1  ;;  %v8538_v1 = vrot.slane %v3481_v48, %v7495_v22 }
 0x82f   : > { %5418 = vmatpush3.msra.mxu0 %v3864_v14 }
 0x830   : > { %3738 = vmatmul.mubr.f32.gmra.mxu1 %v3447_v26  ;;  %v3879_v26 = vld [vmem:[%s8993_s11 + $0xc8] sm:$0xff] }
 0x831   : > { %3743 = vmatprep.mubr.f32.mxu1 %v9274_v28  ;;  %5419 = vmatprep.subr.mxu0 %v3879_v26  ;;  %v9370_v26 = vsub.s32 1, %v7492_v33 }
 0x834   : > { %3744 = vmatmul.mubr.f32.gmra.mxu1 %v3448_v38  ;;  %v3863_v38 = vld [vmem:[%s8993_s11 + $0x48] sm:$0xff] }
 0x835   : > { %5912 = vmatprep.mubr.msk.f32.mxu1 %vm6402_vm4, %v9274_v28  ;;  %5420 = vmatpush3.msra.mxu0 %v3863_v38  ;;  %v8542_v38 = vrot.slane %v3481_v48, %v9370_v26  ;;  %v3874_v48 = vld [vmem:[%s8993_s11 + $0xa0] sm:$0xff] }
 0x836   : > { %5421 = vmatprep.subr.mxu0 %v3878_v39 }
 0x837   : > { %5422 = vmatpush3.msra.mxu0 %v3862_v24 }
 0x838   : > { %5423 = vmatprep.subr.mxu0 %v3877_v34 }
 0x839   : > { %5424 = vmatpush3.msra.mxu0 %v3861_v37 }
 0x83a   : > { %5425 = vmatprep.subr.mxu0 %v3876_v25 }
 0x83b   : > { %5426 = vmatpush3.msra.mxu0 %v3860_v36 }
 0x83c   : > { %5427 = vmatprep.subr.mxu0 %v3875_v10 }
 0x83d   : > { %5428 = vmatpush3.msra.mxu0 %v3859_v43 }
 0x83e   : > { %5429 = vmatprep.subr.mxu0 %v3874_v48 }
 0x878   : > { %v3559_v44 = vpop.f32.mrf.mxu1 }
 0x879   : > { %v3560_v24 = vadd.f32 %v3559_v44, %v8538_v1  ;;  %v3858_v44 = vld [vmem:[%s8993_s11 + $0x20] sm:$0xff] }
 0x87a   : > { %v3561_v14 = vpop.f32.mrf.mxu1  ;;  %5430 = vmatpush3.msra.mxu0 %v3858_v44 }
 0x87b   : > { %v3562_v25 = vadd.f32 %v3561_v14, %v8542_v38  ;;  %v3873_v14 = vld [vmem:[%s8993_s11 + $0x98] sm:$0xff] }
 0x87c   : > { %v3565_v39 = vpop.f32.mrf.mxu1  ;;  %5431 = vmatprep.subr.mxu0 %v3873_v14  ;;  %v3854_v14 = vld [vmem:[%s8993_s11] sm:$0xff] }
 0x87d   : > { %v3566_v34 = vadd.f32 %v3565_v39, %v8538_v1 }
 0x87e   : > { %v3567_v37 = vpop.f32.mrf.mxu1 }
 0x87f   : > { %v3750_v36 = vmax.f32 %v3560_v24, %v3566_v34  ;;  %v3568_v10 = vadd.f32 %v3567_v37, %v8542_v38  ;;  %v3872_v24 = vld [vmem:[%s8993_s11 + $0x90] sm:$0xff] }
 0x880   : > { %v3571_v43 = vpop.f32.mrf.mxu1  ;;  %v3856_v37 = vld [vmem:[%s8993_s11 + $0x10] sm:$0xff] }
 0x881   : > { %v3763_v6 = vmax.f32 %v3562_v25, %v3568_v10  ;;  %v3572_v51 = vadd.f32 %v3571_v43, %v8538_v1  ;;  %v3855_v43 = vld [vmem:[%s8993_s11 + $0x8] sm:$0xff] }
 0x882   : > { %v3573_v47 = vpop.f32.mrf.mxu1 }
 0x883   : > { %v3751_v46 = vmax.f32 %v3750_v36, %v3572_v51  ;;  %v3574_v33 = vadd.f32 %v3573_v47, %v8542_v38  ;;  %v3857_v51 = vld [vmem:[%s8993_s11 + $0x18] sm:$0xff] }
 0x884   : > { %v3577_v26 = vpop.f32.mrf.mxu1  ;;  %5432 = vmatpush3.msra.mxu0 %v3857_v51 }
 0x885   : > { %v3764_v39 = vmax.f32 %v3763_v6, %v3574_v33  ;;  %v3578_v47 = vadd.f32 %v3577_v26, %v8538_v1  ;;  %v3871_v6 = vld [vmem:[%s8993_s11 + $0x88] sm:$0xff]  ;;  %5433 = vmatprep.subr.mxu0 %v3872_v24 }
 0x886   : > { %v3579_v34 = vpop.f32.mrf.mxu1  ;;  %5434 = vmatpush3.msra.mxu0 %v3856_v37 }
 0x887   : > { %v3752_v25 = vmax.f32 %v3751_v46, %v3578_v47  ;;  %v3580_v36 = vadd.f32 %v3579_v34, %v8542_v38  ;;  %v3870_v46 = vld [vmem:[%s8993_s11 + $0x80] sm:$0xff]  ;;  %5435 = vmatprep.subr.mxu0 %v3871_v6  ;;  %v8584_v47 = vld [vmem:[#allocation12 + $0x38] sm:$0xff] }
 0x888   : > { %v3583_v10 = vpop.f32.mrf.mxu1  ;;  %5436 = vmatpush3.msra.mxu0 %v3855_v43 }
 0x889   : > { %v3765_v33 = vmax.f32 %v3764_v39, %v3580_v36  ;;  %v3584_v48 = vadd.f32 %v3583_v10, %v8538_v1  ;;  %5437 = vmatprep.subr.mxu0 %v3870_v46 }
 0x88a   : > { %v3585_v44 = vpop.f32.mrf.mxu1  ;;  %5438 = vmatpush3.msra.mxu0 %v3854_v14 }
 0x88b   : > { %v3753_v26 = vmax.f32 %v3752_v25, %v3584_v48  ;;  %v3586_v51 = vadd.f32 %v3585_v44, %v8542_v38  ;;  %5733 = vmatprep.subr.mxu0 %v8584_v47 }
 0x88c   : > { %v3589_v39 = vpop.f32.mrf.mxu1 }
 0x88d   : > { %v3766_v24 = vmax.f32 %v3765_v33, %v3586_v51  ;;  %v3590_v34 = vadd.f32 %v3589_v39, %v8538_v1 }
 0x88e   : > { %v3591_v37 = vpop.f32.mrf.mxu1 }
 0x88f   : > { %v3754_v36 = vmax.f32 %v3753_v26, %v3590_v34  ;;  %v3592_v6 = vadd.f32 %v3591_v37, %v8542_v38 }
 0x890   : > { %v3595_v10 = vpop.f32.mrf.mxu1 }
 0x891   : > { %v3767_v63 = vmax.f32 %v3766_v24, %v3592_v6  ;;  %v3596_v25 = vadd.f32 %v3595_v10, %v8538_v1 }
 0x892   : > { %v3597_v48 = vpop.f32.mrf.mxu1 }
 0x893   : > { %v3755_v43 = vmax.f32 %v3754_v36, %v3596_v25  ;;  %v3598_v44 = vadd.f32 %v3597_v48, %v8542_v38 }
 0x894   : > { %v3601_v55 = vpop.f32.mrf.mxu1 }
 0x895   : > { %v3768_v46 = vmax.f32 %v3767_v63, %v3598_v44  ;;  %v3602_v33 = vadd.f32 %v3601_v55, %v8538_v1 }
 0x896   : > { %v3603_v51 = vpop.f32.mrf.mxu1 }
 0x897   : > { %v3756_v14 = vmax.f32 %v3755_v43, %v3602_v33  ;;  %v3604_v39 = vadd.f32 %v3603_v51, %v8542_v38 }
 0x898   : > { %v3607_v41 = vpop.f32.mrf.mxu1 }
 0x899   : > { %v3769_v26 = vmax.f32 %v3768_v46, %v3604_v39  ;;  %v3608_v24 = vadd.f32 %v3607_v41, %v8538_v1 }
 0x89a   : > { %v3609_v34 = vpop.f32.mrf.mxu1 }
 0x89b   : > { %v3610_v36 = vadd.f32 %v3609_v34, %v8542_v38 }
 0x89c   : > { %v3613_v37 = vpop.f32.mrf.mxu1 }
 0x89d   : > { %v3614_v6 = vadd.f32 %v3613_v37, %v8538_v1 }
 0x89e   : > { %v3615_v10 = vpop.f32.mrf.mxu1 }
 0x89f   : > { %v3776_v25 = vmax.f32 %v3608_v24, %v3614_v6  ;;  %v3616_v63 = vadd.f32 %v3615_v10, %v8542_v38 }
 0x8a0   : > { %v3619_v48 = vpop.f32.mrf.mxu1 }
 0x8a1   : > { %v3789_v55 = vmax.f32 %v3610_v36, %v3616_v63  ;;  %v3620_v43 = vadd.f32 %v3619_v48, %v8538_v1 }
 0x8a2   : > { %v3621_v44 = vpop.f32.mrf.mxu1 }
 0x8a3   : > { %v3777_v33 = vmax.f32 %v3776_v25, %v3620_v43  ;;  %v3622_v46 = vadd.f32 %v3621_v44, %v8542_v38 }
 0x8a4   : > { %v3625_v51 = vpop.f32.mrf.mxu1 }
 0x8a5   : > { %v3790_v39 = vmax.f32 %v3789_v55, %v3622_v46  ;;  %v3626_v41 = vadd.f32 %v3625_v51, %v8538_v1  ;;  %v3757_v55 = vrot.slane %v3756_v14, 4 }
 0x8a6   : > { %v3627_v20 = vpop.f32.mrf.mxu1 }
 0x8a7   : > { %v3778_v37 = vmax.f32 %v3777_v33, %v3626_v41  ;;  %v3628_v17 = vadd.f32 %v3627_v20, %v8542_v38  ;;  %v3770_v41 = vrot.slane %v3769_v26, 4 }
 0x8a8   : > { %v3631_v34 = vpop.f32.mrf.mxu1 }
 0x8a9   : > { %v3791_v24 = vmax.f32 %v3790_v39, %v3628_v17  ;;  %v3632_v6 = vadd.f32 %v3631_v34, %v8538_v1  ;;  %v3758_v34 = vmax.f32 %v3756_v14, %v3757_v55 }
 0x8aa   : > { %v3633_v10 = vpop.f32.mrf.mxu1 }
 0x8ab   : > { %v3779_v36 = vmax.f32 %v3778_v37, %v3632_v6  ;;  %v3634_v63 = vadd.f32 %v3633_v10, %v8542_v38  ;;  %v3771_v10 = vmax.f32 %v3769_v26, %v3770_v41  ;;  %v3759_v23 = vrot.slane %v3758_v34, 2 }
 0x8ac   : > { %v3637_v48 = vpop.f32.mrf.mxu1 }
 0x8ad   : > { %v3792_v25 = vmax.f32 %v3791_v24, %v3634_v63  ;;  %v3638_v43 = vadd.f32 %v3637_v48, %v8538_v1  ;;  %v3772_v13 = vrot.slane %v3771_v10, 2  ;;  %v3760_v59 = vmax.f32 %v3758_v34, %v3759_v23 }
 0x8ae   : > { %v3639_v44 = vpop.f32.mrf.mxu1 }
 0x8af   : > { %v3780_v46 = vmax.f32 %v3779_v36, %v3638_v43  ;;  %v3640_v51 = vadd.f32 %v3639_v44, %v8542_v38 }
 0x8b0   : > { %v3643_v33 = vpop.f32.mrf.mxu1 }
 0x8b1   : > { %v3793_v20 = vmax.f32 %v3792_v25, %v3640_v51  ;;  %v3644_v17 = vadd.f32 %v3643_v33, %v8538_v1 }
 0x8b2   : > { %v3645_v39 = vpop.f32.mrf.mxu1 }
 0x8b3   : > { %v3781_v8 = vmax.f32 %v3780_v46, %v3644_v17  ;;  %v3646_v37 = vadd.f32 %v3645_v39, %v8542_v38  ;;  %v3773_v17 = vmax.f32 %v3771_v10, %v3772_v13 }
 0x8b4   : > { %v3649_v6 = vpop.f32.mrf.mxu1 }
 0x8b5   : > { %v3794_v24 = vmax.f32 %v3793_v20, %v3646_v37  ;;  %v3650_v63 = vadd.f32 %v3649_v6, %v8538_v1  ;;  %v3761_v20 = vrot.slane %v3760_v59, 1 }
 0x8b6   : > { %v3651_v48 = vpop.f32.mrf.mxu1 }
 0x8b7   : > { %v3782_v36 = vmax.f32 %v3781_v8, %v3650_v63  ;;  %v3652_v43 = vadd.f32 %v3651_v48, %v8542_v38  ;;  %v3774_v8 = vrot.slane %v3773_v17, 1  ;;  %v3762_v61 = vmax.f32 %v3760_v59, %v3761_v20 }
 0x8b8   : > { %v3655_v44 = vpop.f32.mrf.mxu1 }
 0x8b9   : > { %v3783_v25 = vrot.slane %v3782_v36, 4  ;;  %v3795_v51 = vmax.f32 %v3794_v24, %v3652_v43  ;;  %v3775_v23 = vmax.f32 %v3773_v17, %v3774_v8 }
 0x8ba   : > { %v3657_v33 = vpop.f32.mrf.mxu1 }
 0x8bb   : > { %v3784_v14 = vmax.f32 %v3782_v36, %v3783_v25  ;;  %v3796_v55 = vrot.slane %v3795_v51, 4 }
 0x8bc   : > { %v3661_v46 = vpop.f32.mrf.mxu1 }
 0x8bd   : > { %v3785_v39 = vrot.slane %v3784_v14, 2  ;;  %v3797_v26 = vmax.f32 %v3795_v51, %v3796_v55 }
 0x8be   : > { %v3663_v41 = vpop.f32.mrf.mxu1 }
 0x8bf   : > { %v3786_v37 = vmax.f32 %v3784_v14, %v3785_v39  ;;  %v3798_v6 = vrot.slane %v3797_v26, 2  ;;  %v3664_v17 = vadd.f32 %v3663_v41, %v8542_v38 }
 0x8c0   : > { %v3667_v18 = vpop.f32.mrf.mxu1 }
 0x8c1   : > { %v3787_v63 = vrot.slane %v3786_v37, 1  ;;  %v3799_v48 = vmax.f32 %v3797_v26, %v3798_v6 }
 0x8c2   : > { %v3669_v22 = vpop.f32.mrf.mxu1 }
 0x8c3   : > { %v3788_v28 = vmax.f32 %v3786_v37, %v3787_v63  ;;  %v3800_v24 = vrot.slane %v3799_v48, 1  ;;  %v3662_v37 = vadd.f32 %v3661_v46, %v8538_v1  ;;  %v3668_v63 = vadd.f32 %v3667_v18, %v8538_v1 }
 0x8c4   : > { %v3673_v43 = vpop.f32.mrf.mxu1 }
 0x8c5   : > { %v3801_v34 = vmax.f32 %v3799_v48, %v3800_v24  ;;  %v8610_v36 = vsel %vm2384_vm1, %v3788_v28, %v3762_v61  ;;  %v3656_v28 = vadd.f32 %v3655_v44, %v8538_v1  ;;  %v3658_v61 = vadd.f32 %v3657_v33, %v8542_v38 }
 0x8c6   : > { %v3675_v13 = vpop.f32.mrf.mxu1  ;;  %v3670_v48 = vadd.f32 %v3669_v22, %v8542_v38  ;;  %v3674_v12 = vadd.f32 %v3673_v43, %v8538_v1 }
 0x8c7   : > { %v8613_v10 = vsel %vm2384_vm1, %v3801_v34, %v3775_v23  ;;  %v3802_v23 = vmax.f32 %v3656_v28, %v3662_v37  ;;  %v3815_v34 = vmax.f32 %v3658_v61, %v3664_v17  ;;  %v3676_v30 = vadd.f32 %v3675_v13, %v8542_v38 }
 0x8c8   : > { %v3679_v25 = vpop.f32.mrf.mxu1 }
 0x8c9   : > { %v3803_v46 = vmax.f32 %v3802_v23, %v3668_v63  ;;  %v3816_v0 = vmax.f32 %v3815_v34, %v3670_v48  ;;  %v3680_v41 = vadd.f32 %v3679_v25, %v8538_v1 }
 0x8ca   : > { %v3681_v51 = vpop.f32.mrf.mxu1 }
 0x8cb   : > { %v3682_v44 = vadd.f32 %v3681_v51, %v8542_v38  ;;  %v3804_v33 = vmax.f32 %v3803_v46, %v3674_v12  ;;  %v3817_v62 = vmax.f32 %v3816_v0, %v3676_v30 }
 0x8cc   : > { %v3685_v14 = vpop.f32.mrf.mxu1 }
 0x8cd   : > { %v3686_v18 = vadd.f32 %v3685_v14, %v8538_v1  ;;  %v3805_v17 = vmax.f32 %v3804_v33, %v3680_v41  ;;  %v3818_v28 = vmax.f32 %v3817_v62, %v3682_v44 }
 0x8ce   : > { %v3687_v55 = vpop.f32.mrf.mxu1 }
 0x8cf   : > { %v3688_v22 = vadd.f32 %v3687_v55, %v8542_v38  ;;  %v3806_v63 = vmax.f32 %v3805_v17, %v3686_v18 }
 0x8d0   : > { %v3691_v39 = vpop.f32.mrf.mxu1 }
 0x8d1   : > { %v3692_v43 = vadd.f32 %v3691_v39, %v8538_v1  ;;  %v3819_v48 = vmax.f32 %v3818_v28, %v3688_v22 }
 0x8d2   : > { %v3693_v26 = vpop.f32.mrf.mxu1 }
 0x8d3   : > { %v3694_v13 = vadd.f32 %v3693_v26, %v8542_v38  ;;  %v3807_v30 = vmax.f32 %v3806_v63, %v3692_v43 }
 0x8d4   : > { %v3697_v6 = vpop.f32.mrf.mxu1 }
 0x8d5   : > { %v3698_v25 = vadd.f32 %v3697_v6, %v8538_v1  ;;  %v3820_v14 = vmax.f32 %v3819_v48, %v3694_v13 }
 0x8d6   : > { %v3699_v59 = vpop.f32.mrf.mxu1 }
 0x8d7   : > { %v3700_v51 = vadd.f32 %v3699_v59, %v8542_v38  ;;  %v3808_v26 = vmax.f32 %v3807_v30, %v3698_v25 }
 0x8d8   : > { %v3703_v20 = vpop.f32.mrf.mxu1 }
 0x8d9   : > { %v3704_v23 = vadd.f32 %v3703_v20, %v8538_v1  ;;  %v3821_v34 = vmax.f32 %v3820_v14, %v3700_v51 }
 0x8da   : > { %v3705_v8 = vpop.f32.mrf.mxu1 }
 0x8db   : > { %v3706_v41 = vadd.f32 %v3705_v8, %v8542_v38  ;;  %v3822_v17 = vrot.slane %v3821_v34, 4 }
 0x8dc   : > { %v3709_v24 = vpop.f32.mrf.mxu1 }
 0x8dd   : > { %v3710_v0 = vadd.f32 %v3709_v24, %v8538_v1  ;;  %v3823_v51 = vmax.f32 %v3821_v34, %v3822_v17 }
 0x8de   : > { %v3711_v4 = vpop.f32.mrf.mxu1 }
 0x8df   : > { %v3712_v62 = vadd.f32 %v3711_v4, %v8542_v38  ;;  %v3828_v6 = vmax.f32 %v3704_v23, %v3710_v0  ;;  %v3809_v4 = vrot.slane %v3808_v26, 4 }
 0x8e0   : > { %v3715_v31 = vpop.f32.mrf.mxu1 }
 0x8e1   : > { %v3716_v39 = vadd.f32 %v3715_v31, %v8538_v1  ;;  %v3841_v33 = vmax.f32 %v3706_v41, %v3712_v62  ;;  %v3810_v0 = vmax.f32 %v3808_v26, %v3809_v4  ;;  %v3824_v41 = vrot.slane %v3823_v51, 2 }
 0x8e2   : > { %v3717_v37 = vpop.f32.mrf.mxu1 }
 0x8e3   : > { %v3718_v59 = vadd.f32 %v3717_v37, %v8542_v38  ;;  %v3829_v18 = vmax.f32 %v3828_v6, %v3716_v39 }
 0x8e4   : > { %v3721_v61 = vpop.f32.mrf.mxu1 }
 0x8e5   : > { %v3722_v44 = vadd.f32 %v3721_v61, %v8538_v1  ;;  %v3842_v28 = vmax.f32 %v3841_v33, %v3718_v59  ;;  %v3811_v59 = vrot.slane %v3810_v0, 2 }
 0x8e6   : > { %v3723_v12 = vpop.f32.mrf.mxu1 }
 0x8e7   : > { %v3724_v22 = vadd.f32 %v3723_v12, %v8542_v38  ;;  %v3830_v43 = vmax.f32 %v3829_v18, %v3722_v44  ;;  %v3812_v26 = vmax.f32 %v3810_v0, %v3811_v59  ;;  %v4334_v59 = vld [vmem:[%s8995_s13 + $0x68] sm:$0xff] }
 0x8e8   : > { %v3727_v55 = vpop.f32.mrf.mxu1 }
 0x8e9   : > { %v3728_v20 = vadd.f32 %v3727_v55, %v8538_v1  ;;  %v3843_v37 = vmax.f32 %v3842_v28, %v3724_v22  ;;  %v3825_v22 = vmax.f32 %v3823_v51, %v3824_v41  ;;  %v9372_v41 = vmax.f32 %v8008_v49, 0.0 }
 0x8ea   : > { %v3729_v46 = vpop.f32.mrf.mxu1  ;;  %v9374_v49 = vmax.f32 %v8022_v58, 0.0  ;;  %v9376_v58 = vmax.f32 %v8054_v53, 0.0  ;;  %v9378_v53 = vmax.f32 %v8082_v60, 0.0  ;;  %v9380_v60 = vmax.f32 %v8116_v42, 0.0 }
 0x8eb   : > { %v3730_v13 = vadd.f32 %v3729_v46, %v8542_v38  ;;  %v3831_v48 = vmax.f32 %v3830_v43, %v3728_v20  ;;  %v3826_v28 = vrot.slane %v3825_v22, 1  ;;  %v3813_v43 = vrot.slane %v3812_v26, 1 }
 0x8ec   : > { %v3733_v24 = vpop.f32.mrf.mxu1  ;;  %v9383_v42 = vmax.f32 %v8140_v40, 0.0  ;;  %v9388_v40 = vmax.f32 %v8220_v7, 0.0  ;;  %v9393_v7 = vmax.f32 %v8291_v56, 0.0 }
 0x8ed   : > { %v3734_v8 = vadd.f32 %v3733_v24, %v8538_v1  ;;  %v3844_v30 = vmax.f32 %v3843_v37, %v3730_v13  ;;  %v3827_v37 = vmax.f32 %v3825_v22, %v3826_v28  ;;  %v4328_v22 = vld [vmem:[%s8995_s13 + $0x38] sm:$0xff] }
 0x8ee   : > { %v3735_v31 = vpop.f32.mrf.mxu1  ;;  %v9397_v28 = vld [vmem:[#allocation30_spill] sm:$0xff] }
 0x8ef   : > { %v3736_v61 = vadd.f32 %v3735_v31, %v8542_v38  ;;  %v3832_v14 = vmax.f32 %v3831_v48, %v3734_v8  ;;  %v3814_v48 = vmax.f32 %v3812_v26, %v3813_v43  ;;  %v4327_v26 = vld [vmem:[%s8995_s13 + $0x30] sm:$0xff]  ;;  %v9399_v43 = vld [vmem:[#allocation35_spill] sm:$0xff] }
 0x8f0   : > { %v3739_v63 = vpop.f32.mrf.mxu1  ;;  %v9400_v56 = vmax.f32 %v9399_v43, 0.0 }
 0x8f1   : > { %v3740_v25 = vadd.f32 %v3739_v63, %v8538_v1  ;;  %v3845_v62 = vmax.f32 %v3844_v30, %v3736_v61  ;;  %v3902_v0 = vsel %vm2386_vm2, %v3814_v48, %v8610_v36  ;;  %v3981_v36 = vld [vmem:[#allocation12 + $0x10] sm:$0xff]  ;;  %v4325_v48 = vld [vmem:[%s8995_s13 + $0x20] sm:$0xff] }
 0x8f2   : > { %v3741_v12 = vpop.f32.mrf.mxu1 }
 0x8f3   : > { %v3742_v55 = vadd.f32 %v3741_v12, %v8542_v38  ;;  %v3833_v39 = vmax.f32 %v3832_v14, %v3740_v25  ;;  %v3985_v14 = vld [vmem:[#allocation12 + $0x30] sm:$0xff] }
 0x8f4   : > { %v3745_v23 = vpop.f32.mrf.mxu1 }
 0x8f5   : > { %v3746_v46 = vadd.f32 %v3745_v23, %v8538_v1  ;;  %v3846_v44 = vmax.f32 %v3845_v62, %v3742_v55  ;;  %v9371_v55 = vmax.f32 %v8004_v5, 0.0  ;;  %v3984_v23 = vld [vmem:[#allocation12 + $0x28] sm:$0xff]  ;;  %v3982_v62 = vld [vmem:[#allocation12 + $0x18] sm:$0xff]  ;;  %v4336_v5 = vld [vmem:[%s8995_s13 + $0x78] sm:$0xff] }
 0x8f6   : > { %v3747_v6 = vpop.f32.mrf.mxu1 }
 0x8f7   : > { %v3834_v24 = vmax.f32 %v3833_v39, %v3746_v46  ;;  %v3748_v33 = vadd.f32 %v3747_v6, %v8542_v38  ;;  %v3905_v38 = vsel %vm2386_vm2, %v3827_v37, %v8613_v10  ;;  %v3983_v10 = vld [vmem:[#allocation12 + $0x20] sm:$0xff]  ;;  %v3980_v39 = vld [vmem:[#allocation12 + $0x8] sm:$0xff]  ;;  %v4335_v46 = vld [vmem:[%s8995_s13 + $0x70] sm:$0xff]  ;;  %v9373_v6 = vmax.f32 %v8011_v35, 0.0 }
 0x8f8   : > { %v9375_v35 = vmax.f32 %v8030_v3, 0.0  ;;  %v9377_v3 = vmax.f32 %v8060_v54, 0.0  ;;  %v9379_v54 = vmax.f32 %v8088_v29, 0.0  ;;  %v9381_v29 = vmax.f32 %v8122_v16, 0.0 }
 0x8f9   : > { %v3835_v18 = vrot.slane %v3834_v24, 4  ;;  %v3847_v34 = vmax.f32 %v3846_v44, %v3748_v33  ;;  %v4333_v44 = vld [vmem:[%s8995_s13 + $0x60] sm:$0xff]  ;;  %v4331_v33 = vld [vmem:[%s8995_s13 + $0x50] sm:$0xff]  ;;  %v9384_v16 = vmax.f32 %v8171_v11, 0.0  ;;  %v9389_v11 = vmax.f32 %v8239_v32, 0.0 }
 0x8fa   : > { %v9394_v32 = vmax.f32 %v8306_v19, 0.0 }
 0x8fb   : > { %v3836_v20 = vmax.f32 %v3834_v24, %v3835_v18  ;;  %v3848_v4 = vrot.slane %v3847_v34, 4  ;;  %v4332_v24 = vld [vmem:[%s8995_s13 + $0x58] sm:$0xff]  ;;  %v4330_v18 = vld [vmem:[%s8995_s13 + $0x48] sm:$0xff] }
 0x8fd   : > { %v3837_v17 = vrot.slane %v3836_v20, 2  ;;  %v3849_v31 = vmax.f32 %v3847_v34, %v3848_v4  ;;  %v4329_v34 = vld [vmem:[%s8995_s13 + $0x40] sm:$0xff]  ;;  %v9382_v4 = vmax.f32 %v8132_v57, 0.0  ;;  %v9387_v57 = vmax.f32 %v8203_v15, 0.0 }
 0x8fe   : > { %v9392_v15 = vmax.f32 %v8288_v2, 0.0  ;;  %v9398_v2 = vmax.f32 %v9397_v28, 0.0 }
 0x8ff   : > { %v3838_v13 = vmax.f32 %v3836_v20, %v3837_v17  ;;  %v3850_v8 = vrot.slane %v3849_v31, 2  ;;  %v4326_v20 = vld [vmem:[%s8995_s13 + $0x28] sm:$0xff]  ;;  %v9385_v17 = vmax.f32 %v8174_v52, 0.0  ;;  %v9390_v52 = vmax.f32 %v8257_v21, 0.0 }
 0x900   : > { %v9395_v21 = vmax.f32 %v8312_v45, 0.0 }
 0x901   : > { %v3839_v1 = vrot.slane %v3838_v13, 1  ;;  %v3851_v63 = vmax.f32 %v3849_v31, %v3850_v8  ;;  %v9386_v31 = vmax.f32 %v8195_v27, 0.0  ;;  %v9391_v27 = vmax.f32 %v8264_v50, 0.0  ;;  %v9403_v8 = vld [vmem:[#allocation28_spill] sm:$0xff] }
 0x902   : > { %v9396_v50 = vmax.f32 %v8333_v9, 0.0  ;;  %v9404_v45 = vmax.f32 %v9403_v8, 0.0 }
 0x903   : > { %v3852_v61 = vrot.slane %v3851_v63, 1  ;;  %v3840_v25 = vmax.f32 %v3838_v13, %v3839_v1  ;;  %v9401_v13 = vld [vmem:[#allocation31_spill] sm:$0xff]  ;;  %v9405_v1 = vld [vmem:[#allocation37_spill] sm:$0xff] }
 0x904   : > { %v9402_v19 = vmax.f32 %v9401_v13, 0.0  ;;  %v9406_v9 = vmax.f32 %v9405_v1, 0.0 }
 0x905   : > { %v3853_v12 = vmax.f32 %v3851_v63, %v3852_v61  ;;  %v3903_v30 = vsel %vm2388_vm3, %v3840_v25, %v3902_v0  ;;  %v9407_v63 = vld [vmem:[#allocation40_spill] sm:$0xff]  ;;  %v4324_v61 = vld [vmem:[%s8995_s13 + $0x18] sm:$0xff] }
 0x906   : > { %v9408_v37 = vmax.f32 %v9407_v63, 0.0  ;;  %v4323_v25 = vld [vmem:[%s8995_s13 + $0x10] sm:$0xff] }
 0x907   : > { %v3906_v51 = vsel %vm2388_vm3, %v3853_v12, %v3905_v38  ;;  %v4322_v12 = vld [vmem:[%s8995_s13 + $0x8] sm:$0xff]  ;;  %v4321_v38 = vld [vmem:[%s8995_s13] sm:$0xff] }
 0x908   : > { %3973 = vmatprep.mubr.f32.mxu0 %v3906_v51  ;;  %v9409_v51 = vmov 0.0  }
 0x909   : > { %3974 = vmatmul.mubr.f32.vlgmr.msra.gmra.mxu0 %v3903_v30  ;;  %v5220_v30 = vld [vmem:[#allocation3 + $0xb] ss:$0 sm:$0xff] }
 0x90a   : > { %5734 = vmatpush3.msra.mxu0 %v8584_v47  ;;  %5749 = vmatprep.mubr.msk.f32.mxu0 %vm1514_vm0, %v9371_v55  ;;  %v3979_v47 = vld [vmem:[#allocation12] sm:$0xff] }
 0x90b   : > { %5735 = vmatprep.subr.mxu0 %v3985_v14 }
 0x90c   : > { %5736 = vmatpush3.msra.mxu0 %v3985_v14 }
 0x90d   : > { %5737 = vmatprep.subr.mxu0 %v3984_v23 }
 0x90e   : > { %5738 = vmatpush3.msra.mxu0 %v3984_v23 }
 0x90f   : > { %5739 = vmatprep.subr.mxu0 %v3983_v10 }
 0x910   : > { %5740 = vmatpush3.msra.mxu0 %v3983_v10  ;;  %v9410_v10 = vld [vmem:[#allocation115_spill] sm:$0xff] }
 0x911   : > { %5741 = vmatprep.subr.mxu0 %v3982_v62 }
 0x912   : > { %5742 = vmatpush3.msra.mxu0 %v3982_v62 }
 0x913   : > { %5743 = vmatprep.subr.mxu0 %v3981_v36 }
 0x914   : > { %5744 = vmatpush3.msra.mxu0 %v3981_v36 }
 0x915   : > { %5745 = vmatprep.subr.mxu0 %v3980_v39 }
 0x916   : > { %5746 = vmatpush3.msra.mxu0 %v3980_v39  ;;  %v9411_v39 = vld [vmem:[#allocation114_spill] sm:$0xff] }
 0x917   : > { %5747 = vmatprep.subr.mxu0 %v3979_v47 }
 0x918   : > { %5748 = vmatpush3.msra.mxu0 %v3979_v47 }
 0x919   : > { %5750 = vmatmul.mubr.msk.f32.vlgmr.msra.gmra.mxu0 %vm1514_vm0, %v9372_v41  ;;  %5797 = vmatprep.subr.mxu0 %v4336_v5 }
 0x91a   : > { %5752 = vmatprep.mubr.msk.f32.mxu0 %vm1514_vm0, %v9373_v6  ;;  %5798 = vmatpush3.msra.mxu0 %v4336_v5 }
 0x91b   : > { %5799 = vmatprep.subr.mxu0 %v4335_v46 }
 0x91c   : > { %5800 = vmatpush3.msra.mxu0 %v4335_v46 }
 0x91d   : > { %5753 = vmatmul.mubr.msk.f32.gmra.mxu0 %vm1514_vm0, %v9374_v49  ;;  %5801 = vmatprep.subr.mxu0 %v4334_v59 }
 0x91e   : > { %5755 = vmatprep.mubr.msk.f32.mxu0 %vm1514_vm0, %v9375_v35  ;;  %5802 = vmatpush3.msra.mxu0 %v4334_v59 }
 0x91f   : > { %5803 = vmatprep.subr.mxu0 %v4333_v44 }
 0x920   : > { %5804 = vmatpush3.msra.mxu0 %v4333_v44 }
 0x921   : > { %5756 = vmatmul.mubr.msk.f32.gmra.mxu0 %vm1514_vm0, %v9376_v58  ;;  %5805 = vmatprep.subr.mxu0 %v4332_v24 }
 0x922   : > { %5758 = vmatprep.mubr.msk.f32.mxu0 %vm1514_vm0, %v9377_v3  ;;  %5806 = vmatpush3.msra.mxu0 %v4332_v24 }
 0x923   : > { %5807 = vmatprep.subr.mxu0 %v4331_v33 }
 0x924   : > { %5808 = vmatpush3.msra.mxu0 %v4331_v33 }
 0x925   : > { %5759 = vmatmul.mubr.msk.f32.gmra.mxu0 %vm1514_vm0, %v9378_v53  ;;  %5809 = vmatprep.subr.mxu0 %v4330_v18 }
 0x926   : > { %5761 = vmatprep.mubr.msk.f32.mxu0 %vm1514_vm0, %v9379_v54  ;;  %5810 = vmatpush3.msra.mxu0 %v4330_v18 }
 0x927   : > { %5811 = vmatprep.subr.mxu0 %v4329_v34 }
 0x928   : > { %5812 = vmatpush3.msra.mxu0 %v4329_v34 }
 0x929   : > { %5762 = vmatmul.mubr.msk.f32.gmra.mxu0 %vm1514_vm0, %v9380_v60  ;;  %5813 = vmatprep.subr.mxu0 %v4328_v22 }
 0x92a   : > { %5764 = vmatprep.mubr.msk.f32.mxu0 %vm1514_vm0, %v9381_v29  ;;  %5814 = vmatpush3.msra.mxu0 %v4328_v22 }
 0x92b   : > { %5815 = vmatprep.subr.mxu0 %v4327_v26 }
 0x92c   : > { %5816 = vmatpush3.msra.mxu0 %v4327_v26 }
 0x92d   : > { %5765 = vmatmul.mubr.msk.f32.gmra.mxu0 %vm1514_vm0, %v9382_v4  ;;  %5817 = vmatprep.subr.mxu0 %v4326_v20 }
 0x92e   : > { %5767 = vmatprep.mubr.msk.f32.mxu0 %vm1514_vm0, %v9383_v42  ;;  %5818 = vmatpush3.msra.mxu0 %v4326_v20 }
 0x92f   : > { %5819 = vmatprep.subr.mxu0 %v4325_v48 }
 0x930   : > { %5820 = vmatpush3.msra.mxu0 %v4325_v48 }
 0x931   : > { %5768 = vmatmul.mubr.msk.f32.gmra.mxu0 %vm1514_vm0, %v9384_v16  ;;  %5821 = vmatprep.subr.mxu0 %v4324_v61 }
 0x932   : > { %5770 = vmatprep.mubr.msk.f32.mxu0 %vm1514_vm0, %v9385_v17  ;;  %5822 = vmatpush3.msra.mxu0 %v4324_v61 }
 0x933   : > { %5823 = vmatprep.subr.mxu0 %v4323_v25 }
 0x934   : > { %5824 = vmatpush3.msra.mxu0 %v4323_v25 }
 0x935   : > { %5771 = vmatmul.mubr.msk.f32.gmra.mxu0 %vm1514_vm0, %v9386_v31  ;;  %5825 = vmatprep.subr.mxu0 %v4322_v12 }
 0x936   : > { %5773 = vmatprep.mubr.msk.f32.mxu0 %vm1514_vm0, %v9387_v57  ;;  %5826 = vmatpush3.msra.mxu0 %v4322_v12 }
 0x937   : > { %5827 = vmatprep.subr.mxu0 %v4321_v38 }
 0x938   : > { %5828 = vmatpush3.msra.mxu0 %v4321_v38 }
 0x939   : > { %5774 = vmatmul.mubr.msk.f32.gmra.mxu0 %vm1514_vm0, %v9388_v40  ;;  %5877 = vmatprep.subr.mxu0 %v9409_v51 }
 0x93a   : > { %5776 = vmatprep.mubr.msk.f32.mxu0 %vm1514_vm0, %v9389_v11 }
 0x93d   : > { %5777 = vmatmul.mubr.msk.f32.gmra.mxu0 %vm1514_vm0, %v9390_v52 }
 0x93e   : > { %5779 = vmatprep.mubr.msk.f32.mxu0 %vm1514_vm0, %v9391_v27 }
 0x941   : > { %5780 = vmatmul.mubr.msk.f32.gmra.mxu0 %vm1514_vm0, %v9392_v15 }
 0x942   : > { %5782 = vmatprep.mubr.msk.f32.mxu0 %vm1514_vm0, %v9393_v7 }
 0x945   : > { %5783 = vmatmul.mubr.msk.f32.gmra.mxu0 %vm1514_vm0, %v9394_v32 }
 0x946   : > { %5785 = vmatprep.mubr.msk.f32.mxu0 %vm1514_vm0, %v9395_v21 }
 0x949   : > { %5786 = vmatmul.mubr.msk.f32.gmra.mxu0 %vm1514_vm0, %v9396_v50 }
 0x94a   : > { %5788 = vmatprep.mubr.msk.f32.mxu0 %vm1514_vm0, %v9398_v2 }
 0x94d   : > { %5789 = vmatmul.mubr.msk.f32.gmra.mxu0 %vm1514_vm0, %v9400_v56 }
 0x94e   : > { %5791 = vmatprep.mubr.msk.f32.mxu0 %vm1514_vm0, %v9402_v19 }
 0x951   : > { %5792 = vmatmul.mubr.msk.f32.gmra.mxu0 %vm1514_vm0, %v9404_v45 }
 0x952   : > { %5794 = vmatprep.mubr.msk.f32.mxu0 %vm1514_vm0, %v9406_v9 }
 0x955   : > { %5795 = vmatmul.mubr.msk.f32.gmra.mxu0 %vm1514_vm0, %v9408_v37 }
 0x9c9   : > { %v5439_v0 = vpop.f32.mrf.mxu0 }
 0x9cb   : > { %v5440_v14 = vpop.f32.mrf.mxu0 }
 0x9cc   : > { %v5441_v55 = vadd.f32 %v5440_v14, %v5439_v0 }
 0x9ce   : > { %v3976_v23 = vadd.f32 %v5441_v55, %v5220_v30 }
 0x9d0   : > { %v4219_v62 = vrot.slane %v3976_v23, %v9410_v10 }
 0x9d2   : > { %v8801_v36 = vrot.slane %v4219_v62, %v9410_v10  ;;  %v4220_v58 = vcombine.high %v4219_v62, %v4219_v62 }
 0x9d4   : > { %v4240_v47 = vrot.slane %v8801_v36, %v9411_v39  ;;  %v8806_v26 = vrot.slane %v4220_v58, %v9410_v10  ;;  %v4235_v45 = vcombine.high %v8801_v36, %v8801_v36 }
 0x9d6   : > { %v4244_v17 = vrot.slane %v8806_v26, %v9411_v39  ;;  %v4248_v25 = vrot.slane %v4235_v45, %v9411_v39  ;;  %v4689_v45 = vld [vmem:[#allocation14 + $0x20] sm:$0xff] }
 0x9d9   : > { %v5751_v5 = vpop.f32.mrf.mxu0 }
 0x9da   : > { %v4258_v46 = vadd.f32 %v5751_v5, %v4240_v47 }
 0x9db   : > { %v4053_v41 = vpop.f32.mrf.mxu0 }
 0x9dc   : > { %v4257_v6 = vadd.f32 %v4240_v47, %v4053_v41  ;;  %v4290_v49 = vmax.f32 %v4258_v46, 0.0 }
 0x9dd   : > { %v5754_v59 = vpop.f32.mrf.mxu0 }
 0x9de   : > { %v4289_v44 = vmax.f32 %v4257_v6, 0.0  ;;  %v4260_v35 = vadd.f32 %v5754_v59, %v4240_v47 }
 0x9df   : > { %v4063_v24 = vpop.f32.mrf.mxu0 }
 0x9e0   : > { %v4259_v33 = vadd.f32 %v4240_v47, %v4063_v24  ;;  %5829 = vmatprep.mubr.f32.mxu0 %v4289_v44  ;;  %v4292_v34 = vmax.f32 %v4260_v35, 0.0  ;;  %v4236_v35 = vcombine.high %v8806_v26, %v8806_v26 }
 0x9e1   : > { %v5757_v3 = vpop.f32.mrf.mxu0  ;;  %5830 = vmatmul.mubr.f32.vlgmr.msra.gmra.mxu0 %v4290_v49 }
 0x9e2   : > { %v4291_v18 = vmax.f32 %v4259_v33, 0.0  ;;  %v4262_v53 = vadd.f32 %v5757_v3, %v4240_v47 }
 0x9e3   : > { %v4073_v54 = vpop.f32.mrf.mxu0 }
 0x9e4   : > { %v4261_v22 = vadd.f32 %v4240_v47, %v4073_v54  ;;  %5832 = vmatprep.mubr.f32.mxu0 %v4291_v18  ;;  %v4294_v20 = vmax.f32 %v4262_v53, 0.0  ;;  %v4252_v53 = vrot.slane %v4236_v35, %v9411_v39 }
 0x9e5   : > { %v5760_v60 = vpop.f32.mrf.mxu0  ;;  %5833 = vmatmul.mubr.f32.gmra.mxu0 %v4292_v34 }
 0x9e6   : > { %v4293_v29 = vmax.f32 %v4261_v22, 0.0  ;;  %v4264_v4 = vadd.f32 %v5760_v60, %v4240_v47 }
 0x9e7   : > { %v4083_v42 = vpop.f32.mrf.mxu0 }
 0x9e8   : > { %v4263_v16 = vadd.f32 %v4240_v47, %v4083_v42  ;;  %5835 = vmatprep.mubr.f32.mxu0 %v4293_v29  ;;  %v4296_v40 = vmax.f32 %v4264_v4, 0.0 }
 0x9e9   : > { %v5763_v31 = vpop.f32.mrf.mxu0  ;;  %5836 = vmatmul.mubr.f32.gmra.mxu0 %v4294_v20 }
 0x9ea   : > { %v4295_v57 = vmax.f32 %v4263_v16, 0.0  ;;  %v4266_v11 = vadd.f32 %v5763_v31, %v4244_v17 }
 0x9eb   : > { %v4093_v52 = vpop.f32.mrf.mxu0 }
 0x9ec   : > { %v4265_v27 = vadd.f32 %v4244_v17, %v4093_v52  ;;  %5838 = vmatprep.mubr.f32.mxu0 %v4295_v57  ;;  %v4298_v32 = vmax.f32 %v4266_v11, 0.0 }
 0x9ed   : > { %v5766_v15 = vpop.f32.mrf.mxu0  ;;  %5839 = vmatmul.mubr.f32.gmra.mxu0 %v4296_v40 }
 0x9ee   : > { %v4297_v7 = vmax.f32 %v4265_v27, 0.0  ;;  %v4268_v21 = vadd.f32 %v5766_v15, %v4244_v17 }
 0x9ef   : > { %v4103_v50 = vpop.f32.mrf.mxu0 }
 0x9f0   : > { %v4267_v28 = vadd.f32 %v4244_v17, %v4103_v50  ;;  %5841 = vmatprep.mubr.f32.mxu0 %v4297_v7  ;;  %v4300_v56 = vmax.f32 %v4268_v21, 0.0 }
 0x9f1   : > { %v5769_v2 = vpop.f32.mrf.mxu0  ;;  %5842 = vmatmul.mubr.f32.gmra.mxu0 %v4298_v32 }
 0x9f2   : > { %v4299_v43 = vmax.f32 %v4267_v28, 0.0  ;;  %v4270_v13 = vadd.f32 %v5769_v2, %v4244_v17 }
 0x9f3   : > { %v4113_v19 = vpop.f32.mrf.mxu0 }
 0x9f4   : > { %v4269_v8 = vadd.f32 %v4244_v17, %v4113_v19  ;;  %5844 = vmatprep.mubr.f32.mxu0 %v4299_v43  ;;  %v4302_v63 = vmax.f32 %v4270_v13, 0.0  ;;  %v4692_v13 = vld [vmem:[#allocation14 + $0x38] sm:$0xff]  ;;  %v4691_v19 = vld [vmem:[#allocation14 + $0x30] sm:$0xff] }
 0x9f5   : > { %v5772_v1 = vpop.f32.mrf.mxu0  ;;  %5845 = vmatmul.mubr.f32.gmra.mxu0 %v4300_v56 }
 0x9f6   : > { %v4301_v9 = vmax.f32 %v4269_v8, 0.0  ;;  %v4272_v37 = vadd.f32 %v5772_v1, %v4244_v17  ;;  %5878 = vmatpush3.msra.mxu0 %v4692_v13  ;;  %v4690_v8 = vld [vmem:[#allocation14 + $0x28] sm:$0xff]  ;;  %v4688_v1 = vld [vmem:[#allocation14 + $0x18] sm:$0xff] }
 0x9f7   : > { %v4123_v48 = vpop.f32.mrf.mxu0  ;;  %5879 = vmatprep.subr.mxu0 %v9409_v51 }
 0x9f8   : > { %v4271_v61 = vadd.f32 %v4244_v17, %v4123_v48  ;;  %5847 = vmatprep.mubr.f32.mxu0 %v4301_v9  ;;  %v4304_v0 = vmax.f32 %v4272_v37, 0.0  ;;  %5880 = vmatpush3.msra.mxu0 %v4691_v19  ;;  %v4687_v9 = vld [vmem:[#allocation14 + $0x10] sm:$0xff]  ;;  %v4685_v37 = vld [vmem:[#allocation14] sm:$0xff] }
 0x9f9   : > { %v5775_v12 = vpop.f32.mrf.mxu0  ;;  %5848 = vmatmul.mubr.f32.gmra.mxu0 %v4302_v63  ;;  %5881 = vmatprep.subr.mxu0 %v9409_v51  ;;  %v4686_v63 = vld [vmem:[#allocation14 + $0x8] sm:$0xff]  ;;  %v4787_v48 = vld [vmem:[%s8997_s15 + $0x38] sm:$0xff] }
 0x9fa   : > { %v4303_v38 = vmax.f32 %v4271_v61, 0.0  ;;  %v4274_v30 = vadd.f32 %v5775_v12, %v4248_v25  ;;  %5882 = vmatpush3.msra.mxu0 %v4690_v8  ;;  %v4786_v61 = vld [vmem:[%s8997_s15 + $0x30] sm:$0xff]  ;;  %5897 = vmatpush3.msra.mxu1 %v4787_v48  ;;  %v4784_v12 = vld [vmem:[%s8997_s15 + $0x20] sm:$0xff] }
 0x9fb   : > { %v4133_v14 = vpop.f32.mrf.mxu0  ;;  %5883 = vmatprep.subr.mxu0 %v9409_v51  ;;  %5898 = vmatprep.subr.mxu1 %v9409_v51 }
 0x9fc   : > { %v4273_v55 = vadd.f32 %v4248_v25, %v4133_v14  ;;  %5850 = vmatprep.mubr.f32.mxu0 %v4303_v38  ;;  %v4306_v62 = vmax.f32 %v4274_v30, 0.0  ;;  %5884 = vmatpush3.msra.mxu0 %v4689_v45  ;;  %v4783_v38 = vld [vmem:[%s8997_s15 + $0x18] sm:$0xff]  ;;  %v4781_v30 = vld [vmem:[%s8997_s15 + $0x8] sm:$0xff]  ;;  %v4780_v14 = vld [vmem:[%s8997_s15] sm:$0xff] }
 0x9fd   : > { %v5778_v23 = vpop.f32.mrf.mxu0  ;;  %5851 = vmatmul.mubr.f32.gmra.mxu0 %v4304_v0  ;;  %5885 = vmatprep.subr.mxu0 %v9409_v51  ;;  %v4782_v0 = vld [vmem:[%s8997_s15 + $0x10] sm:$0xff] }
 0x9fe   : > { %v4305_v10 = vmax.f32 %v4273_v55, 0.0  ;;  %v4276_v36 = vadd.f32 %v5778_v23, %v4248_v25  ;;  %5886 = vmatpush3.msra.mxu0 %v4688_v1  ;;  %5899 = vmatpush3.msra.mxu1 %v4786_v61 }
 0x9ff   : > { %v4143_v47 = vpop.f32.mrf.mxu0  ;;  %5887 = vmatprep.subr.mxu0 %v9409_v51  ;;  %5900 = vmatprep.subr.mxu1 %v9409_v51 }
 0xa00   : > { %v4275_v5 = vadd.f32 %v4248_v25, %v4143_v47  ;;  %5853 = vmatprep.mubr.f32.mxu0 %v4305_v10  ;;  %v4308_v6 = vmax.f32 %v4276_v36, 0.0  ;;  %5888 = vmatpush3.msra.mxu0 %v4687_v9 }
 0xa01   : > { %v5781_v46 = vpop.f32.mrf.mxu0  ;;  %5854 = vmatmul.mubr.f32.gmra.mxu0 %v4306_v62  ;;  %5889 = vmatprep.subr.mxu0 %v9409_v51 }
 0xa02   : > { %v4307_v41 = vmax.f32 %v4275_v5, 0.0  ;;  %v4278_v59 = vadd.f32 %v5781_v46, %v4248_v25  ;;  %5890 = vmatpush3.msra.mxu0 %v4686_v63 }
 0xa03   : > { %v4153_v44 = vpop.f32.mrf.mxu0  ;;  %5891 = vmatprep.subr.mxu0 %v9409_v51 }
 0xa04   : > { %v4277_v49 = vadd.f32 %v4248_v25, %v4153_v44  ;;  %5856 = vmatprep.mubr.f32.mxu0 %v4307_v41  ;;  %v4310_v58 = vmax.f32 %v4278_v59, 0.0  ;;  %5892 = vmatpush3.msra.mxu0 %v4685_v37  ;;  %v8859_v59 = vld [vmem:[#allocation3 + $0xc] ss:$0 sm:$0xff] }
 0xa05   : > { %v5784_v24 = vpop.f32.mrf.mxu0  ;;  %5857 = vmatmul.mubr.f32.gmra.mxu0 %v4308_v6 }
 0xa06   : > { %v4309_v33 = vmax.f32 %v4277_v49, 0.0  ;;  %v4280_v3 = vadd.f32 %v5784_v24, %v4248_v25 }
 0xa07   : > { %v4163_v18 = vpop.f32.mrf.mxu0 }
 0xa08   : > { %v4279_v34 = vadd.f32 %v4248_v25, %v4163_v18  ;;  %5859 = vmatprep.mubr.f32.mxu0 %v4309_v33  ;;  %v4312_v60 = vmax.f32 %v4280_v3, 0.0  ;;  %v4785_v25 = vld [vmem:[%s8997_s15 + $0x28] sm:$0xff] }
 0xa09   : > { %v5787_v54 = vpop.f32.mrf.mxu0  ;;  %5860 = vmatmul.mubr.f32.gmra.mxu0 %v4310_v58  ;;  %5901 = vmatpush3.msra.mxu1 %v4785_v25 }
 0xa0a   : > { %v4311_v22 = vmax.f32 %v4279_v34, 0.0  ;;  %v4282_v29 = vadd.f32 %v5787_v54, %v4252_v53  ;;  %5902 = vmatprep.subr.mxu1 %v9409_v51 }
 0xa0b   : > { %v4173_v20 = vpop.f32.mrf.mxu0  ;;  %5903 = vmatpush3.msra.mxu1 %v4784_v12 }
 0xa0c   : > { %v4281_v4 = vadd.f32 %v4252_v53, %v4173_v20  ;;  %5862 = vmatprep.mubr.f32.mxu0 %v4311_v22  ;;  %v4314_v16 = vmax.f32 %v4282_v29, 0.0  ;;  %5904 = vmatprep.subr.mxu1 %v9409_v51 }
 0xa0d   : > { %v5790_v42 = vpop.f32.mrf.mxu0  ;;  %5863 = vmatmul.mubr.f32.gmra.mxu0 %v4312_v60  ;;  %5905 = vmatpush3.msra.mxu1 %v4783_v38 }
 0xa0e   : > { %v4313_v26 = vmax.f32 %v4281_v4, 0.0  ;;  %v4284_v17 = vadd.f32 %v5790_v42, %v4252_v53  ;;  %5906 = vmatprep.subr.mxu1 %v9409_v51 }
 0xa0f   : > { %v4183_v31 = vpop.f32.mrf.mxu0  ;;  %5907 = vmatpush3.msra.mxu1 %v4782_v0 }
 0xa10   : > { %v4283_v57 = vadd.f32 %v4252_v53, %v4183_v31  ;;  %5865 = vmatprep.mubr.f32.mxu0 %v4313_v26  ;;  %v4316_v39 = vmax.f32 %v4284_v17, 0.0  ;;  %5908 = vmatprep.subr.mxu1 %v9409_v51 }
 0xa11   : > { %v5793_v40 = vpop.f32.mrf.mxu0  ;;  %5866 = vmatmul.mubr.f32.gmra.mxu0 %v4314_v16  ;;  %5909 = vmatpush3.msra.mxu1 %v4781_v30 }
 0xa12   : > { %v4315_v11 = vmax.f32 %v4283_v57, 0.0  ;;  %v4286_v52 = vadd.f32 %v5793_v40, %v4252_v53  ;;  %5910 = vmatprep.subr.mxu1 %v9409_v51 }
 0xa13   : > { %v4193_v27 = vpop.f32.mrf.mxu0  ;;  %5911 = vmatpush3.msra.mxu1 %v4780_v14 }
 0xa14   : > { %v4285_v15 = vadd.f32 %v4252_v53, %v4193_v27  ;;  %5868 = vmatprep.mubr.f32.mxu0 %v4315_v11  ;;  %v4318_v21 = vmax.f32 %v4286_v52, 0.0  ;;  %5915 = vmatprep.subr.mxu1 %v9409_v51 }
 0xa15   : > { %v5796_v7 = vpop.f32.mrf.mxu0  ;;  %5869 = vmatmul.mubr.f32.gmra.mxu0 %v4316_v39 }
 0xa16   : > { %v4317_v32 = vmax.f32 %v4285_v15, 0.0  ;;  %v4288_v50 = vadd.f32 %v5796_v7, %v4252_v53 }
 0xa17   : > { %v4203_v28 = vpop.f32.mrf.mxu0 }
 0xa18   : > { %v4287_v2 = vadd.f32 %v4252_v53, %v4203_v28  ;;  %5871 = vmatprep.mubr.f32.mxu0 %v4317_v32  ;;  %v4320_v56 = vmax.f32 %v4288_v50, 0.0 }
 0xa19   : > { %5872 = vmatmul.mubr.f32.gmra.mxu0 %v4318_v21 }
 0xa1a   : > { %v4319_v43 = vmax.f32 %v4287_v2, 0.0 }
 0xa1c   : > { %5874 = vmatprep.mubr.f32.mxu0 %v4319_v43 }
 0xa1d   : > { %5875 = vmatmul.mubr.f32.gmra.mxu0 %v4320_v56 }
 0xa1e   : > { %5893 = vmatprep.mubr.msk.f32.mxu0 %vm6402_vm4, %v9409_v51 }
 0xaa1   : > { %v5831_v55 = vpop.f32.mrf.mxu0 }
 0xaa2   : > { %v4416_v18 = vadd.f32 %v5831_v55, %v8859_v59 }
 0xaa3   : > { %v4410_v23 = vpop.f32.mrf.mxu0 }
 0xaa4   : > { %v4411_v24 = vadd.f32 %v8859_v59, %v4410_v23  ;;  %v4570_v4 = vmax.f32 %v4416_v18, 0.0 }
 0xaa5   : > { %v5834_v10 = vpop.f32.mrf.mxu0 }
 0xaa6   : > { %v4569_v22 = vmax.f32 %v4411_v24, 0.0  ;;  %v4426_v17 = vadd.f32 %v5834_v10, %v8859_v59  ;;  %v4602_v7 = vsel %vm1514_vm0, %v4570_v4, -inf }
 0xaa7   : > { %v4420_v62 = vpop.f32.mrf.mxu0 }
 0xaa8   : > { %v4421_v34 = vadd.f32 %v8859_v59, %v4420_v62  ;;  %v4601_v57 = vsel %vm1514_vm0, %v4569_v22, -inf  ;;  %v4572_v2 = vmax.f32 %v4426_v17, 0.0 }
 0xaa9   : > { %v5837_v36 = vpop.f32.mrf.mxu0  ;;  %v4603_v28 = vmax.f32 %v4601_v57, %v4602_v7 }
 0xaaa   : > { %v4571_v42 = vmax.f32 %v4421_v34, 0.0  ;;  %v4606_v25 = vsel %vm1514_vm0, %v4572_v2, -inf  ;;  %v4436_v12 = vadd.f32 %v5837_v36, %v8859_v59 }
 0xaab   : > { %v4430_v47 = vpop.f32.mrf.mxu0 }
 0xaac   : > { %v4431_v52 = vadd.f32 %v8859_v59, %v4430_v47  ;;  %v4604_v32 = vsel %vm1514_vm0, %v4571_v42, -inf  ;;  %v4574_v24 = vmax.f32 %v4436_v12, 0.0 }
 0xaad   : > { %v8857_v5 = vpop.f32.mrf.mxu0  ;;  %v4605_v8 = vmax.f32 %v4603_v28, %v4604_v32 }
 0xaae   : > { %v4573_v45 = vmax.f32 %v4431_v52, 0.0  ;;  %v4610_v17 = vsel %vm1514_vm0, %v4574_v24, -inf }
 0xaaf   : > { %v4440_v46 = vpop.f32.mrf.mxu0  ;;  %v4607_v10 = vmax.f32 %v4605_v8, %v4606_v25 }
 0xab0   : > { %v4608_v62 = vsel %vm1514_vm0, %v4573_v45, -inf  ;;  %v4441_v47 = vadd.f32 %v8859_v59, %v4440_v46 }
 0xab1   : > { %v5843_v41 = vpop.f32.mrf.mxu0 }
 0xab2   : > { %v4456_v33 = vadd.f32 %v5843_v41, %v8859_v59  ;;  %v4575_v22 = vmax.f32 %v4441_v47, 0.0 }
 0xab3   : > { %v4450_v6 = vpop.f32.mrf.mxu0 }
 0xab4   : > { %v4451_v49 = vadd.f32 %v8859_v59, %v4450_v6  ;;  %v4578_v60 = vmax.f32 %v4456_v33, 0.0  ;;  %v4612_v7 = vsel %vm1514_vm0, %v4575_v22, -inf }
 0xab5   : > { %v5846_v44 = vpop.f32.mrf.mxu0 }
 0xab6   : > { %v4577_v53 = vmax.f32 %v4451_v49, 0.0  ;;  %v4466_v16 = vadd.f32 %v5846_v44, %v8859_v59  ;;  %v4623_v40 = vsel %vm1514_vm0, %v4578_v60, -inf }
 0xab7   : > { %v4460_v35 = vpop.f32.mrf.mxu0 }
 0xab8   : > { %v4461_v58 = vadd.f32 %v8859_v59, %v4460_v35  ;;  %v4622_v26 = vsel %vm1514_vm0, %v4577_v53, -inf  ;;  %v4580_v21 = vmax.f32 %v4466_v16, 0.0 }
 0xab9   : > { %v5849_v3 = vpop.f32.mrf.mxu0  ;;  %v4624_v27 = vmax.f32 %v4622_v26, %v4623_v40 }
 0xaba   : > { %v4579_v29 = vmax.f32 %v4461_v58, 0.0  ;;  %v4476_v1 = vadd.f32 %v5849_v3, %v8859_v59  ;;  %v4627_v63 = vsel %vm1514_vm0, %v4580_v21, -inf }
 0xabb   : > { %v4470_v54 = vpop.f32.mrf.mxu0 }
 0xabc   : > { %v4625_v11 = vsel %vm1514_vm0, %v4579_v29, -inf  ;;  %v4471_v39 = vadd.f32 %v8859_v59, %v4470_v54  ;;  %v4582_v41 = vmax.f32 %v4476_v1, 0.0  ;;  %v4609_v54 = vmax.f32 %v4607_v10, %v4608_v62 }
 0xabd   : > { %v5852_v20 = vpop.f32.mrf.mxu0  ;;  %v4626_v43 = vmax.f32 %v4624_v27, %v4625_v11 }
 0xabe   : > { %v4581_v13 = vmax.f32 %v4471_v39, 0.0  ;;  %v4631_v46 = vsel %vm1514_vm0, %v4582_v41, -inf  ;;  %v4486_v4 = vadd.f32 %v5852_v20, %v8859_v59  ;;  %v4446_v39 = vadd.f32 %v8857_v5, %v8859_v59 }
 0xabf   : > { %v4480_v31 = vpop.f32.mrf.mxu0  ;;  %v4628_v38 = vmax.f32 %v4626_v43, %v4627_v63 }
 0xac0   : > { %v4629_v30 = vsel %vm1514_vm0, %v4581_v13, -inf  ;;  %v4481_v14 = vadd.f32 %v8859_v59, %v4480_v31  ;;  %v4576_v8 = vmax.f32 %v4446_v39, 0.0 }
 0xac1   : > { %v5855_v15 = vpop.f32.mrf.mxu0  ;;  %v4630_v33 = vmax.f32 %v4628_v38, %v4629_v30 }
 0xac2   : > { %v4496_v50 = vadd.f32 %v5855_v15, %v8859_v59  ;;  %v4583_v18 = vmax.f32 %v4481_v14, 0.0  ;;  %v4611_v15 = vmax.f32 %v4609_v54, %v4610_v17  ;;  %v4614_v14 = vsel %vm1514_vm0, %v4576_v8, -inf }
 0xac3   : > { %v4490_v56 = vpop.f32.mrf.mxu0  ;;  %v4632_v31 = vmax.f32 %v4630_v33, %v4631_v46 }
 0xac4   : > { %v4491_v19 = vadd.f32 %v8859_v59, %v4490_v56  ;;  %v4586_v37 = vmax.f32 %v4496_v50, 0.0  ;;  %v4633_v52 = vsel %vm1514_vm0, %v4583_v18, -inf  ;;  %v4584_v50 = vmax.f32 %v4486_v4, 0.0 }
 0xac5   : > { %v5858_v9 = vpop.f32.mrf.mxu0  ;;  %v4634_v56 = vmax.f32 %v4632_v31, %v4633_v52 }
 0xac6   : > { %v4585_v48 = vmax.f32 %v4491_v19, 0.0  ;;  %v4506_v61 = vadd.f32 %v5858_v9, %v8859_v59  ;;  %v4644_v44 = vsel %vm1514_vm0, %v4586_v37, -inf  ;;  %v4613_v9 = vmax.f32 %v4611_v15, %v4612_v7 }
 0xac7   : > { %v4500_v0 = vpop.f32.mrf.mxu0 }
 0xac8   : > { %v4643_v55 = vsel %vm1514_vm0, %v4585_v48, -inf  ;;  %v4501_v23 = vadd.f32 %v8859_v59, %v4500_v0  ;;  %v4588_v36 = vmax.f32 %v4506_v61, 0.0  ;;  %v4635_v48 = vsel %vm1514_vm0, %v4584_v50, -inf }
 0xac9   : > { %v5861_v6 = vpop.f32.mrf.mxu0  ;;  %v4645_v58 = vmax.f32 %v4643_v55, %v4644_v44  ;;  %v4636_v38 = vmax.f32 %v4634_v56, %v4635_v48  ;;  %v4615_v62 = vmax.f32 %v4613_v9, %v4614_v14 }
 0xaca   : > { %v4587_v49 = vmax.f32 %v4501_v23, 0.0  ;;  %v4516_v35 = vadd.f32 %v5861_v6, %v8859_v59  ;;  %v4648_v42 = vsel %vm1514_vm0, %v4588_v36, -inf }
 0xacb   : > { %v4510_v3 = vpop.f32.mrf.mxu0  ;;  %v4616_v18 = vrot.slane %v4615_v62, 4 }
 0xacc   : > { %v4646_v34 = vsel %vm1514_vm0, %v4587_v49, -inf  ;;  %v4511_v53 = vadd.f32 %v8859_v59, %v4510_v3  ;;  %v4590_v26 = vmax.f32 %v4516_v35, 0.0  ;;  %v4637_v49 = vrot.slane %v4636_v38, 4 }
 0xacd   : > { %v4647_v60 = vmax.f32 %v4645_v58, %v4646_v34  ;;  %v5864_v29 = vpop.f32.mrf.mxu0  ;;  %v4617_v31 = vmax.f32 %v4615_v62, %v4616_v18  ;;  %v5256_v62 = vld [vmem:[#allocation3 + $0xe] ss:$0 sm:$0xff] }
 0xace   : > { %v4589_v16 = vmax.f32 %v4511_v53, 0.0  ;;  %v4526_v40 = vadd.f32 %v5864_v29, %v8859_v59  ;;  %v4652_v28 = vsel %vm1514_vm0, %v4590_v26, -inf  ;;  %v4638_v29 = vmax.f32 %v4636_v38, %v4637_v49  ;;  %v5254_v38 = vld [vmem:[#allocation3 + $0xd] ss:$0 sm:$0xff] }
 0xacf   : > { %v4649_v57 = vmax.f32 %v4647_v60, %v4648_v42  ;;  %v4520_v11 = vpop.f32.mrf.mxu0  ;;  %v4618_v7 = vrot.slane %v4617_v31, 2 }
 0xad0   : > { %v4650_v27 = vsel %vm1514_vm0, %v4589_v16, -inf  ;;  %v4521_v20 = vadd.f32 %v8859_v59, %v4520_v11  ;;  %v4592_v13 = vmax.f32 %v4526_v40, 0.0  ;;  %v4639_v52 = vrot.slane %v4638_v29, 2 }
 0xad1   : > { %v4651_v32 = vmax.f32 %v4649_v57, %v4650_v27  ;;  %v5867_v21 = vpop.f32.mrf.mxu0 }
 0xad2   : > { %v4591_v2 = vmax.f32 %v4521_v20, 0.0  ;;  %v4536_v43 = vadd.f32 %v5867_v21, %v8859_v59  ;;  %v4656_v0 = vsel %vm1514_vm0, %v4592_v13, -inf  ;;  %v4640_v50 = vmax.f32 %v4638_v29, %v4639_v52 }
 0xad3   : > { %v4653_v5 = vmax.f32 %v4651_v32, %v4652_v28  ;;  %v4530_v19 = vpop.f32.mrf.mxu0 }
 0xad4   : > { %v4654_v45 = vsel %vm1514_vm0, %v4591_v2, -inf  ;;  %v4531_v1 = vadd.f32 %v8859_v59, %v4530_v19  ;;  %v4594_v61 = vmax.f32 %v4536_v43, 0.0  ;;  %v4619_v43 = vmax.f32 %v4617_v31, %v4618_v7 }
 0xad5   : > { %v4655_v63 = vmax.f32 %v4653_v5, %v4654_v45  ;;  %v5870_v37 = vpop.f32.mrf.mxu0  ;;  %v4641_v56 = vrot.slane %v4640_v50, 1 }
 0xad6   : > { %v4593_v25 = vmax.f32 %v4531_v1, 0.0  ;;  %v4546_v12 = vadd.f32 %v5870_v37, %v8859_v59  ;;  %v4665_v41 = vsel %vm1514_vm0, %v4594_v61, -inf  ;;  %v4620_v19 = vrot.slane %v4619_v43, 1 }
 0xad7   : > { %v4540_v30 = vpop.f32.mrf.mxu0  ;;  %v4657_v55 = vmax.f32 %v4655_v63, %v4656_v0  ;;  %v4642_v45 = vmax.f32 %v4640_v50, %v4641_v56 }
 0xad8   : > { %v4664_v23 = vsel %vm1514_vm0, %v4593_v25, -inf  ;;  %v4541_v10 = vadd.f32 %v8859_v59, %v4540_v30  ;;  %v4596_v6 = vmax.f32 %v4546_v12, 0.0  ;;  %v4621_v63 = vmax.f32 %v4619_v43, %v4620_v19 }
 0xad9   : > { %v5873_v47 = vpop.f32.mrf.mxu0  ;;  %v4666_v35 = vmax.f32 %v4664_v23, %v4665_v41  ;;  %v4658_v33 = vrot.slane %v4657_v55, 4  ;;  %v4874_v23 = vld [vmem:[%s9412_s29 + $0x8] sm:$0xff] }
 0xada   : > { %v4595_v44 = vmax.f32 %v4541_v10, 0.0  ;;  %v4556_v36 = vadd.f32 %v5873_v47, %v8859_v59  ;;  %v4669_v54 = vsel %vm1514_vm0, %v4596_v6, -inf  ;;  %v4704_v61 = vsel %vm2384_vm1, %v4642_v45, %v4621_v63  ;;  %v4873_v10 = vld [vmem:[%s9412_s29] sm:$0xff] }
 0xadb   : > { %v4550_v24 = vpop.f32.mrf.mxu0  ;;  %v4659_v26 = vmax.f32 %v4657_v55, %v4658_v33 }
 0xadc   : > { %v4667_v58 = vsel %vm1514_vm0, %v4595_v44, -inf  ;;  %v4551_v3 = vadd.f32 %v8859_v59, %v4550_v24  ;;  %v4598_v22 = vmax.f32 %v4556_v36, 0.0  ;;  %v5258_v24 = vld [vmem:[#allocation3 + $0xf] ss:$0 sm:$0xff] }
 0xadd   : > { %v4668_v34 = vmax.f32 %v4666_v35, %v4667_v58  ;;  %v5876_v53 = vpop.f32.mrf.mxu0  ;;  %v4660_v20 = vrot.slane %v4659_v26, 2  ;;  %v4957_v35 = vpop.permute.xlu1 %4956 }
 0xade   : > { %v4597_v46 = vmax.f32 %v4551_v3, 0.0  ;;  %v4566_v60 = vadd.f32 %v5876_v53, %v8859_v59  ;;  %v4673_v40 = vsel %vm1514_vm0, %v4598_v22, -inf }
 0xadf   : > { %v4670_v4 = vmax.f32 %v4668_v34, %v4669_v54  ;;  %v4560_v42 = vpop.f32.mrf.mxu0  ;;  %v4661_v2 = vmax.f32 %v4659_v26, %v4660_v20 }
 0xae0   : > { %v4671_v16 = vsel %vm1514_vm0, %v4597_v46, -inf  ;;  %v4561_v17 = vadd.f32 %v8859_v59, %v4560_v42  ;;  %v4600_v11 = vmax.f32 %v4566_v60, 0.0 }
 0xae1   : > { %v4672_v57 = vmax.f32 %v4670_v4, %v4671_v16  ;;  %v4662_v5 = vrot.slane %v4661_v2, 1  ;;  %v4961_v3 = vpop.permute.xlu1 %4960 }
 0xae2   : > { %v4599_v39 = vmax.f32 %v4561_v17, 0.0  ;;  %v4677_v21 = vsel %vm1514_vm0, %v4600_v11, -inf }
 0xae3   : > { %v4674_v27 = vmax.f32 %v4672_v57, %v4673_v40  ;;  %v4663_v9 = vmax.f32 %v4661_v2, %v4662_v5 }
 0xae4   : > { %v4675_v15 = vsel %vm1514_vm0, %v4599_v39, -inf }
 0xae5   : > { %v4676_v32 = vmax.f32 %v4674_v27, %v4675_v15  ;;  %v4705_v25 = vsel %vm2386_vm2, %v4663_v9, %v4704_v61 }
 0xae7   : > { %v4678_v28 = vmax.f32 %v4676_v32, %v4677_v21 }
 0xae9   : > { %v4679_v59 = vrot.slane %v4678_v28, 4 }
 0xaeb   : > { %v4680_v13 = vmax.f32 %v4678_v28, %v4679_v59 }
 0xaed   : > { %v4681_v8 = vrot.slane %v4680_v13, 2 }
 0xaef   : > { %v4682_v1 = vmax.f32 %v4680_v13, %v4681_v8 }
 0xaf1   : > { %v4683_v37 = vrot.slane %v4682_v1, 1 }
 0xaf3   : > { %v4684_v48 = vmax.f32 %v4682_v1, %v4683_v37 }
 0xaf5   : > { %v4706_v12 = vsel %vm2388_vm3, %v4684_v48, %v4705_v25 }
 0xaf6   : > { %5894 = vmatmul.mubr.msk.f32.vlgmr.msra.gmra.mxu0 %vm1514_vm0, %v4706_v12 }
 0xbb6   : > { %v4775_v0 = vpop.f32.mrf.mxu0 }
 0xbb7   : > { %v4776_v30 = vadd.f32 %v5254_v38, %v4775_v0 }
 0xbb8   : > { %v5895_v14 = vpop.f32.mrf.mxu0 }
 0xbb9   : > { %v4779_v55 = vmax.f32 %v4776_v30, 0.0 }
 0xbbb   : > { %5913 = vmatmul.mubr.msk.f32.vlgmr.msra.gmra.mxu1 %vm1514_vm0, %v4779_v55 }
 0xbbc   : > { %5919 = vmatprep.mubr.msk.f32.mxu1 %vm6402_vm4, %v9409_v51  ;;  %5916 = vmatpush3.msra.mxu1 %v4874_v23 }
 0xbbd   : > { %5917 = vmatprep.subr.mxu1 %v9409_v51 }
 0xbbe   : > { %5918 = vmatpush3.msra.mxu1 %v4873_v10 }
 0xc7b   : > { %v4864_v47 = vpop.f32.mrf.mxu1 }
 0xc7c   : > { %v4865_v41 = vadd.f32 %v5256_v62, %v4864_v47 }
 0xc7d   : > { %v5914_v6 = vpop.f32.mrf.mxu1 }
 0xc7e   : > { %v4869_v44 = vrot.slane %v4865_v41, 2 }
 0xc80   : > { %v4871_v36 = vsub.f32 %v4865_v41, %v4869_v44 }
 0xc82   : > { %v4872_v49 = vand.u32 2147483647, %v4871_v36 }
 0xc84   : > { %5920 = vmatmul.mubr.msk.f32.vlgmr.msra.gmra.mxu1 %vm4882_vm5, %v4872_v49 }
 0xd44   : > { %v4952_v33 = vpop.f32.mrf.mxu1 }
 0xd45   : > { %v4953_v58 = vadd.f32 %v5258_v24, %v4952_v33 }
 0xd46   : > { %v5921_v51 = vpop.f32.mrf.mxu1 }
 0xd47   : > { %v4964_v18 = vsel %vm4963_vm6, %v4953_v58, %v4957_v35 }
 0xd48   : > { %v4966_v34 = vsel %vm4965_vm7, %v4964_v18, %v4961_v3 }
 0xd49   : > { %v4968_v53 = vsel %vm4967_vm8, %v4966_v34, 0.0 }
 0xd4a   : > { %4969 = vst [vmem:[%s803_s30] sm:$0x3] %v4968_v53 }
 0xd4b   : > { %6324 = shalt.err (!%p6321_p8)
}
 0xd4c   : > { %s6325_s18 = scalar_lea.hbm %s8945_s16, 32  ;;  %s6329_s30 = scalar_lea.hbm %s9414_s8, 64 }
 0xd4d   : > { %p6326_p11 = scmp.ne.s32.totalorder %s8945_s16, %s6325_s18  ;;  %p6330_p13 = scmp.lt.s32.totalorder %s8945_s16, %s9414_s8 }
 0xd4e   : > { %p6331_p5 = scmp.lt.s32.totalorder %s6329_s30, %s6325_s18 }
 0xd4f   : > { %p6327_p10 = pnand %p6326_p11, %p9415_p12 }
 0xd50   : > { %p6332_p6 = por %p6331_p5, %p6330_p13 }
 0xd51   : > { %p6328_p9 = pneg %p6327_p10 }
 0xd53   : > { %p6333_p2 = pnand %p6332_p6, %p6328_p9 }
 0xd55   : > { %6336 = shalt.err (!%p6333_p2)
}
 0xd56   : > { %5966 = dma.vmem_to_hbm [thread:$0]  (%p9415_p12), %s4985_s19, 32, %s8945_s16, %s4971_s24  }
 0xd57 PF: > { %s9416_s0 = sld [smem:[#allocation21_spill]] }
 0xd58   : > { %s9417_s28 = sld [smem:[#allocation25_spill]] }
 0xd5d   : > { %s4996_s23 = sand.u32 1, %s9416_s0  }
 0xd5e   : > { %p9418_p1 = scmp.ne.s32.totalorder %s9417_s28, 0  ;;  %s4997_s21 = scalar_lea.sflag [#allocation5], %s4996_s23 }
 0xd60   : > { %p5991_p0 = pnand %p5127_p3, %p9418_p1 }
 0xd62   : > { %p5992_p4 = pneg %p5991_p0 }
 0xd64   : > { %6370 = dma.done.wait (%p5992_p4), %s4997_s21, 32  }
 0xd65   : > { %6372 = vsyncadd (%p5992_p4), %s4997_s21, 4294967264  ;;  %s9419_s27 = sld [smem:[#allocation22_spill]]  ;;  %s9421_s24 = smov %s6379_s25 }
 0xd66   : > { %s9420_s18 = sld [smem:[#allocation23_spill]]  ;;  %s9422_s25 = smov %s6383_s26 }
 0xd6b   : > { %p31_p7 = scmp.ge.s32.totalorder %s9419_s27, 4  }
 0xd6c   : > { %s9423_s26 = smov %s9420_s18 }
 0xd6d   :  { %33 = sbr.rel (!%p31_p7) target bundleno = 14 (0xe), region = 195 }
 0xd72   :  { %5002 = vsyncpa [#allocation4], 1 }
 0xd73   :  { %5004 = vsyncpa [#allocation4 + $0x1], 1 }
 0xd74   :  { %5005 = vsyncpa [#allocation7], 1 }
 0xd75   :  { %5006 = vsyncpa [#allocation10], 1 }
 0xd76   :  { %5007 = vsyncpa [#allocation13], 1 }
 0xd77   :  { %5008 = vsyncpa [#allocation5], 1 }
 0xd78   :  { %5010 = vsyncpa [#allocation5 + $0x1], 1 }

</bundles_post_ra>
